<compile_context>
chip_gen: v5e
topology: v5e:2x2
jax: 0.10.0
libtpu: 0.0.40
codegen_flags: <defaults>
</compile_context>

<pallas_src>
import functools

import jax
import jax.numpy as jnp
from jax import lax
from jax.experimental import pallas as pl
from jax.experimental.pallas import tpu as pltpu

NEG_SLOPE = 0.01  # PyTorch nn.LeakyReLU default
_EPS = 1e-8

# ---- LocalBranch static tables (copied from the PyTorch module) ------------
_IN_OUT_HW = {
    'head': (2, 4, 16, 11), 'torso': (8, 10, 16, 11),
    'armL': (3, 3, 16, 11), 'armR': (3, 3, 16, 11),
    'legL': (6, 5, 16, 11), 'legR': (6, 5, 16, 11),
}
_OFFSETS = {
    'head': (0.5, 0.5, 1.0 / 16, 0.3, 0.1, 0.4, 4.0 / 11),
    'torso': (0.5, 0.5, 3.0 / 8, 0.3, 0.1, 0.4, 10.0 / 11),
    'armL': (0.5, 0.3, 0.5, 0.3, 0.1, 0.4, 3.0 / 11),
    'armR': (0.5, 0.7, 0.5, 0.3, 0.1, 0.4, 3.0 / 11),
    'legL': (0.5, 0.3, 0.8, 0.3, 0.1, 0.4, 5.0 / 11),
    'legR': (0.5, 0.7, 0.8, 0.3, 0.1, 0.4, 5.0 / 11),
}


def _leaky(v):
    return jnp.where(v > 0, v, NEG_SLOPE * v)


def _iota_f32(shape, dim):
    return lax.broadcasted_iota(jnp.int32, shape, dim).astype(jnp.float32)


# ============================ fused Pallas kernel ============================

def _fused_kernel(px_ref, xf_ref, w1t_ref, fcwt_ref, fcbt_ref, wk_ref,
                  out_ref, samp_scr, *, offsets, T, H, W, U, Yo, Xo, Ci, Co, halo):
    f32 = jnp.float32
    YX = Yo * Xo
    P = U * YX
    HW = H * W

    # ---------- Localization3D: 1x1x1 conv -> LeakyReLU -> GAP -> FC(7) ----------
    px = px_ref[0]                                                # (Cp, T*H*W), lane-dense
    hid = _leaky(jnp.dot(w1t_ref[...], px,
                         preferred_element_type=f32))             # (Ch, T*H*W)
    pooled = jnp.mean(hid, axis=1, keepdims=True)                 # (Ch, 1)
    # Ch (= param_channels // 2) is tiny, so the unrolled rank-1 updates are free.
    loc = fcbt_ref[...]                                           # (7, 1)
    for ch in range(fcwt_ref.shape[1]):
        loc = loc + fcwt_ref[:, ch:ch + 1] * pooled[ch:ch + 1, :]

    # ---------- Gaussian filterbank parameters (tanh/exp -> EUP, stays in vregs) --
    off_t, off_x, off_y, sig_t, sig, dlt_t, dlt = offsets
    p = lambda k: loc[k:k + 1, 0:1]                               # (1, 1)
    c_t = (off_t + 0.1 * jnp.tanh(p(0))) * (T - 1)
    c_x = (off_x + 0.1 * jnp.tanh(p(1))) * (W - 1)
    c_y = (off_y + 0.1 * jnp.tanh(p(2))) * (H - 1)
    s_t = sig_t * jnp.exp(0.1 * p(3)) * T
    s_y = sig * jnp.exp(0.1 * p(4)) * H
    s_x = sig * jnp.exp(0.1 * p(4)) * W
    d_t = dlt_t * jnp.exp(0.1 * p(5)) * T / U
    d_y = dlt * jnp.exp(0.1 * p(6)) * H / Yo
    d_x = dlt * jnp.exp(0.1 * p(6)) * W / Xo

    # Combined spatial filterbank built directly in MXU-RHS layout:
    #   fyx_t[h*W + w, y*Xo + x] = Fy[y, h] * Fx[x, w]
    hw_i = _iota_f32((HW, YX), 0)
    yx_i = _iota_f32((HW, YX), 1)
    h_c = jnp.floor(hw_i / W)
    w_c = hw_i - h_c * W
    y_c = jnp.floor(yx_i / Xo)
    x_c = yx_i - y_c * Xo
    gy = jnp.exp(-((h_c - (c_y + (y_c - (Yo - 1) / 2.0) * d_y)) ** 2)
                 / (2.0 * s_y ** 2 + _EPS))
    gx = jnp.exp(-((w_c - (c_x + (x_c - (Xo - 1) / 2.0) * d_x)) ** 2)
                 / (2.0 * s_x ** 2 + _EPS))
    # gy depends only on h, gx only on w, so the full-column sums are W*sum_h / H*sum_w.
    inv_ny = 1.0 / (jnp.sum(gy, axis=0, keepdims=True) / W + _EPS)   # (1, YX)
    inv_nx = 1.0 / (jnp.sum(gx, axis=0, keepdims=True) / H + _EPS)   # (1, YX)
    fyx_t = (gy * gx) * (inv_ny * inv_nx)                            # (HW, YX)

    # Temporal filterbank as one block-diagonal operator kron(I_Ci, Ft): (Ci*U, Ci*T)
    r_i = _iota_f32((Ci * U, Ci * T), 0)
    q_i = _iota_f32((Ci * U, Ci * T), 1)
    r_blk = jnp.floor(r_i / U)
    q_blk = jnp.floor(q_i / T)
    u_c = r_i - r_blk * U
    t_c = q_i - q_blk * T
    gt = jnp.exp(-((t_c - (c_t + (u_c - (U - 1) / 2.0) * d_t)) ** 2)
                 / (2.0 * s_t ** 2 + _EPS))
    gt = jnp.where(r_blk == q_blk, gt, 0.0)
    inv_nt = 1.0 / (jnp.sum(gt, axis=1, keepdims=True) + _EPS)       # (Ci*U, 1)
    ft_bd = gt * inv_nt                                              # (Ci*U, Ci*T)

    # ---------- GaussianSample: two MXU matmuls (spatial, then temporal) ----------
    xf = xf_ref[0]                                                # (Ci*T, H*W)
    a = jnp.dot(xf, fyx_t, preferred_element_type=f32)            # (Ci*T, YX)
    s = jnp.dot(ft_bd, a, preferred_element_type=f32)             # (Ci*U, YX)

    # Lay the sampled crop out as (Ci, U*Yo*Xo) inside a zero-padded (halo) VMEM
    # scratch so the 3x3x3 conv reads its 27 taps as plain lane-offset windows.
    samp_scr[...] = jnp.zeros(samp_scr.shape, f32)
    for ci in range(Ci):
        for u in range(U):
            samp_scr[ci:ci + 1, halo + u * YX:halo + (u + 1) * YX] = (
                s[ci * U + u:ci * U + u + 1, :])

    # ---------- C3DBlock: 3x3x3 conv (pad=1, no bias) + LeakyReLU -----------------
    pp = _iota_f32((1, P), 1)
    u_p = jnp.floor(pp / YX)
    rem = pp - u_p * YX
    y_p = jnp.floor(rem / Xo)
    x_p = rem - y_p * Xo

    # Boundary masks hoisted out of the 27-tap loop (they only depend on (dy, dx);
    # temporal padding is handled by the zeroed halo, y/x wrap-around by the masks).
    y_ok = {-1: y_p >= 1.0, 0: None, 1: y_p <= Yo - 2.0}
    x_ok = {-1: x_p >= 1.0, 0: None, 1: x_p <= Xo - 2.0}
    masks = {}
    for dyy in (-1, 0, 1):
        for dxx in (-1, 0, 1):
            m = y_ok[dyy]
            if x_ok[dxx] is not None:
                m = x_ok[dxx] if m is None else (m & x_ok[dxx])
            masks[(dyy, dxx)] = m

    acc = jnp.zeros((Co, P), f32)
    for dtau in (-1, 0, 1):
        for dyy in (-1, 0, 1):
            for dxx in (-1, 0, 1):
                k = (dtau + 1) * 9 + (dyy + 1) * 3 + (dxx + 1)
                off = dtau * YX + dyy * Xo + dxx
                tap = samp_scr[:, halo + off:halo + off + P]      # (Ci, P)
                m = masks[(dyy, dxx)]
                if m is not None:
                    tap = jnp.where(m, tap, 0.0)
                acc = acc + jnp.dot(wk_ref[k], tap,
                                    preferred_element_type=f32)   # (Co, P)

    out_ref[0] = _leaky(acc)


# ============================ wrapper ========================================

def local_branch_forward(x, param_x, params, human_part):
    """Fused Pallas LocalBranch forward.  x, param_x: (N, C, T, H, W) float32 (NCTHW)."""
    N, Ci, T, H, W = x.shape
    Cp = param_x.shape[1]
    Yo, Xo, Hf, Wf = _IN_OUT_HW[human_part]
    assert (H, W) == (Hf, Wf)
    U = T                                                          # temporal length kept
    P = U * Yo * Xo
    Co = params['w_c3d'].shape[0]
    Ch = params['w_loc'].shape[1]
    halo = Yo * Xo + Xo + 1                                        # >= max |flat conv offset|

    # Lane-dense, transpose-free 2-D presentations of every operand (reshape only).
    px = param_x.reshape(N, Cp, T * H * W)                         # 1408 = 11*128 on lanes
    xf = x.reshape(N, Ci * T, H * W)
    w1t = params['w_loc'].T                                        # (Ch, Cp)
    fcwt = params['fc_w'].T                                        # (7, Ch)
    fcbt = params['fc_b'].reshape(7, 1)                            # (7, 1)
    wk = jnp.transpose(params['w_c3d'], (2, 3, 4, 0, 1)).reshape(27, Co, Ci)

    kernel = functools.partial(
        _fused_kernel, offsets=_OFFSETS[human_part],
        T=T, H=H, W=W, U=U, Yo=Yo, Xo=Xo, Ci=Ci, Co=Co, halo=halo)

    out = pl.pallas_call(
        kernel,
        out_shape=jax.ShapeDtypeStruct((N, Co, P), jnp.float32),
        grid=(N,),
        in_specs=[
            pl.BlockSpec((1, Cp, T * H * W), lambda n: (n, 0, 0)),
            pl.BlockSpec((1, Ci * T, H * W), lambda n: (n, 0, 0)),
            pl.BlockSpec((Ch, Cp), lambda n: (0, 0)),
            pl.BlockSpec((7, Ch), lambda n: (0, 0)),
            pl.BlockSpec((7, 1), lambda n: (0, 0)),
            pl.BlockSpec((27, Co, Ci), lambda n: (0, 0, 0)),
        ],
        out_specs=pl.BlockSpec((1, Co, P), lambda n: (n, 0, 0)),
        scratch_shapes=[pltpu.VMEM((Ci, P + 2 * halo), jnp.float32)],
        compiler_params=pltpu.CompilerParams(
            dimension_semantics=("parallel",)),
    )(px, xf, w1t, fcwt, fcbt, wk)
    return out.reshape(N, Co, U, Yo, Xo)                           # (N, Co, T, Yo, Xo)


# ============================ pure-JAX reference =============================

def _filterbank(center, stride, sigma, a_in, n_out):
    """Normalized Gaussian filterbank (DRAW-style): (N, n_out, a_in)."""
    i = jnp.arange(n_out, dtype=jnp.float32)
    a = jnp.arange(a_in, dtype=jnp.float32)
    mu = center[:, None] + (i[None, :] - (n_out - 1) / 2.0) * stride[:, None]
    f = jnp.exp(-((a[None, None, :] - mu[:, :, None]) ** 2)
                / (2.0 * sigma[:, None, None] ** 2 + _EPS))
    return f / (jnp.sum(f, axis=-1, keepdims=True) + _EPS)


def _build_filterbanks(loc, offsets, T, H, W, U, Yo, Xo):
    dt, dx, dy, sig_t, sig, dlt_t, dlt = offsets
    p = loc                                                        # (N, 7)
    c_t = (dt + 0.1 * jnp.tanh(p[:, 0])) * (T - 1)
    c_x = (dx + 0.1 * jnp.tanh(p[:, 1])) * (W - 1)
    c_y = (dy + 0.1 * jnp.tanh(p[:, 2])) * (H - 1)
    s_t = sig_t * jnp.exp(0.1 * p[:, 3]) * T
    s_y = sig * jnp.exp(0.1 * p[:, 4]) * H
    s_x = sig * jnp.exp(0.1 * p[:, 4]) * W
    d_t = dlt_t * jnp.exp(0.1 * p[:, 5]) * T / U
    d_y = dlt * jnp.exp(0.1 * p[:, 6]) * H / Yo
    d_x = dlt * jnp.exp(0.1 * p[:, 6]) * W / Xo
    return (_filterbank(c_t, d_t, s_t, T, U),
            _filterbank(c_y, d_y, s_y, H, Yo),
            _filterbank(c_x, d_x, s_x, W, Xo))


def init_params(key, param_channels, in_channels, out_channels):
    hidden = param_channels // 2
    k1, k2, k3 = jax.random.split(key, 3)
    return {
        'w_loc': 0.1 * jax.random.normal(k1, (param_channels, hidden), jnp.float32),
        'fc_w': 0.1 * jax.random.normal(k2, (hidden, 7), jnp.float32),
        'fc_b': jnp.zeros((1, 7), jnp.float32),
        'w_c3d': 0.1 * jax.random.normal(k3, (out_channels, in_channels, 3, 3, 3),
                                         jnp.float32),
    }


def local_branch_reference(x, param_x, params, human_part):
    """Pure-JAX reference with identical math (for correctness check)."""
    N, Ci, T, H, W = x.shape
    Cp = param_x.shape[1]
    Yo, Xo, _, _ = _IN_OUT_HW[human_part]
    U = T
    hp = jax.lax.Precision.HIGHEST
    px2 = jnp.transpose(param_x, (0, 2, 3, 4, 1)).reshape(N, T * H * W, Cp)
    h = _leaky(jnp.einsum('npc,ch->nph', px2, params['w_loc'], precision=hp))
    loc = (jnp.einsum('nh,ho->no', h.mean(axis=1), params['fc_w'], precision=hp)
           + params['fc_b'][0])
    Ft, Fy, Fx = _build_filterbanks(loc, _OFFSETS[human_part], T, H, W, U, Yo, Xo)
    sampled = jnp.einsum('ncthw,nut,nyh,nxw->ncuyx', x, Ft, Fy, Fx, precision=hp)
    out = jax.lax.conv_general_dilated(
        sampled, params['w_c3d'], window_strides=(1, 1, 1),
        padding=((1, 1), (1, 1), (1, 1)),
        dimension_numbers=('NCDHW', 'OIDHW', 'NCDHW'), precision=hp)
    return _leaky(out)


if __name__ == "__main__":
    human_part = 'head'
    N, Cp, Ci, Co, T = 2, 4, 4, 8, 8
    _, _, H, W = _IN_OUT_HW[human_part]                            # 16, 11

    key = jax.random.PRNGKey(0)
    kx, kp, kw = jax.random.split(key, 3)
    x = jax.random.normal(kx, (N, Ci, T, H, W), jnp.float32)
    param_x = jax.random.normal(kp, (N, Cp, T, H, W), jnp.float32)
    params = init_params(kw, Cp, Ci, Co)

    fwd = jax.jit(functools.partial(local_branch_forward, human_part=human_part))
    out = jax.block_until_ready(fwd(x, param_x, params))

    ref = local_branch_reference(x, param_x, params, human_part)
    assert out.shape == (N, Co, T, 2, 4), out.shape
    assert bool(jnp.all(jnp.isfinite(out)))
    max_err = float(jnp.max(jnp.abs(out - ref)))
    assert max_err < 1e-2, f"mismatch vs reference: {max_err}"
    print("KERNEL_OK")
</pallas_src>

<mosaic_0001>
module attributes {stable_mosaic.version = 11 : i64} {
  func.func @_fused_kernel(%arg0: i32, %arg1: memref<1x4x1408xf32, #tpu.memory_space<vmem>>, %arg2: memref<1x32x176xf32, #tpu.memory_space<vmem>>, %arg3: memref<2x4xf32, #tpu.memory_space<vmem>>, %arg4: memref<7x2xf32, #tpu.memory_space<vmem>>, %arg5: memref<7x1xf32, #tpu.memory_space<vmem>>, %arg6: memref<27x8x4xf32, #tpu.memory_space<vmem>>, %arg7: memref<1x8x64xf32, #tpu.memory_space<vmem>>, %arg8: memref<4x90xf32, #tpu.memory_space<vmem>>) attributes {dimension_semantics = [#tpu.dimension_semantics<parallel>], iteration_bounds = array<i64: 2>, scalar_prefetch = 0 : i64, scratch_operands = 1 : i64, tpu.core_type = #tpu.core_type<tc>, window_params = [{transform_indices = @transform_0, window_bounds = array<i64: 1, 4, 1408>}, {transform_indices = @transform_1, window_bounds = array<i64: 1, 32, 176>}, {pipeline_mode = #tpu.pipeline_mode<synchronous>, transform_indices = @transform_2, window_bounds = array<i64: 2, 4>}, {pipeline_mode = #tpu.pipeline_mode<synchronous>, transform_indices = @transform_3, window_bounds = array<i64: 7, 2>}, {pipeline_mode = #tpu.pipeline_mode<synchronous>, transform_indices = @transform_4, window_bounds = array<i64: 7, 1>}, {pipeline_mode = #tpu.pipeline_mode<synchronous>, transform_indices = @transform_5, window_bounds = array<i64: 27, 8, 4>}, {transform_indices = @transform_6, window_bounds = array<i64: 1, 8, 64>}]} {
    %c0 = arith.constant 0 : index
    %c0_0 = arith.constant 0 : index
    %c0_1 = arith.constant 0 : index
    %0 = vector.load %arg1[%c0, %c0_0, %c0_1] : memref<1x4x1408xf32, #tpu.memory_space<vmem>>, vector<1x4x1408xf32>
    %1 = vector.shape_cast %0 : vector<1x4x1408xf32> to vector<4x1408xf32>
    %c0_2 = arith.constant 0 : index
    %c0_3 = arith.constant 0 : index
    %2 = vector.load %arg3[%c0_2, %c0_3] : memref<2x4xf32, #tpu.memory_space<vmem>>, vector<2x4xf32>
    %cst = arith.constant dense<0.000000e+00> : vector<2x1408xf32>
    %3 = tpu.matmul %2, %1, %cst {dimension_numbers = #tpu.dot_dimension_numbers<[1], [0], [0], [1], [0, 0, 1, 1], [], []>} : vector<2x4xf32>, vector<4x1408xf32>, vector<2x1408xf32> -> vector<2x1408xf32>
    %cst_4 = arith.constant 0.000000e+00 : f32
    %4 = vector.broadcast %cst_4 : f32 to vector<2x1408xf32>
    %5 = arith.cmpf ogt, %3, %4 : vector<2x1408xf32>
    %cst_5 = arith.constant 0.00999999977 : f32
    %6 = vector.broadcast %cst_5 : f32 to vector<2x1408xf32>
    %7 = arith.mulf %6, %3 : vector<2x1408xf32>
    %8 = arith.select %5, %3, %7 : vector<2x1408xi1>, vector<2x1408xf32>
    %cst_6 = arith.constant dense<0.000000e+00> : vector<2xf32>
    %9 = vector.multi_reduction <add>, %8, %cst_6 [1] : vector<2x1408xf32> to vector<2xf32>
    %10 = vector.shape_cast %9 : vector<2xf32> to vector<2x1xf32>
    %cst_7 = arith.constant 1.408000e+03 : f32
    %11 = vector.broadcast %cst_7 : f32 to vector<2x1xf32>
    %12 = arith.divf %10, %11 : vector<2x1xf32>
    %c0_8 = arith.constant 0 : index
    %c0_9 = arith.constant 0 : index
    %13 = vector.load %arg5[%c0_8, %c0_9] : memref<7x1xf32, #tpu.memory_space<vmem>>, vector<7x1xf32>
    %c0_10 = arith.constant 0 : index
    %c0_11 = arith.constant 0 : index
    %14 = vector.load %arg4[%c0_10, %c0_11] : memref<7x2xf32, #tpu.memory_space<vmem>>, vector<7x1xf32>
    %15 = vector.extract_strided_slice %12 {offsets = [0, 0], sizes = [1, 1], strides = [1, 1]} : vector<2x1xf32> to vector<1x1xf32>
    %16 = vector.broadcast %15 : vector<1x1xf32> to vector<7x1xf32>
    %17 = arith.mulf %14, %16 : vector<7x1xf32>
    %18 = arith.addf %13, %17 : vector<7x1xf32>
    %c0_12 = arith.constant 0 : index
    %c1 = arith.constant 1 : index
    %19 = vector.load %arg4[%c0_12, %c1] : memref<7x2xf32, #tpu.memory_space<vmem>>, vector<7x1xf32>
    %20 = vector.extract_strided_slice %12 {offsets = [1, 0], sizes = [1, 1], strides = [1, 1]} : vector<2x1xf32> to vector<1x1xf32>
    %21 = vector.broadcast %20 : vector<1x1xf32> to vector<7x1xf32>
    %22 = arith.mulf %19, %21 : vector<7x1xf32>
    %23 = arith.addf %18, %22 : vector<7x1xf32>
    %24 = vector.extract_strided_slice %23 {offsets = [0, 0], sizes = [1, 1], strides = [1, 1]} : vector<7x1xf32> to vector<1x1xf32>
    %25 = math.tanh %24 : vector<1x1xf32>
    %cst_13 = arith.constant 1.000000e-01 : f32
    %26 = vector.broadcast %cst_13 : f32 to vector<1x1xf32>
    %27 = arith.mulf %26, %25 : vector<1x1xf32>
    %cst_14 = arith.constant 5.000000e-01 : f32
    %28 = vector.broadcast %cst_14 : f32 to vector<1x1xf32>
    %29 = arith.addf %28, %27 : vector<1x1xf32>
    %cst_15 = arith.constant 7.000000e+00 : f32
    %30 = vector.broadcast %cst_15 : f32 to vector<1x1xf32>
    %31 = arith.mulf %29, %30 : vector<1x1xf32>
    %32 = vector.extract_strided_slice %23 {offsets = [1, 0], sizes = [1, 1], strides = [1, 1]} : vector<7x1xf32> to vector<1x1xf32>
    %33 = math.tanh %32 : vector<1x1xf32>
    %cst_16 = arith.constant 1.000000e-01 : f32
    %34 = vector.broadcast %cst_16 : f32 to vector<1x1xf32>
    %35 = arith.mulf %34, %33 : vector<1x1xf32>
    %cst_17 = arith.constant 5.000000e-01 : f32
    %36 = vector.broadcast %cst_17 : f32 to vector<1x1xf32>
    %37 = arith.addf %36, %35 : vector<1x1xf32>
    %cst_18 = arith.constant 1.000000e+01 : f32
    %38 = vector.broadcast %cst_18 : f32 to vector<1x1xf32>
    %39 = arith.mulf %37, %38 : vector<1x1xf32>
    %40 = vector.extract_strided_slice %23 {offsets = [2, 0], sizes = [1, 1], strides = [1, 1]} : vector<7x1xf32> to vector<1x1xf32>
    %41 = math.tanh %40 : vector<1x1xf32>
    %cst_19 = arith.constant 1.000000e-01 : f32
    %42 = vector.broadcast %cst_19 : f32 to vector<1x1xf32>
    %43 = arith.mulf %42, %41 : vector<1x1xf32>
    %cst_20 = arith.constant 6.250000e-02 : f32
    %44 = vector.broadcast %cst_20 : f32 to vector<1x1xf32>
    %45 = arith.addf %44, %43 : vector<1x1xf32>
    %cst_21 = arith.constant 1.500000e+01 : f32
    %46 = vector.broadcast %cst_21 : f32 to vector<1x1xf32>
    %47 = arith.mulf %45, %46 : vector<1x1xf32>
    %48 = vector.extract_strided_slice %23 {offsets = [3, 0], sizes = [1, 1], strides = [1, 1]} : vector<7x1xf32> to vector<1x1xf32>
    %cst_22 = arith.constant 1.000000e-01 : f32
    %49 = vector.broadcast %cst_22 : f32 to vector<1x1xf32>
    %50 = arith.mulf %49, %48 : vector<1x1xf32>
    %51 = math.exp %50 : vector<1x1xf32>
    %cst_23 = arith.constant 3.000000e-01 : f32
    %52 = vector.broadcast %cst_23 : f32 to vector<1x1xf32>
    %53 = arith.mulf %52, %51 : vector<1x1xf32>
    %cst_24 = arith.constant 8.000000e+00 : f32
    %54 = vector.broadcast %cst_24 : f32 to vector<1x1xf32>
    %55 = arith.mulf %53, %54 : vector<1x1xf32>
    %56 = vector.extract_strided_slice %23 {offsets = [4, 0], sizes = [1, 1], strides = [1, 1]} : vector<7x1xf32> to vector<1x1xf32>
    %cst_25 = arith.constant 1.000000e-01 : f32
    %57 = vector.broadcast %cst_25 : f32 to vector<1x1xf32>
    %58 = arith.mulf %57, %56 : vector<1x1xf32>
    %59 = math.exp %58 : vector<1x1xf32>
    %cst_26 = arith.constant 1.000000e-01 : f32
    %60 = vector.broadcast %cst_26 : f32 to vector<1x1xf32>
    %61 = arith.mulf %60, %59 : vector<1x1xf32>
    %cst_27 = arith.constant 1.600000e+01 : f32
    %62 = vector.broadcast %cst_27 : f32 to vector<1x1xf32>
    %63 = arith.mulf %61, %62 : vector<1x1xf32>
    %64 = vector.extract_strided_slice %23 {offsets = [4, 0], sizes = [1, 1], strides = [1, 1]} : vector<7x1xf32> to vector<1x1xf32>
    %cst_28 = arith.constant 1.000000e-01 : f32
    %65 = vector.broadcast %cst_28 : f32 to vector<1x1xf32>
    %66 = arith.mulf %65, %64 : vector<1x1xf32>
    %67 = math.exp %66 : vector<1x1xf32>
    %cst_29 = arith.constant 1.000000e-01 : f32
    %68 = vector.broadcast %cst_29 : f32 to vector<1x1xf32>
    %69 = arith.mulf %68, %67 : vector<1x1xf32>
    %cst_30 = arith.constant 1.100000e+01 : f32
    %70 = vector.broadcast %cst_30 : f32 to vector<1x1xf32>
    %71 = arith.mulf %69, %70 : vector<1x1xf32>
    %72 = vector.extract_strided_slice %23 {offsets = [5, 0], sizes = [1, 1], strides = [1, 1]} : vector<7x1xf32> to vector<1x1xf32>
    %cst_31 = arith.constant 1.000000e-01 : f32
    %73 = vector.broadcast %cst_31 : f32 to vector<1x1xf32>
    %74 = arith.mulf %73, %72 : vector<1x1xf32>
    %75 = math.exp %74 : vector<1x1xf32>
    %cst_32 = arith.constant 4.000000e-01 : f32
    %76 = vector.broadcast %cst_32 : f32 to vector<1x1xf32>
    %77 = arith.mulf %76, %75 : vector<1x1xf32>
    %cst_33 = arith.constant 8.000000e+00 : f32
    %78 = vector.broadcast %cst_33 : f32 to vector<1x1xf32>
    %79 = arith.mulf %77, %78 : vector<1x1xf32>
    %cst_34 = arith.constant 8.000000e+00 : f32
    %80 = vector.broadcast %cst_34 : f32 to vector<1x1xf32>
    %81 = arith.divf %79, %80 : vector<1x1xf32>
    %82 = vector.extract_strided_slice %23 {offsets = [6, 0], sizes = [1, 1], strides = [1, 1]} : vector<7x1xf32> to vector<1x1xf32>
    %cst_35 = arith.constant 1.000000e-01 : f32
    %83 = vector.broadcast %cst_35 : f32 to vector<1x1xf32>
    %84 = arith.mulf %83, %82 : vector<1x1xf32>
    %85 = math.exp %84 : vector<1x1xf32>
    %cst_36 = arith.constant 0.363636374 : f32
    %86 = vector.broadcast %cst_36 : f32 to vector<1x1xf32>
    %87 = arith.mulf %86, %85 : vector<1x1xf32>
    %cst_37 = arith.constant 1.600000e+01 : f32
    %88 = vector.broadcast %cst_37 : f32 to vector<1x1xf32>
    %89 = arith.mulf %87, %88 : vector<1x1xf32>
    %cst_38 = arith.constant 2.000000e+00 : f32
    %90 = vector.broadcast %cst_38 : f32 to vector<1x1xf32>
    %91 = arith.divf %89, %90 : vector<1x1xf32>
    %92 = vector.extract_strided_slice %23 {offsets = [6, 0], sizes = [1, 1], strides = [1, 1]} : vector<7x1xf32> to vector<1x1xf32>
    %cst_39 = arith.constant 1.000000e-01 : f32
    %93 = vector.broadcast %cst_39 : f32 to vector<1x1xf32>
    %94 = arith.mulf %93, %92 : vector<1x1xf32>
    %95 = math.exp %94 : vector<1x1xf32>
    %cst_40 = arith.constant 0.363636374 : f32
    %96 = vector.broadcast %cst_40 : f32 to vector<1x1xf32>
    %97 = arith.mulf %96, %95 : vector<1x1xf32>
    %cst_41 = arith.constant 1.100000e+01 : f32
    %98 = vector.broadcast %cst_41 : f32 to vector<1x1xf32>
    %99 = arith.mulf %97, %98 : vector<1x1xf32>
    %cst_42 = arith.constant 4.000000e+00 : f32
    %100 = vector.broadcast %cst_42 : f32 to vector<1x1xf32>
    %101 = arith.divf %99, %100 : vector<1x1xf32>
    %102 = tpu.iota {dimensions = array<i32: 0>} : vector<176x8xi32>
    %103 = arith.sitofp %102 : vector<176x8xi32> to vector<176x8xf32>
    %104 = tpu.iota {dimensions = array<i32: 1>} : vector<176x8xi32>
    %105 = arith.sitofp %104 : vector<176x8xi32> to vector<176x8xf32>
    %cst_43 = arith.constant 1.100000e+01 : f32
    %106 = vector.broadcast %cst_43 : f32 to vector<176x8xf32>
    %107 = arith.divf %103, %106 : vector<176x8xf32>
    %108 = math.floor %107 : vector<176x8xf32>
    %cst_44 = arith.constant 1.100000e+01 : f32
    %109 = vector.broadcast %cst_44 : f32 to vector<176x8xf32>
    %110 = arith.mulf %108, %109 : vector<176x8xf32>
    %111 = arith.subf %103, %110 : vector<176x8xf32>
    %cst_45 = arith.constant 4.000000e+00 : f32
    %112 = vector.broadcast %cst_45 : f32 to vector<176x8xf32>
    %113 = arith.divf %105, %112 : vector<176x8xf32>
    %114 = math.floor %113 : vector<176x8xf32>
    %cst_46 = arith.constant 4.000000e+00 : f32
    %115 = vector.broadcast %cst_46 : f32 to vector<176x8xf32>
    %116 = arith.mulf %114, %115 : vector<176x8xf32>
    %117 = arith.subf %105, %116 : vector<176x8xf32>
    %cst_47 = arith.constant 5.000000e-01 : f32
    %118 = vector.broadcast %cst_47 : f32 to vector<176x8xf32>
    %119 = arith.subf %114, %118 : vector<176x8xf32>
    %120 = vector.broadcast %91 : vector<1x1xf32> to vector<176x8xf32>
    %121 = arith.mulf %119, %120 : vector<176x8xf32>
    %122 = vector.broadcast %47 : vector<1x1xf32> to vector<176x8xf32>
    %123 = arith.addf %122, %121 : vector<176x8xf32>
    %124 = arith.subf %108, %123 : vector<176x8xf32>
    %125 = arith.mulf %124, %124 : vector<176x8xf32>
    %cst_48 = arith.constant 0.000000e+00 : f32
    %126 = vector.broadcast %cst_48 : f32 to vector<176x8xf32>
    %127 = arith.subf %126, %125 : vector<176x8xf32>
    %128 = arith.mulf %63, %63 : vector<1x1xf32>
    %cst_49 = arith.constant 2.000000e+00 : f32
    %129 = vector.broadcast %cst_49 : f32 to vector<1x1xf32>
    %130 = arith.mulf %129, %128 : vector<1x1xf32>
    %cst_50 = arith.constant 9.99999993E-9 : f32
    %131 = vector.broadcast %cst_50 : f32 to vector<1x1xf32>
    %132 = arith.addf %130, %131 : vector<1x1xf32>
    %133 = vector.broadcast %132 : vector<1x1xf32> to vector<176x8xf32>
    %134 = arith.divf %127, %133 : vector<176x8xf32>
    %135 = math.exp %134 : vector<176x8xf32>
    %cst_51 = arith.constant 1.500000e+00 : f32
    %136 = vector.broadcast %cst_51 : f32 to vector<176x8xf32>
    %137 = arith.subf %117, %136 : vector<176x8xf32>
    %138 = vector.broadcast %101 : vector<1x1xf32> to vector<176x8xf32>
    %139 = arith.mulf %137, %138 : vector<176x8xf32>
    %140 = vector.broadcast %39 : vector<1x1xf32> to vector<176x8xf32>
    %141 = arith.addf %140, %139 : vector<176x8xf32>
    %142 = arith.subf %111, %141 : vector<176x8xf32>
    %143 = arith.mulf %142, %142 : vector<176x8xf32>
    %cst_52 = arith.constant 0.000000e+00 : f32
    %144 = vector.broadcast %cst_52 : f32 to vector<176x8xf32>
    %145 = arith.subf %144, %143 : vector<176x8xf32>
    %146 = arith.mulf %71, %71 : vector<1x1xf32>
    %cst_53 = arith.constant 2.000000e+00 : f32
    %147 = vector.broadcast %cst_53 : f32 to vector<1x1xf32>
    %148 = arith.mulf %147, %146 : vector<1x1xf32>
    %cst_54 = arith.constant 9.99999993E-9 : f32
    %149 = vector.broadcast %cst_54 : f32 to vector<1x1xf32>
    %150 = arith.addf %148, %149 : vector<1x1xf32>
    %151 = vector.broadcast %150 : vector<1x1xf32> to vector<176x8xf32>
    %152 = arith.divf %145, %151 : vector<176x8xf32>
    %153 = math.exp %152 : vector<176x8xf32>
    %cst_55 = arith.constant dense<0.000000e+00> : vector<8xf32>
    %154 = vector.multi_reduction <add>, %135, %cst_55 [0] : vector<176x8xf32> to vector<8xf32>
    %155 = vector.shape_cast %154 : vector<8xf32> to vector<1x8xf32>
    %cst_56 = arith.constant 1.100000e+01 : f32
    %156 = vector.broadcast %cst_56 : f32 to vector<1x8xf32>
    %157 = arith.divf %155, %156 : vector<1x8xf32>
    %cst_57 = arith.constant 9.99999993E-9 : f32
    %158 = vector.broadcast %cst_57 : f32 to vector<1x8xf32>
    %159 = arith.addf %157, %158 : vector<1x8xf32>
    %cst_58 = arith.constant 1.000000e+00 : f32
    %160 = vector.broadcast %cst_58 : f32 to vector<1x8xf32>
    %161 = arith.divf %160, %159 : vector<1x8xf32>
    %cst_59 = arith.constant dense<0.000000e+00> : vector<8xf32>
    %162 = vector.multi_reduction <add>, %153, %cst_59 [0] : vector<176x8xf32> to vector<8xf32>
    %163 = vector.shape_cast %162 : vector<8xf32> to vector<1x8xf32>
    %cst_60 = arith.constant 1.600000e+01 : f32
    %164 = vector.broadcast %cst_60 : f32 to vector<1x8xf32>
    %165 = arith.divf %163, %164 : vector<1x8xf32>
    %cst_61 = arith.constant 9.99999993E-9 : f32
    %166 = vector.broadcast %cst_61 : f32 to vector<1x8xf32>
    %167 = arith.addf %165, %166 : vector<1x8xf32>
    %cst_62 = arith.constant 1.000000e+00 : f32
    %168 = vector.broadcast %cst_62 : f32 to vector<1x8xf32>
    %169 = arith.divf %168, %167 : vector<1x8xf32>
    %170 = arith.mulf %135, %153 : vector<176x8xf32>
    %171 = arith.mulf %161, %169 : vector<1x8xf32>
    %172 = vector.broadcast %171 : vector<1x8xf32> to vector<176x8xf32>
    %173 = arith.mulf %170, %172 : vector<176x8xf32>
    %174 = tpu.iota {dimensions = array<i32: 0>} : vector<32x32xi32>
    %175 = arith.sitofp %174 : vector<32x32xi32> to vector<32x32xf32>
    %176 = tpu.iota {dimensions = array<i32: 1>} : vector<32x32xi32>
    %177 = arith.sitofp %176 : vector<32x32xi32> to vector<32x32xf32>
    %cst_63 = arith.constant 8.000000e+00 : f32
    %178 = vector.broadcast %cst_63 : f32 to vector<32x32xf32>
    %179 = arith.divf %175, %178 : vector<32x32xf32>
    %180 = math.floor %179 : vector<32x32xf32>
    %cst_64 = arith.constant 8.000000e+00 : f32
    %181 = vector.broadcast %cst_64 : f32 to vector<32x32xf32>
    %182 = arith.divf %177, %181 : vector<32x32xf32>
    %183 = math.floor %182 : vector<32x32xf32>
    %cst_65 = arith.constant 8.000000e+00 : f32
    %184 = vector.broadcast %cst_65 : f32 to vector<32x32xf32>
    %185 = arith.mulf %180, %184 : vector<32x32xf32>
    %186 = arith.subf %175, %185 : vector<32x32xf32>
    %cst_66 = arith.constant 8.000000e+00 : f32
    %187 = vector.broadcast %cst_66 : f32 to vector<32x32xf32>
    %188 = arith.mulf %183, %187 : vector<32x32xf32>
    %189 = arith.subf %177, %188 : vector<32x32xf32>
    %cst_67 = arith.constant 3.500000e+00 : f32
    %190 = vector.broadcast %cst_67 : f32 to vector<32x32xf32>
    %191 = arith.subf %186, %190 : vector<32x32xf32>
    %192 = vector.broadcast %81 : vector<1x1xf32> to vector<32x32xf32>
    %193 = arith.mulf %191, %192 : vector<32x32xf32>
    %194 = vector.broadcast %31 : vector<1x1xf32> to vector<32x32xf32>
    %195 = arith.addf %194, %193 : vector<32x32xf32>
    %196 = arith.subf %189, %195 : vector<32x32xf32>
    %197 = arith.mulf %196, %196 : vector<32x32xf32>
    %cst_68 = arith.constant 0.000000e+00 : f32
    %198 = vector.broadcast %cst_68 : f32 to vector<32x32xf32>
    %199 = arith.subf %198, %197 : vector<32x32xf32>
    %200 = arith.mulf %55, %55 : vector<1x1xf32>
    %cst_69 = arith.constant 2.000000e+00 : f32
    %201 = vector.broadcast %cst_69 : f32 to vector<1x1xf32>
    %202 = arith.mulf %201, %200 : vector<1x1xf32>
    %cst_70 = arith.constant 9.99999993E-9 : f32
    %203 = vector.broadcast %cst_70 : f32 to vector<1x1xf32>
    %204 = arith.addf %202, %203 : vector<1x1xf32>
    %205 = vector.broadcast %204 : vector<1x1xf32> to vector<32x32xf32>
    %206 = arith.divf %199, %205 : vector<32x32xf32>
    %207 = math.exp %206 : vector<32x32xf32>
    %208 = arith.cmpf oeq, %180, %183 : vector<32x32xf32>
    %cst_71 = arith.constant 0.000000e+00 : f32
    %209 = vector.broadcast %cst_71 : f32 to vector<32x32xf32>
    %210 = arith.select %208, %207, %209 : vector<32x32xi1>, vector<32x32xf32>
    %cst_72 = arith.constant dense<0.000000e+00> : vector<32xf32>
    %211 = vector.multi_reduction <add>, %210, %cst_72 [1] : vector<32x32xf32> to vector<32xf32>
    %212 = vector.shape_cast %211 : vector<32xf32> to vector<32x1xf32>
    %cst_73 = arith.constant 9.99999993E-9 : f32
    %213 = vector.broadcast %cst_73 : f32 to vector<32x1xf32>
    %214 = arith.addf %212, %213 : vector<32x1xf32>
    %cst_74 = arith.constant 1.000000e+00 : f32
    %215 = vector.broadcast %cst_74 : f32 to vector<32x1xf32>
    %216 = arith.divf %215, %214 : vector<32x1xf32>
    %217 = vector.broadcast %216 : vector<32x1xf32> to vector<32x32xf32>
    %218 = arith.mulf %210, %217 : vector<32x32xf32>
    %c0_75 = arith.constant 0 : index
    %c0_76 = arith.constant 0 : index
    %c0_77 = arith.constant 0 : index
    %219 = vector.load %arg2[%c0_75, %c0_76, %c0_77] : memref<1x32x176xf32, #tpu.memory_space<vmem>>, vector<1x32x176xf32>
    %220 = vector.shape_cast %219 : vector<1x32x176xf32> to vector<32x176xf32>
    %cst_78 = arith.constant dense<0.000000e+00> : vector<32x8xf32>
    %221 = tpu.matmul %220, %173, %cst_78 {dimension_numbers = #tpu.dot_dimension_numbers<[1], [0], [0], [1], [0, 0, 1, 1], [], []>} : vector<32x176xf32>, vector<176x8xf32>, vector<32x8xf32> -> vector<32x8xf32>
    %cst_79 = arith.constant dense<0.000000e+00> : vector<32x8xf32>
    %222 = tpu.matmul %218, %221, %cst_79 {dimension_numbers = #tpu.dot_dimension_numbers<[1], [0], [0], [1], [0, 0, 1, 1], [], []>} : vector<32x32xf32>, vector<32x8xf32>, vector<32x8xf32> -> vector<32x8xf32>
    %cst_80 = arith.constant 0.000000e+00 : f32
    %223 = vector.broadcast %cst_80 : f32 to vector<4x90xf32>
    %c0_81 = arith.constant 0 : index
    %c0_82 = arith.constant 0 : index
    %224 = vector.load %arg8[%c0_81, %c0_82] : memref<4x90xf32, #tpu.memory_space<vmem>>, vector<4x90xf32>
    tpu.vector_store %arg8[%c0_81, %c0_82], %223 {strides = array<i32>} : memref<4x90xf32, #tpu.memory_space<vmem>>, vector<4x90xf32>,
    %225 = vector.extract_strided_slice %222 {offsets = [0, 0], sizes = [1, 8], strides = [1, 1]} : vector<32x8xf32> to vector<1x8xf32>
    %c0_83 = arith.constant 0 : index
    %c13 = arith.constant 13 : index
    %226 = vector.load %arg8[%c0_83, %c13] : memref<4x90xf32, #tpu.memory_space<vmem>>, vector<1x8xf32>
    tpu.vector_store %arg8[%c0_83, %c13], %225 {strides = array<i32>} : memref<4x90xf32, #tpu.memory_space<vmem>>, vector<1x8xf32>,
    %227 = vector.extract_strided_slice %222 {offsets = [1, 0], sizes = [1, 8], strides = [1, 1]} : vector<32x8xf32> to vector<1x8xf32>
    %c0_84 = arith.constant 0 : index
    %c21 = arith.constant 21 : index
    %228 = vector.load %arg8[%c0_84, %c21] : memref<4x90xf32, #tpu.memory_space<vmem>>, vector<1x8xf32>
    tpu.vector_store %arg8[%c0_84, %c21], %227 {strides = array<i32>} : memref<4x90xf32, #tpu.memory_space<vmem>>, vector<1x8xf32>,
    %229 = vector.extract_strided_slice %222 {offsets = [2, 0], sizes = [1, 8], strides = [1, 1]} : vector<32x8xf32> to vector<1x8xf32>
    %c0_85 = arith.constant 0 : index
    %c29 = arith.constant 29 : index
    %230 = vector.load %arg8[%c0_85, %c29] : memref<4x90xf32, #tpu.memory_space<vmem>>, vector<1x8xf32>
    tpu.vector_store %arg8[%c0_85, %c29], %229 {strides = array<i32>} : memref<4x90xf32, #tpu.memory_space<vmem>>, vector<1x8xf32>,
    %231 = vector.extract_strided_slice %222 {offsets = [3, 0], sizes = [1, 8], strides = [1, 1]} : vector<32x8xf32> to vector<1x8xf32>
    %c0_86 = arith.constant 0 : index
    %c37 = arith.constant 37 : index
    %232 = vector.load %arg8[%c0_86, %c37] : memref<4x90xf32, #tpu.memory_space<vmem>>, vector<1x8xf32>
    tpu.vector_store %arg8[%c0_86, %c37], %231 {strides = array<i32>} : memref<4x90xf32, #tpu.memory_space<vmem>>, vector<1x8xf32>,
    %233 = vector.extract_strided_slice %222 {offsets = [4, 0], sizes = [1, 8], strides = [1, 1]} : vector<32x8xf32> to vector<1x8xf32>
    %c0_87 = arith.constant 0 : index
    %c45 = arith.constant 45 : index
    %234 = vector.load %arg8[%c0_87, %c45] : memref<4x90xf32, #tpu.memory_space<vmem>>, vector<1x8xf32>
    tpu.vector_store %arg8[%c0_87, %c45], %233 {strides = array<i32>} : memref<4x90xf32, #tpu.memory_space<vmem>>, vector<1x8xf32>,
    %235 = vector.extract_strided_slice %222 {offsets = [5, 0], sizes = [1, 8], strides = [1, 1]} : vector<32x8xf32> to vector<1x8xf32>
    %c0_88 = arith.constant 0 : index
    %c53 = arith.constant 53 : index
    %236 = vector.load %arg8[%c0_88, %c53] : memref<4x90xf32, #tpu.memory_space<vmem>>, vector<1x8xf32>
    tpu.vector_store %arg8[%c0_88, %c53], %235 {strides = array<i32>} : memref<4x90xf32, #tpu.memory_space<vmem>>, vector<1x8xf32>,
    %237 = vector.extract_strided_slice %222 {offsets = [6, 0], sizes = [1, 8], strides = [1, 1]} : vector<32x8xf32> to vector<1x8xf32>
    %c0_89 = arith.constant 0 : index
    %c61 = arith.constant 61 : index
    %238 = vector.load %arg8[%c0_89, %c61] : memref<4x90xf32, #tpu.memory_space<vmem>>, vector<1x8xf32>
    tpu.vector_store %arg8[%c0_89, %c61], %237 {strides = array<i32>} : memref<4x90xf32, #tpu.memory_space<vmem>>, vector<1x8xf32>,
    %239 = vector.extract_strided_slice %222 {offsets = [7, 0], sizes = [1, 8], strides = [1, 1]} : vector<32x8xf32> to vector<1x8xf32>
    %c0_90 = arith.constant 0 : index
    %c69 = arith.constant 69 : index
    %240 = vector.load %arg8[%c0_90, %c69] : memref<4x90xf32, #tpu.memory_space<vmem>>, vector<1x8xf32>
    tpu.vector_store %arg8[%c0_90, %c69], %239 {strides = array<i32>} : memref<4x90xf32, #tpu.memory_space<vmem>>, vector<1x8xf32>,
    %241 = vector.extract_strided_slice %222 {offsets = [8, 0], sizes = [1, 8], strides = [1, 1]} : vector<32x8xf32> to vector<1x8xf32>
    %c1_91 = arith.constant 1 : index
    %c13_92 = arith.constant 13 : index
    %242 = vector.load %arg8[%c1_91, %c13_92] : memref<4x90xf32, #tpu.memory_space<vmem>>, vector<1x8xf32>
    tpu.vector_store %arg8[%c1_91, %c13_92], %241 {strides = array<i32>} : memref<4x90xf32, #tpu.memory_space<vmem>>, vector<1x8xf32>,
    %243 = vector.extract_strided_slice %222 {offsets = [9, 0], sizes = [1, 8], strides = [1, 1]} : vector<32x8xf32> to vector<1x8xf32>
    %c1_93 = arith.constant 1 : index
    %c21_94 = arith.constant 21 : index
    %244 = vector.load %arg8[%c1_93, %c21_94] : memref<4x90xf32, #tpu.memory_space<vmem>>, vector<1x8xf32>
    tpu.vector_store %arg8[%c1_93, %c21_94], %243 {strides = array<i32>} : memref<4x90xf32, #tpu.memory_space<vmem>>, vector<1x8xf32>,
    %245 = vector.extract_strided_slice %222 {offsets = [10, 0], sizes = [1, 8], strides = [1, 1]} : vector<32x8xf32> to vector<1x8xf32>
    %c1_95 = arith.constant 1 : index
    %c29_96 = arith.constant 29 : index
    %246 = vector.load %arg8[%c1_95, %c29_96] : memref<4x90xf32, #tpu.memory_space<vmem>>, vector<1x8xf32>
    tpu.vector_store %arg8[%c1_95, %c29_96], %245 {strides = array<i32>} : memref<4x90xf32, #tpu.memory_space<vmem>>, vector<1x8xf32>,
    %247 = vector.extract_strided_slice %222 {offsets = [11, 0], sizes = [1, 8], strides = [1, 1]} : vector<32x8xf32> to vector<1x8xf32>
    %c1_97 = arith.constant 1 : index
    %c37_98 = arith.constant 37 : index
    %248 = vector.load %arg8[%c1_97, %c37_98] : memref<4x90xf32, #tpu.memory_space<vmem>>, vector<1x8xf32>
    tpu.vector_store %arg8[%c1_97, %c37_98], %247 {strides = array<i32>} : memref<4x90xf32, #tpu.memory_space<vmem>>, vector<1x8xf32>,
    %249 = vector.extract_strided_slice %222 {offsets = [12, 0], sizes = [1, 8], strides = [1, 1]} : vector<32x8xf32> to vector<1x8xf32>
    %c1_99 = arith.constant 1 : index
    %c45_100 = arith.constant 45 : index
    %250 = vector.load %arg8[%c1_99, %c45_100] : memref<4x90xf32, #tpu.memory_space<vmem>>, vector<1x8xf32>
    tpu.vector_store %arg8[%c1_99, %c45_100], %249 {strides = array<i32>} : memref<4x90xf32, #tpu.memory_space<vmem>>, vector<1x8xf32>,
    %251 = vector.extract_strided_slice %222 {offsets = [13, 0], sizes = [1, 8], strides = [1, 1]} : vector<32x8xf32> to vector<1x8xf32>
    %c1_101 = arith.constant 1 : index
    %c53_102 = arith.constant 53 : index
    %252 = vector.load %arg8[%c1_101, %c53_102] : memref<4x90xf32, #tpu.memory_space<vmem>>, vector<1x8xf32>
    tpu.vector_store %arg8[%c1_101, %c53_102], %251 {strides = array<i32>} : memref<4x90xf32, #tpu.memory_space<vmem>>, vector<1x8xf32>,
    %253 = vector.extract_strided_slice %222 {offsets = [14, 0], sizes = [1, 8], strides = [1, 1]} : vector<32x8xf32> to vector<1x8xf32>
    %c1_103 = arith.constant 1 : index
    %c61_104 = arith.constant 61 : index
    %254 = vector.load %arg8[%c1_103, %c61_104] : memref<4x90xf32, #tpu.memory_space<vmem>>, vector<1x8xf32>
    tpu.vector_store %arg8[%c1_103, %c61_104], %253 {strides = array<i32>} : memref<4x90xf32, #tpu.memory_space<vmem>>, vector<1x8xf32>,
    %255 = vector.extract_strided_slice %222 {offsets = [15, 0], sizes = [1, 8], strides = [1, 1]} : vector<32x8xf32> to vector<1x8xf32>
    %c1_105 = arith.constant 1 : index
    %c69_106 = arith.constant 69 : index
    %256 = vector.load %arg8[%c1_105, %c69_106] : memref<4x90xf32, #tpu.memory_space<vmem>>, vector<1x8xf32>
    tpu.vector_store %arg8[%c1_105, %c69_106], %255 {strides = array<i32>} : memref<4x90xf32, #tpu.memory_space<vmem>>, vector<1x8xf32>,
    %257 = vector.extract_strided_slice %222 {offsets = [16, 0], sizes = [1, 8], strides = [1, 1]} : vector<32x8xf32> to vector<1x8xf32>
    %c2 = arith.constant 2 : index
    %c13_107 = arith.constant 13 : index
    %258 = vector.load %arg8[%c2, %c13_107] : memref<4x90xf32, #tpu.memory_space<vmem>>, vector<1x8xf32>
    tpu.vector_store %arg8[%c2, %c13_107], %257 {strides = array<i32>} : memref<4x90xf32, #tpu.memory_space<vmem>>, vector<1x8xf32>,
    %259 = vector.extract_strided_slice %222 {offsets = [17, 0], sizes = [1, 8], strides = [1, 1]} : vector<32x8xf32> to vector<1x8xf32>
    %c2_108 = arith.constant 2 : index
    %c21_109 = arith.constant 21 : index
    %260 = vector.load %arg8[%c2_108, %c21_109] : memref<4x90xf32, #tpu.memory_space<vmem>>, vector<1x8xf32>
    tpu.vector_store %arg8[%c2_108, %c21_109], %259 {strides = array<i32>} : memref<4x90xf32, #tpu.memory_space<vmem>>, vector<1x8xf32>,
    %261 = vector.extract_strided_slice %222 {offsets = [18, 0], sizes = [1, 8], strides = [1, 1]} : vector<32x8xf32> to vector<1x8xf32>
    %c2_110 = arith.constant 2 : index
    %c29_111 = arith.constant 29 : index
    %262 = vector.load %arg8[%c2_110, %c29_111] : memref<4x90xf32, #tpu.memory_space<vmem>>, vector<1x8xf32>
    tpu.vector_store %arg8[%c2_110, %c29_111], %261 {strides = array<i32>} : memref<4x90xf32, #tpu.memory_space<vmem>>, vector<1x8xf32>,
    %263 = vector.extract_strided_slice %222 {offsets = [19, 0], sizes = [1, 8], strides = [1, 1]} : vector<32x8xf32> to vector<1x8xf32>
    %c2_112 = arith.constant 2 : index
    %c37_113 = arith.constant 37 : index
    %264 = vector.load %arg8[%c2_112, %c37_113] : memref<4x90xf32, #tpu.memory_space<vmem>>, vector<1x8xf32>
    tpu.vector_store %arg8[%c2_112, %c37_113], %263 {strides = array<i32>} : memref<4x90xf32, #tpu.memory_space<vmem>>, vector<1x8xf32>,
    %265 = vector.extract_strided_slice %222 {offsets = [20, 0], sizes = [1, 8], strides = [1, 1]} : vector<32x8xf32> to vector<1x8xf32>
    %c2_114 = arith.constant 2 : index
    %c45_115 = arith.constant 45 : index
    %266 = vector.load %arg8[%c2_114, %c45_115] : memref<4x90xf32, #tpu.memory_space<vmem>>, vector<1x8xf32>
    tpu.vector_store %arg8[%c2_114, %c45_115], %265 {strides = array<i32>} : memref<4x90xf32, #tpu.memory_space<vmem>>, vector<1x8xf32>,
    %267 = vector.extract_strided_slice %222 {offsets = [21, 0], sizes = [1, 8], strides = [1, 1]} : vector<32x8xf32> to vector<1x8xf32>
    %c2_116 = arith.constant 2 : index
    %c53_117 = arith.constant 53 : index
    %268 = vector.load %arg8[%c2_116, %c53_117] : memref<4x90xf32, #tpu.memory_space<vmem>>, vector<1x8xf32>
    tpu.vector_store %arg8[%c2_116, %c53_117], %267 {strides = array<i32>} : memref<4x90xf32, #tpu.memory_space<vmem>>, vector<1x8xf32>,
    %269 = vector.extract_strided_slice %222 {offsets = [22, 0], sizes = [1, 8], strides = [1, 1]} : vector<32x8xf32> to vector<1x8xf32>
    %c2_118 = arith.constant 2 : index
    %c61_119 = arith.constant 61 : index
    %270 = vector.load %arg8[%c2_118, %c61_119] : memref<4x90xf32, #tpu.memory_space<vmem>>, vector<1x8xf32>
    tpu.vector_store %arg8[%c2_118, %c61_119], %269 {strides = array<i32>} : memref<4x90xf32, #tpu.memory_space<vmem>>, vector<1x8xf32>,
    %271 = vector.extract_strided_slice %222 {offsets = [23, 0], sizes = [1, 8], strides = [1, 1]} : vector<32x8xf32> to vector<1x8xf32>
    %c2_120 = arith.constant 2 : index
    %c69_121 = arith.constant 69 : index
    %272 = vector.load %arg8[%c2_120, %c69_121] : memref<4x90xf32, #tpu.memory_space<vmem>>, vector<1x8xf32>
    tpu.vector_store %arg8[%c2_120, %c69_121], %271 {strides = array<i32>} : memref<4x90xf32, #tpu.memory_space<vmem>>, vector<1x8xf32>,
    %273 = vector.extract_strided_slice %222 {offsets = [24, 0], sizes = [1, 8], strides = [1, 1]} : vector<32x8xf32> to vector<1x8xf32>
    %c3 = arith.constant 3 : index
    %c13_122 = arith.constant 13 : index
    %274 = vector.load %arg8[%c3, %c13_122] : memref<4x90xf32, #tpu.memory_space<vmem>>, vector<1x8xf32>
    tpu.vector_store %arg8[%c3, %c13_122], %273 {strides = array<i32>} : memref<4x90xf32, #tpu.memory_space<vmem>>, vector<1x8xf32>,
    %275 = vector.extract_strided_slice %222 {offsets = [25, 0], sizes = [1, 8], strides = [1, 1]} : vector<32x8xf32> to vector<1x8xf32>
    %c3_123 = arith.constant 3 : index
    %c21_124 = arith.constant 21 : index
    %276 = vector.load %arg8[%c3_123, %c21_124] : memref<4x90xf32, #tpu.memory_space<vmem>>, vector<1x8xf32>
    tpu.vector_store %arg8[%c3_123, %c21_124], %275 {strides = array<i32>} : memref<4x90xf32, #tpu.memory_space<vmem>>, vector<1x8xf32>,
    %277 = vector.extract_strided_slice %222 {offsets = [26, 0], sizes = [1, 8], strides = [1, 1]} : vector<32x8xf32> to vector<1x8xf32>
    %c3_125 = arith.constant 3 : index
    %c29_126 = arith.constant 29 : index
    %278 = vector.load %arg8[%c3_125, %c29_126] : memref<4x90xf32, #tpu.memory_space<vmem>>, vector<1x8xf32>
    tpu.vector_store %arg8[%c3_125, %c29_126], %277 {strides = array<i32>} : memref<4x90xf32, #tpu.memory_space<vmem>>, vector<1x8xf32>,
    %279 = vector.extract_strided_slice %222 {offsets = [27, 0], sizes = [1, 8], strides = [1, 1]} : vector<32x8xf32> to vector<1x8xf32>
    %c3_127 = arith.constant 3 : index
    %c37_128 = arith.constant 37 : index
    %280 = vector.load %arg8[%c3_127, %c37_128] : memref<4x90xf32, #tpu.memory_space<vmem>>, vector<1x8xf32>
    tpu.vector_store %arg8[%c3_127, %c37_128], %279 {strides = array<i32>} : memref<4x90xf32, #tpu.memory_space<vmem>>, vector<1x8xf32>,
    %281 = vector.extract_strided_slice %222 {offsets = [28, 0], sizes = [1, 8], strides = [1, 1]} : vector<32x8xf32> to vector<1x8xf32>
    %c3_129 = arith.constant 3 : index
    %c45_130 = arith.constant 45 : index
    %282 = vector.load %arg8[%c3_129, %c45_130] : memref<4x90xf32, #tpu.memory_space<vmem>>, vector<1x8xf32>
    tpu.vector_store %arg8[%c3_129, %c45_130], %281 {strides = array<i32>} : memref<4x90xf32, #tpu.memory_space<vmem>>, vector<1x8xf32>,
    %283 = vector.extract_strided_slice %222 {offsets = [29, 0], sizes = [1, 8], strides = [1, 1]} : vector<32x8xf32> to vector<1x8xf32>
    %c3_131 = arith.constant 3 : index
    %c53_132 = arith.constant 53 : index
    %284 = vector.load %arg8[%c3_131, %c53_132] : memref<4x90xf32, #tpu.memory_space<vmem>>, vector<1x8xf32>
    tpu.vector_store %arg8[%c3_131, %c53_132], %283 {strides = array<i32>} : memref<4x90xf32, #tpu.memory_space<vmem>>, vector<1x8xf32>,
    %285 = vector.extract_strided_slice %222 {offsets = [30, 0], sizes = [1, 8], strides = [1, 1]} : vector<32x8xf32> to vector<1x8xf32>
    %c3_133 = arith.constant 3 : index
    %c61_134 = arith.constant 61 : index
    %286 = vector.load %arg8[%c3_133, %c61_134] : memref<4x90xf32, #tpu.memory_space<vmem>>, vector<1x8xf32>
    tpu.vector_store %arg8[%c3_133, %c61_134], %285 {strides = array<i32>} : memref<4x90xf32, #tpu.memory_space<vmem>>, vector<1x8xf32>,
    %287 = vector.extract_strided_slice %222 {offsets = [31, 0], sizes = [1, 8], strides = [1, 1]} : vector<32x8xf32> to vector<1x8xf32>
    %c3_135 = arith.constant 3 : index
    %c69_136 = arith.constant 69 : index
    %288 = vector.load %arg8[%c3_135, %c69_136] : memref<4x90xf32, #tpu.memory_space<vmem>>, vector<1x8xf32>
    tpu.vector_store %arg8[%c3_135, %c69_136], %287 {strides = array<i32>} : memref<4x90xf32, #tpu.memory_space<vmem>>, vector<1x8xf32>,
    %289 = tpu.iota {dimensions = array<i32: 1>} : vector<1x64xi32>
    %290 = arith.sitofp %289 : vector<1x64xi32> to vector<1x64xf32>
    %cst_137 = arith.constant 8.000000e+00 : f32
    %291 = vector.broadcast %cst_137 : f32 to vector<1x64xf32>
    %292 = arith.divf %290, %291 : vector<1x64xf32>
    %293 = math.floor %292 : vector<1x64xf32>
    %cst_138 = arith.constant 8.000000e+00 : f32
    %294 = vector.broadcast %cst_138 : f32 to vector<1x64xf32>
    %295 = arith.mulf %293, %294 : vector<1x64xf32>
    %296 = arith.subf %290, %295 : vector<1x64xf32>
    %cst_139 = arith.constant 4.000000e+00 : f32
    %297 = vector.broadcast %cst_139 : f32 to vector<1x64xf32>
    %298 = arith.divf %296, %297 : vector<1x64xf32>
    %299 = math.floor %298 : vector<1x64xf32>
    %cst_140 = arith.constant 4.000000e+00 : f32
    %300 = vector.broadcast %cst_140 : f32 to vector<1x64xf32>
    %301 = arith.mulf %299, %300 : vector<1x64xf32>
    %302 = arith.subf %296, %301 : vector<1x64xf32>
    %cst_141 = arith.constant 1.000000e+00 : f32
    %303 = vector.broadcast %cst_141 : f32 to vector<1x64xf32>
    %304 = arith.cmpf oge, %299, %303 : vector<1x64xf32>
    %cst_142 = arith.constant 0.000000e+00 : f32
    %305 = vector.broadcast %cst_142 : f32 to vector<1x64xf32>
    %306 = arith.cmpf ole, %299, %305 : vector<1x64xf32>
    %cst_143 = arith.constant 1.000000e+00 : f32
    %307 = vector.broadcast %cst_143 : f32 to vector<1x64xf32>
    %308 = arith.cmpf oge, %302, %307 : vector<1x64xf32>
    %cst_144 = arith.constant 2.000000e+00 : f32
    %309 = vector.broadcast %cst_144 : f32 to vector<1x64xf32>
    %310 = arith.cmpf ole, %302, %309 : vector<1x64xf32>
    %311 = arith.andi %304, %308 : vector<1x64xi1>
    %312 = arith.andi %304, %310 : vector<1x64xi1>
    %313 = arith.andi %306, %308 : vector<1x64xi1>
    %314 = arith.andi %306, %310 : vector<1x64xi1>
    %cst_145 = arith.constant 0.000000e+00 : f32
    %315 = vector.broadcast %cst_145 : f32 to vector<8x64xf32>
    %c0_146 = arith.constant 0 : index
    %c0_147 = arith.constant 0 : index
    %316 = vector.load %arg8[%c0_146, %c0_147] : memref<4x90xf32, #tpu.memory_space<vmem>>, vector<4x64xf32>
    %cst_148 = arith.constant 0.000000e+00 : f32
    %317 = vector.shape_cast %311 : vector<1x64xi1> to vector<1x64xi1>
    %318 = vector.broadcast %317 : vector<1x64xi1> to vector<4x64xi1>
    %319 = vector.broadcast %cst_148 : f32 to vector<4x64xf32>
    %320 = arith.select %318, %316, %319 : vector<4x64xi1>, vector<4x64xf32>
    %c0_149 = arith.constant 0 : index
    %c0_150 = arith.constant 0 : index
    %c0_151 = arith.constant 0 : index
    %321 = vector.load %arg6[%c0_149, %c0_150, %c0_151] : memref<27x8x4xf32, #tpu.memory_space<vmem>>, vector<1x8x4xf32>
    %322 = vector.shape_cast %321 : vector<1x8x4xf32> to vector<8x4xf32>
    %cst_152 = arith.constant dense<0.000000e+00> : vector<8x64xf32>
    %323 = tpu.matmul %322, %320, %cst_152 {dimension_numbers = #tpu.dot_dimension_numbers<[1], [0], [0], [1], [0, 0, 1, 1], [], []>} : vector<8x4xf32>, vector<4x64xf32>, vector<8x64xf32> -> vector<8x64xf32>
    %324 = arith.addf %315, %323 : vector<8x64xf32>
    %c0_153 = arith.constant 0 : index
    %c1_154 = arith.constant 1 : index
    %325 = vector.load %arg8[%c0_153, %c1_154] : memref<4x90xf32, #tpu.memory_space<vmem>>, vector<4x64xf32>
    %cst_155 = arith.constant 0.000000e+00 : f32
    %326 = vector.shape_cast %304 : vector<1x64xi1> to vector<1x64xi1>
    %327 = vector.broadcast %326 : vector<1x64xi1> to vector<4x64xi1>
    %328 = vector.broadcast %cst_155 : f32 to vector<4x64xf32>
    %329 = arith.select %327, %325, %328 : vector<4x64xi1>, vector<4x64xf32>
    %c1_156 = arith.constant 1 : index
    %c0_157 = arith.constant 0 : index
    %c0_158 = arith.constant 0 : index
    %330 = vector.load %arg6[%c1_156, %c0_157, %c0_158] : memref<27x8x4xf32, #tpu.memory_space<vmem>>, vector<1x8x4xf32>
    %331 = vector.shape_cast %330 : vector<1x8x4xf32> to vector<8x4xf32>
    %cst_159 = arith.constant dense<0.000000e+00> : vector<8x64xf32>
    %332 = tpu.matmul %331, %329, %cst_159 {dimension_numbers = #tpu.dot_dimension_numbers<[1], [0], [0], [1], [0, 0, 1, 1], [], []>} : vector<8x4xf32>, vector<4x64xf32>, vector<8x64xf32> -> vector<8x64xf32>
    %333 = arith.addf %324, %332 : vector<8x64xf32>
    %c0_160 = arith.constant 0 : index
    %c2_161 = arith.constant 2 : index
    %334 = vector.load %arg8[%c0_160, %c2_161] : memref<4x90xf32, #tpu.memory_space<vmem>>, vector<4x64xf32>
    %cst_162 = arith.constant 0.000000e+00 : f32
    %335 = vector.shape_cast %312 : vector<1x64xi1> to vector<1x64xi1>
    %336 = vector.broadcast %335 : vector<1x64xi1> to vector<4x64xi1>
    %337 = vector.broadcast %cst_162 : f32 to vector<4x64xf32>
    %338 = arith.select %336, %334, %337 : vector<4x64xi1>, vector<4x64xf32>
    %c2_163 = arith.constant 2 : index
    %c0_164 = arith.constant 0 : index
    %c0_165 = arith.constant 0 : index
    %339 = vector.load %arg6[%c2_163, %c0_164, %c0_165] : memref<27x8x4xf32, #tpu.memory_space<vmem>>, vector<1x8x4xf32>
    %340 = vector.shape_cast %339 : vector<1x8x4xf32> to vector<8x4xf32>
    %cst_166 = arith.constant dense<0.000000e+00> : vector<8x64xf32>
    %341 = tpu.matmul %340, %338, %cst_166 {dimension_numbers = #tpu.dot_dimension_numbers<[1], [0], [0], [1], [0, 0, 1, 1], [], []>} : vector<8x4xf32>, vector<4x64xf32>, vector<8x64xf32> -> vector<8x64xf32>
    %342 = arith.addf %333, %341 : vector<8x64xf32>
    %c0_167 = arith.constant 0 : index
    %c4 = arith.constant 4 : index
    %343 = vector.load %arg8[%c0_167, %c4] : memref<4x90xf32, #tpu.memory_space<vmem>>, vector<4x64xf32>
    %cst_168 = arith.constant 0.000000e+00 : f32
    %344 = vector.shape_cast %308 : vector<1x64xi1> to vector<1x64xi1>
    %345 = vector.broadcast %344 : vector<1x64xi1> to vector<4x64xi1>
    %346 = vector.broadcast %cst_168 : f32 to vector<4x64xf32>
    %347 = arith.select %345, %343, %346 : vector<4x64xi1>, vector<4x64xf32>
    %c3_169 = arith.constant 3 : index
    %c0_170 = arith.constant 0 : index
    %c0_171 = arith.constant 0 : index
    %348 = vector.load %arg6[%c3_169, %c0_170, %c0_171] : memref<27x8x4xf32, #tpu.memory_space<vmem>>, vector<1x8x4xf32>
    %349 = vector.shape_cast %348 : vector<1x8x4xf32> to vector<8x4xf32>
    %cst_172 = arith.constant dense<0.000000e+00> : vector<8x64xf32>
    %350 = tpu.matmul %349, %347, %cst_172 {dimension_numbers = #tpu.dot_dimension_numbers<[1], [0], [0], [1], [0, 0, 1, 1], [], []>} : vector<8x4xf32>, vector<4x64xf32>, vector<8x64xf32> -> vector<8x64xf32>
    %351 = arith.addf %342, %350 : vector<8x64xf32>
    %c0_173 = arith.constant 0 : index
    %c5 = arith.constant 5 : index
    %352 = vector.load %arg8[%c0_173, %c5] : memref<4x90xf32, #tpu.memory_space<vmem>>, vector<4x64xf32>
    %c4_174 = arith.constant 4 : index
    %c0_175 = arith.constant 0 : index
    %c0_176 = arith.constant 0 : index
    %353 = vector.load %arg6[%c4_174, %c0_175, %c0_176] : memref<27x8x4xf32, #tpu.memory_space<vmem>>, vector<1x8x4xf32>
    %354 = vector.shape_cast %353 : vector<1x8x4xf32> to vector<8x4xf32>
    %cst_177 = arith.constant dense<0.000000e+00> : vector<8x64xf32>
    %355 = tpu.matmul %354, %352, %cst_177 {dimension_numbers = #tpu.dot_dimension_numbers<[1], [0], [0], [1], [0, 0, 1, 1], [], []>} : vector<8x4xf32>, vector<4x64xf32>, vector<8x64xf32> -> vector<8x64xf32>
    %356 = arith.addf %351, %355 : vector<8x64xf32>
    %c0_178 = arith.constant 0 : index
    %c6 = arith.constant 6 : index
    %357 = vector.load %arg8[%c0_178, %c6] : memref<4x90xf32, #tpu.memory_space<vmem>>, vector<4x64xf32>
    %cst_179 = arith.constant 0.000000e+00 : f32
    %358 = vector.shape_cast %310 : vector<1x64xi1> to vector<1x64xi1>
    %359 = vector.broadcast %358 : vector<1x64xi1> to vector<4x64xi1>
    %360 = vector.broadcast %cst_179 : f32 to vector<4x64xf32>
    %361 = arith.select %359, %357, %360 : vector<4x64xi1>, vector<4x64xf32>
    %c5_180 = arith.constant 5 : index
    %c0_181 = arith.constant 0 : index
    %c0_182 = arith.constant 0 : index
    %362 = vector.load %arg6[%c5_180, %c0_181, %c0_182] : memref<27x8x4xf32, #tpu.memory_space<vmem>>, vector<1x8x4xf32>
    %363 = vector.shape_cast %362 : vector<1x8x4xf32> to vector<8x4xf32>
    %cst_183 = arith.constant dense<0.000000e+00> : vector<8x64xf32>
    %364 = tpu.matmul %363, %361, %cst_183 {dimension_numbers = #tpu.dot_dimension_numbers<[1], [0], [0], [1], [0, 0, 1, 1], [], []>} : vector<8x4xf32>, vector<4x64xf32>, vector<8x64xf32> -> vector<8x64xf32>
    %365 = arith.addf %356, %364 : vector<8x64xf32>
    %c0_184 = arith.constant 0 : index
    %c8 = arith.constant 8 : index
    %366 = vector.load %arg8[%c0_184, %c8] : memref<4x90xf32, #tpu.memory_space<vmem>>, vector<4x64xf32>
    %cst_185 = arith.constant 0.000000e+00 : f32
    %367 = vector.shape_cast %313 : vector<1x64xi1> to vector<1x64xi1>
    %368 = vector.broadcast %367 : vector<1x64xi1> to vector<4x64xi1>
    %369 = vector.broadcast %cst_185 : f32 to vector<4x64xf32>
    %370 = arith.select %368, %366, %369 : vector<4x64xi1>, vector<4x64xf32>
    %c6_186 = arith.constant 6 : index
    %c0_187 = arith.constant 0 : index
    %c0_188 = arith.constant 0 : index
    %371 = vector.load %arg6[%c6_186, %c0_187, %c0_188] : memref<27x8x4xf32, #tpu.memory_space<vmem>>, vector<1x8x4xf32>
    %372 = vector.shape_cast %371 : vector<1x8x4xf32> to vector<8x4xf32>
    %cst_189 = arith.constant dense<0.000000e+00> : vector<8x64xf32>
    %373 = tpu.matmul %372, %370, %cst_189 {dimension_numbers = #tpu.dot_dimension_numbers<[1], [0], [0], [1], [0, 0, 1, 1], [], []>} : vector<8x4xf32>, vector<4x64xf32>, vector<8x64xf32> -> vector<8x64xf32>
    %374 = arith.addf %365, %373 : vector<8x64xf32>
    %c0_190 = arith.constant 0 : index
    %c9 = arith.constant 9 : index
    %375 = vector.load %arg8[%c0_190, %c9] : memref<4x90xf32, #tpu.memory_space<vmem>>, vector<4x64xf32>
    %cst_191 = arith.constant 0.000000e+00 : f32
    %376 = vector.shape_cast %306 : vector<1x64xi1> to vector<1x64xi1>
    %377 = vector.broadcast %376 : vector<1x64xi1> to vector<4x64xi1>
    %378 = vector.broadcast %cst_191 : f32 to vector<4x64xf32>
    %379 = arith.select %377, %375, %378 : vector<4x64xi1>, vector<4x64xf32>
    %c7 = arith.constant 7 : index
    %c0_192 = arith.constant 0 : index
    %c0_193 = arith.constant 0 : index
    %380 = vector.load %arg6[%c7, %c0_192, %c0_193] : memref<27x8x4xf32, #tpu.memory_space<vmem>>, vector<1x8x4xf32>
    %381 = vector.shape_cast %380 : vector<1x8x4xf32> to vector<8x4xf32>
    %cst_194 = arith.constant dense<0.000000e+00> : vector<8x64xf32>
    %382 = tpu.matmul %381, %379, %cst_194 {dimension_numbers = #tpu.dot_dimension_numbers<[1], [0], [0], [1], [0, 0, 1, 1], [], []>} : vector<8x4xf32>, vector<4x64xf32>, vector<8x64xf32> -> vector<8x64xf32>
    %383 = arith.addf %374, %382 : vector<8x64xf32>
    %c0_195 = arith.constant 0 : index
    %c10 = arith.constant 10 : index
    %384 = vector.load %arg8[%c0_195, %c10] : memref<4x90xf32, #tpu.memory_space<vmem>>, vector<4x64xf32>
    %cst_196 = arith.constant 0.000000e+00 : f32
    %385 = vector.shape_cast %314 : vector<1x64xi1> to vector<1x64xi1>
    %386 = vector.broadcast %385 : vector<1x64xi1> to vector<4x64xi1>
    %387 = vector.broadcast %cst_196 : f32 to vector<4x64xf32>
    %388 = arith.select %386, %384, %387 : vector<4x64xi1>, vector<4x64xf32>
    %c8_197 = arith.constant 8 : index
    %c0_198 = arith.constant 0 : index
    %c0_199 = arith.constant 0 : index
    %389 = vector.load %arg6[%c8_197, %c0_198, %c0_199] : memref<27x8x4xf32, #tpu.memory_space<vmem>>, vector<1x8x4xf32>
    %390 = vector.shape_cast %389 : vector<1x8x4xf32> to vector<8x4xf32>
    %cst_200 = arith.constant dense<0.000000e+00> : vector<8x64xf32>
    %391 = tpu.matmul %390, %388, %cst_200 {dimension_numbers = #tpu.dot_dimension_numbers<[1], [0], [0], [1], [0, 0, 1, 1], [], []>} : vector<8x4xf32>, vector<4x64xf32>, vector<8x64xf32> -> vector<8x64xf32>
    %392 = arith.addf %383, %391 : vector<8x64xf32>
    %c0_201 = arith.constant 0 : index
    %c8_202 = arith.constant 8 : index
    %393 = vector.load %arg8[%c0_201, %c8_202] : memref<4x90xf32, #tpu.memory_space<vmem>>, vector<4x64xf32>
    %cst_203 = arith.constant 0.000000e+00 : f32
    %394 = vector.shape_cast %311 : vector<1x64xi1> to vector<1x64xi1>
    %395 = vector.broadcast %394 : vector<1x64xi1> to vector<4x64xi1>
    %396 = vector.broadcast %cst_203 : f32 to vector<4x64xf32>
    %397 = arith.select %395, %393, %396 : vector<4x64xi1>, vector<4x64xf32>
    %c9_204 = arith.constant 9 : index
    %c0_205 = arith.constant 0 : index
    %c0_206 = arith.constant 0 : index
    %398 = vector.load %arg6[%c9_204, %c0_205, %c0_206] : memref<27x8x4xf32, #tpu.memory_space<vmem>>, vector<1x8x4xf32>
    %399 = vector.shape_cast %398 : vector<1x8x4xf32> to vector<8x4xf32>
    %cst_207 = arith.constant dense<0.000000e+00> : vector<8x64xf32>
    %400 = tpu.matmul %399, %397, %cst_207 {dimension_numbers = #tpu.dot_dimension_numbers<[1], [0], [0], [1], [0, 0, 1, 1], [], []>} : vector<8x4xf32>, vector<4x64xf32>, vector<8x64xf32> -> vector<8x64xf32>
    %401 = arith.addf %392, %400 : vector<8x64xf32>
    %c0_208 = arith.constant 0 : index
    %c9_209 = arith.constant 9 : index
    %402 = vector.load %arg8[%c0_208, %c9_209] : memref<4x90xf32, #tpu.memory_space<vmem>>, vector<4x64xf32>
    %cst_210 = arith.constant 0.000000e+00 : f32
    %403 = vector.shape_cast %304 : vector<1x64xi1> to vector<1x64xi1>
    %404 = vector.broadcast %403 : vector<1x64xi1> to vector<4x64xi1>
    %405 = vector.broadcast %cst_210 : f32 to vector<4x64xf32>
    %406 = arith.select %404, %402, %405 : vector<4x64xi1>, vector<4x64xf32>
    %c10_211 = arith.constant 10 : index
    %c0_212 = arith.constant 0 : index
    %c0_213 = arith.constant 0 : index
    %407 = vector.load %arg6[%c10_211, %c0_212, %c0_213] : memref<27x8x4xf32, #tpu.memory_space<vmem>>, vector<1x8x4xf32>
    %408 = vector.shape_cast %407 : vector<1x8x4xf32> to vector<8x4xf32>
    %cst_214 = arith.constant dense<0.000000e+00> : vector<8x64xf32>
    %409 = tpu.matmul %408, %406, %cst_214 {dimension_numbers = #tpu.dot_dimension_numbers<[1], [0], [0], [1], [0, 0, 1, 1], [], []>} : vector<8x4xf32>, vector<4x64xf32>, vector<8x64xf32> -> vector<8x64xf32>
    %410 = arith.addf %401, %409 : vector<8x64xf32>
    %c0_215 = arith.constant 0 : index
    %c10_216 = arith.constant 10 : index
    %411 = vector.load %arg8[%c0_215, %c10_216] : memref<4x90xf32, #tpu.memory_space<vmem>>, vector<4x64xf32>
    %cst_217 = arith.constant 0.000000e+00 : f32
    %412 = vector.shape_cast %312 : vector<1x64xi1> to vector<1x64xi1>
    %413 = vector.broadcast %412 : vector<1x64xi1> to vector<4x64xi1>
    %414 = vector.broadcast %cst_217 : f32 to vector<4x64xf32>
    %415 = arith.select %413, %411, %414 : vector<4x64xi1>, vector<4x64xf32>
    %c11 = arith.constant 11 : index
    %c0_218 = arith.constant 0 : index
    %c0_219 = arith.constant 0 : index
    %416 = vector.load %arg6[%c11, %c0_218, %c0_219] : memref<27x8x4xf32, #tpu.memory_space<vmem>>, vector<1x8x4xf32>
    %417 = vector.shape_cast %416 : vector<1x8x4xf32> to vector<8x4xf32>
    %cst_220 = arith.constant dense<0.000000e+00> : vector<8x64xf32>
    %418 = tpu.matmul %417, %415, %cst_220 {dimension_numbers = #tpu.dot_dimension_numbers<[1], [0], [0], [1], [0, 0, 1, 1], [], []>} : vector<8x4xf32>, vector<4x64xf32>, vector<8x64xf32> -> vector<8x64xf32>
    %419 = arith.addf %410, %418 : vector<8x64xf32>
    %c0_221 = arith.constant 0 : index
    %c12 = arith.constant 12 : index
    %420 = vector.load %arg8[%c0_221, %c12] : memref<4x90xf32, #tpu.memory_space<vmem>>, vector<4x64xf32>
    %cst_222 = arith.constant 0.000000e+00 : f32
    %421 = vector.shape_cast %308 : vector<1x64xi1> to vector<1x64xi1>
    %422 = vector.broadcast %421 : vector<1x64xi1> to vector<4x64xi1>
    %423 = vector.broadcast %cst_222 : f32 to vector<4x64xf32>
    %424 = arith.select %422, %420, %423 : vector<4x64xi1>, vector<4x64xf32>
    %c12_223 = arith.constant 12 : index
    %c0_224 = arith.constant 0 : index
    %c0_225 = arith.constant 0 : index
    %425 = vector.load %arg6[%c12_223, %c0_224, %c0_225] : memref<27x8x4xf32, #tpu.memory_space<vmem>>, vector<1x8x4xf32>
    %426 = vector.shape_cast %425 : vector<1x8x4xf32> to vector<8x4xf32>
    %cst_226 = arith.constant dense<0.000000e+00> : vector<8x64xf32>
    %427 = tpu.matmul %426, %424, %cst_226 {dimension_numbers = #tpu.dot_dimension_numbers<[1], [0], [0], [1], [0, 0, 1, 1], [], []>} : vector<8x4xf32>, vector<4x64xf32>, vector<8x64xf32> -> vector<8x64xf32>
    %428 = arith.addf %419, %427 : vector<8x64xf32>
    %c0_227 = arith.constant 0 : index
    %c13_228 = arith.constant 13 : index
    %429 = vector.load %arg8[%c0_227, %c13_228] : memref<4x90xf32, #tpu.memory_space<vmem>>, vector<4x64xf32>
    %c13_229 = arith.constant 13 : index
    %c0_230 = arith.constant 0 : index
    %c0_231 = arith.constant 0 : index
    %430 = vector.load %arg6[%c13_229, %c0_230, %c0_231] : memref<27x8x4xf32, #tpu.memory_space<vmem>>, vector<1x8x4xf32>
    %431 = vector.shape_cast %430 : vector<1x8x4xf32> to vector<8x4xf32>
    %cst_232 = arith.constant dense<0.000000e+00> : vector<8x64xf32>
    %432 = tpu.matmul %431, %429, %cst_232 {dimension_numbers = #tpu.dot_dimension_numbers<[1], [0], [0], [1], [0, 0, 1, 1], [], []>} : vector<8x4xf32>, vector<4x64xf32>, vector<8x64xf32> -> vector<8x64xf32>
    %433 = arith.addf %428, %432 : vector<8x64xf32>
    %c0_233 = arith.constant 0 : index
    %c14 = arith.constant 14 : index
    %434 = vector.load %arg8[%c0_233, %c14] : memref<4x90xf32, #tpu.memory_space<vmem>>, vector<4x64xf32>
    %cst_234 = arith.constant 0.000000e+00 : f32
    %435 = vector.shape_cast %310 : vector<1x64xi1> to vector<1x64xi1>
    %436 = vector.broadcast %435 : vector<1x64xi1> to vector<4x64xi1>
    %437 = vector.broadcast %cst_234 : f32 to vector<4x64xf32>
    %438 = arith.select %436, %434, %437 : vector<4x64xi1>, vector<4x64xf32>
    %c14_235 = arith.constant 14 : index
    %c0_236 = arith.constant 0 : index
    %c0_237 = arith.constant 0 : index
    %439 = vector.load %arg6[%c14_235, %c0_236, %c0_237] : memref<27x8x4xf32, #tpu.memory_space<vmem>>, vector<1x8x4xf32>
    %440 = vector.shape_cast %439 : vector<1x8x4xf32> to vector<8x4xf32>
    %cst_238 = arith.constant dense<0.000000e+00> : vector<8x64xf32>
    %441 = tpu.matmul %440, %438, %cst_238 {dimension_numbers = #tpu.dot_dimension_numbers<[1], [0], [0], [1], [0, 0, 1, 1], [], []>} : vector<8x4xf32>, vector<4x64xf32>, vector<8x64xf32> -> vector<8x64xf32>
    %442 = arith.addf %433, %441 : vector<8x64xf32>
    %c0_239 = arith.constant 0 : index
    %c16 = arith.constant 16 : index
    %443 = vector.load %arg8[%c0_239, %c16] : memref<4x90xf32, #tpu.memory_space<vmem>>, vector<4x64xf32>
    %cst_240 = arith.constant 0.000000e+00 : f32
    %444 = vector.shape_cast %313 : vector<1x64xi1> to vector<1x64xi1>
    %445 = vector.broadcast %444 : vector<1x64xi1> to vector<4x64xi1>
    %446 = vector.broadcast %cst_240 : f32 to vector<4x64xf32>
    %447 = arith.select %445, %443, %446 : vector<4x64xi1>, vector<4x64xf32>
    %c15 = arith.constant 15 : index
    %c0_241 = arith.constant 0 : index
    %c0_242 = arith.constant 0 : index
    %448 = vector.load %arg6[%c15, %c0_241, %c0_242] : memref<27x8x4xf32, #tpu.memory_space<vmem>>, vector<1x8x4xf32>
    %449 = vector.shape_cast %448 : vector<1x8x4xf32> to vector<8x4xf32>
    %cst_243 = arith.constant dense<0.000000e+00> : vector<8x64xf32>
    %450 = tpu.matmul %449, %447, %cst_243 {dimension_numbers = #tpu.dot_dimension_numbers<[1], [0], [0], [1], [0, 0, 1, 1], [], []>} : vector<8x4xf32>, vector<4x64xf32>, vector<8x64xf32> -> vector<8x64xf32>
    %451 = arith.addf %442, %450 : vector<8x64xf32>
    %c0_244 = arith.constant 0 : index
    %c17 = arith.constant 17 : index
    %452 = vector.load %arg8[%c0_244, %c17] : memref<4x90xf32, #tpu.memory_space<vmem>>, vector<4x64xf32>
    %cst_245 = arith.constant 0.000000e+00 : f32
    %453 = vector.shape_cast %306 : vector<1x64xi1> to vector<1x64xi1>
    %454 = vector.broadcast %453 : vector<1x64xi1> to vector<4x64xi1>
    %455 = vector.broadcast %cst_245 : f32 to vector<4x64xf32>
    %456 = arith.select %454, %452, %455 : vector<4x64xi1>, vector<4x64xf32>
    %c16_246 = arith.constant 16 : index
    %c0_247 = arith.constant 0 : index
    %c0_248 = arith.constant 0 : index
    %457 = vector.load %arg6[%c16_246, %c0_247, %c0_248] : memref<27x8x4xf32, #tpu.memory_space<vmem>>, vector<1x8x4xf32>
    %458 = vector.shape_cast %457 : vector<1x8x4xf32> to vector<8x4xf32>
    %cst_249 = arith.constant dense<0.000000e+00> : vector<8x64xf32>
    %459 = tpu.matmul %458, %456, %cst_249 {dimension_numbers = #tpu.dot_dimension_numbers<[1], [0], [0], [1], [0, 0, 1, 1], [], []>} : vector<8x4xf32>, vector<4x64xf32>, vector<8x64xf32> -> vector<8x64xf32>
    %460 = arith.addf %451, %459 : vector<8x64xf32>
    %c0_250 = arith.constant 0 : index
    %c18 = arith.constant 18 : index
    %461 = vector.load %arg8[%c0_250, %c18] : memref<4x90xf32, #tpu.memory_space<vmem>>, vector<4x64xf32>
    %cst_251 = arith.constant 0.000000e+00 : f32
    %462 = vector.shape_cast %314 : vector<1x64xi1> to vector<1x64xi1>
    %463 = vector.broadcast %462 : vector<1x64xi1> to vector<4x64xi1>
    %464 = vector.broadcast %cst_251 : f32 to vector<4x64xf32>
    %465 = arith.select %463, %461, %464 : vector<4x64xi1>, vector<4x64xf32>
    %c17_252 = arith.constant 17 : index
    %c0_253 = arith.constant 0 : index
    %c0_254 = arith.constant 0 : index
    %466 = vector.load %arg6[%c17_252, %c0_253, %c0_254] : memref<27x8x4xf32, #tpu.memory_space<vmem>>, vector<1x8x4xf32>
    %467 = vector.shape_cast %466 : vector<1x8x4xf32> to vector<8x4xf32>
    %cst_255 = arith.constant dense<0.000000e+00> : vector<8x64xf32>
    %468 = tpu.matmul %467, %465, %cst_255 {dimension_numbers = #tpu.dot_dimension_numbers<[1], [0], [0], [1], [0, 0, 1, 1], [], []>} : vector<8x4xf32>, vector<4x64xf32>, vector<8x64xf32> -> vector<8x64xf32>
    %469 = arith.addf %460, %468 : vector<8x64xf32>
    %c0_256 = arith.constant 0 : index
    %c16_257 = arith.constant 16 : index
    %470 = vector.load %arg8[%c0_256, %c16_257] : memref<4x90xf32, #tpu.memory_space<vmem>>, vector<4x64xf32>
    %cst_258 = arith.constant 0.000000e+00 : f32
    %471 = vector.shape_cast %311 : vector<1x64xi1> to vector<1x64xi1>
    %472 = vector.broadcast %471 : vector<1x64xi1> to vector<4x64xi1>
    %473 = vector.broadcast %cst_258 : f32 to vector<4x64xf32>
    %474 = arith.select %472, %470, %473 : vector<4x64xi1>, vector<4x64xf32>
    %c18_259 = arith.constant 18 : index
    %c0_260 = arith.constant 0 : index
    %c0_261 = arith.constant 0 : index
    %475 = vector.load %arg6[%c18_259, %c0_260, %c0_261] : memref<27x8x4xf32, #tpu.memory_space<vmem>>, vector<1x8x4xf32>
    %476 = vector.shape_cast %475 : vector<1x8x4xf32> to vector<8x4xf32>
    %cst_262 = arith.constant dense<0.000000e+00> : vector<8x64xf32>
    %477 = tpu.matmul %476, %474, %cst_262 {dimension_numbers = #tpu.dot_dimension_numbers<[1], [0], [0], [1], [0, 0, 1, 1], [], []>} : vector<8x4xf32>, vector<4x64xf32>, vector<8x64xf32> -> vector<8x64xf32>
    %478 = arith.addf %469, %477 : vector<8x64xf32>
    %c0_263 = arith.constant 0 : index
    %c17_264 = arith.constant 17 : index
    %479 = vector.load %arg8[%c0_263, %c17_264] : memref<4x90xf32, #tpu.memory_space<vmem>>, vector<4x64xf32>
    %cst_265 = arith.constant 0.000000e+00 : f32
    %480 = vector.shape_cast %304 : vector<1x64xi1> to vector<1x64xi1>
    %481 = vector.broadcast %480 : vector<1x64xi1> to vector<4x64xi1>
    %482 = vector.broadcast %cst_265 : f32 to vector<4x64xf32>
    %483 = arith.select %481, %479, %482 : vector<4x64xi1>, vector<4x64xf32>
    %c19 = arith.constant 19 : index
    %c0_266 = arith.constant 0 : index
    %c0_267 = arith.constant 0 : index
    %484 = vector.load %arg6[%c19, %c0_266, %c0_267] : memref<27x8x4xf32, #tpu.memory_space<vmem>>, vector<1x8x4xf32>
    %485 = vector.shape_cast %484 : vector<1x8x4xf32> to vector<8x4xf32>
    %cst_268 = arith.constant dense<0.000000e+00> : vector<8x64xf32>
    %486 = tpu.matmul %485, %483, %cst_268 {dimension_numbers = #tpu.dot_dimension_numbers<[1], [0], [0], [1], [0, 0, 1, 1], [], []>} : vector<8x4xf32>, vector<4x64xf32>, vector<8x64xf32> -> vector<8x64xf32>
    %487 = arith.addf %478, %486 : vector<8x64xf32>
    %c0_269 = arith.constant 0 : index
    %c18_270 = arith.constant 18 : index
    %488 = vector.load %arg8[%c0_269, %c18_270] : memref<4x90xf32, #tpu.memory_space<vmem>>, vector<4x64xf32>
    %cst_271 = arith.constant 0.000000e+00 : f32
    %489 = vector.shape_cast %312 : vector<1x64xi1> to vector<1x64xi1>
    %490 = vector.broadcast %489 : vector<1x64xi1> to vector<4x64xi1>
    %491 = vector.broadcast %cst_271 : f32 to vector<4x64xf32>
    %492 = arith.select %490, %488, %491 : vector<4x64xi1>, vector<4x64xf32>
    %c20 = arith.constant 20 : index
    %c0_272 = arith.constant 0 : index
    %c0_273 = arith.constant 0 : index
    %493 = vector.load %arg6[%c20, %c0_272, %c0_273] : memref<27x8x4xf32, #tpu.memory_space<vmem>>, vector<1x8x4xf32>
    %494 = vector.shape_cast %493 : vector<1x8x4xf32> to vector<8x4xf32>
    %cst_274 = arith.constant dense<0.000000e+00> : vector<8x64xf32>
    %495 = tpu.matmul %494, %492, %cst_274 {dimension_numbers = #tpu.dot_dimension_numbers<[1], [0], [0], [1], [0, 0, 1, 1], [], []>} : vector<8x4xf32>, vector<4x64xf32>, vector<8x64xf32> -> vector<8x64xf32>
    %496 = arith.addf %487, %495 : vector<8x64xf32>
    %c0_275 = arith.constant 0 : index
    %c20_276 = arith.constant 20 : index
    %497 = vector.load %arg8[%c0_275, %c20_276] : memref<4x90xf32, #tpu.memory_space<vmem>>, vector<4x64xf32>
    %cst_277 = arith.constant 0.000000e+00 : f32
    %498 = vector.shape_cast %308 : vector<1x64xi1> to vector<1x64xi1>
    %499 = vector.broadcast %498 : vector<1x64xi1> to vector<4x64xi1>
    %500 = vector.broadcast %cst_277 : f32 to vector<4x64xf32>
    %501 = arith.select %499, %497, %500 : vector<4x64xi1>, vector<4x64xf32>
    %c21_278 = arith.constant 21 : index
    %c0_279 = arith.constant 0 : index
    %c0_280 = arith.constant 0 : index
    %502 = vector.load %arg6[%c21_278, %c0_279, %c0_280] : memref<27x8x4xf32, #tpu.memory_space<vmem>>, vector<1x8x4xf32>
    %503 = vector.shape_cast %502 : vector<1x8x4xf32> to vector<8x4xf32>
    %cst_281 = arith.constant dense<0.000000e+00> : vector<8x64xf32>
    %504 = tpu.matmul %503, %501, %cst_281 {dimension_numbers = #tpu.dot_dimension_numbers<[1], [0], [0], [1], [0, 0, 1, 1], [], []>} : vector<8x4xf32>, vector<4x64xf32>, vector<8x64xf32> -> vector<8x64xf32>
    %505 = arith.addf %496, %504 : vector<8x64xf32>
    %c0_282 = arith.constant 0 : index
    %c21_283 = arith.constant 21 : index
    %506 = vector.load %arg8[%c0_282, %c21_283] : memref<4x90xf32, #tpu.memory_space<vmem>>, vector<4x64xf32>
    %c22 = arith.constant 22 : index
    %c0_284 = arith.constant 0 : index
    %c0_285 = arith.constant 0 : index
    %507 = vector.load %arg6[%c22, %c0_284, %c0_285] : memref<27x8x4xf32, #tpu.memory_space<vmem>>, vector<1x8x4xf32>
    %508 = vector.shape_cast %507 : vector<1x8x4xf32> to vector<8x4xf32>
    %cst_286 = arith.constant dense<0.000000e+00> : vector<8x64xf32>
    %509 = tpu.matmul %508, %506, %cst_286 {dimension_numbers = #tpu.dot_dimension_numbers<[1], [0], [0], [1], [0, 0, 1, 1], [], []>} : vector<8x4xf32>, vector<4x64xf32>, vector<8x64xf32> -> vector<8x64xf32>
    %510 = arith.addf %505, %509 : vector<8x64xf32>
    %c0_287 = arith.constant 0 : index
    %c22_288 = arith.constant 22 : index
    %511 = vector.load %arg8[%c0_287, %c22_288] : memref<4x90xf32, #tpu.memory_space<vmem>>, vector<4x64xf32>
    %cst_289 = arith.constant 0.000000e+00 : f32
    %512 = vector.shape_cast %310 : vector<1x64xi1> to vector<1x64xi1>
    %513 = vector.broadcast %512 : vector<1x64xi1> to vector<4x64xi1>
    %514 = vector.broadcast %cst_289 : f32 to vector<4x64xf32>
    %515 = arith.select %513, %511, %514 : vector<4x64xi1>, vector<4x64xf32>
    %c23 = arith.constant 23 : index
    %c0_290 = arith.constant 0 : index
    %c0_291 = arith.constant 0 : index
    %516 = vector.load %arg6[%c23, %c0_290, %c0_291] : memref<27x8x4xf32, #tpu.memory_space<vmem>>, vector<1x8x4xf32>
    %517 = vector.shape_cast %516 : vector<1x8x4xf32> to vector<8x4xf32>
    %cst_292 = arith.constant dense<0.000000e+00> : vector<8x64xf32>
    %518 = tpu.matmul %517, %515, %cst_292 {dimension_numbers = #tpu.dot_dimension_numbers<[1], [0], [0], [1], [0, 0, 1, 1], [], []>} : vector<8x4xf32>, vector<4x64xf32>, vector<8x64xf32> -> vector<8x64xf32>
    %519 = arith.addf %510, %518 : vector<8x64xf32>
    %c0_293 = arith.constant 0 : index
    %c24 = arith.constant 24 : index
    %520 = vector.load %arg8[%c0_293, %c24] : memref<4x90xf32, #tpu.memory_space<vmem>>, vector<4x64xf32>
    %cst_294 = arith.constant 0.000000e+00 : f32
    %521 = vector.shape_cast %313 : vector<1x64xi1> to vector<1x64xi1>
    %522 = vector.broadcast %521 : vector<1x64xi1> to vector<4x64xi1>
    %523 = vector.broadcast %cst_294 : f32 to vector<4x64xf32>
    %524 = arith.select %522, %520, %523 : vector<4x64xi1>, vector<4x64xf32>
    %c24_295 = arith.constant 24 : index
    %c0_296 = arith.constant 0 : index
    %c0_297 = arith.constant 0 : index
    %525 = vector.load %arg6[%c24_295, %c0_296, %c0_297] : memref<27x8x4xf32, #tpu.memory_space<vmem>>, vector<1x8x4xf32>
    %526 = vector.shape_cast %525 : vector<1x8x4xf32> to vector<8x4xf32>
    %cst_298 = arith.constant dense<0.000000e+00> : vector<8x64xf32>
    %527 = tpu.matmul %526, %524, %cst_298 {dimension_numbers = #tpu.dot_dimension_numbers<[1], [0], [0], [1], [0, 0, 1, 1], [], []>} : vector<8x4xf32>, vector<4x64xf32>, vector<8x64xf32> -> vector<8x64xf32>
    %528 = arith.addf %519, %527 : vector<8x64xf32>
    %c0_299 = arith.constant 0 : index
    %c25 = arith.constant 25 : index
    %529 = vector.load %arg8[%c0_299, %c25] : memref<4x90xf32, #tpu.memory_space<vmem>>, vector<4x64xf32>
    %cst_300 = arith.constant 0.000000e+00 : f32
    %530 = vector.shape_cast %306 : vector<1x64xi1> to vector<1x64xi1>
    %531 = vector.broadcast %530 : vector<1x64xi1> to vector<4x64xi1>
    %532 = vector.broadcast %cst_300 : f32 to vector<4x64xf32>
    %533 = arith.select %531, %529, %532 : vector<4x64xi1>, vector<4x64xf32>
    %c25_301 = arith.constant 25 : index
    %c0_302 = arith.constant 0 : index
    %c0_303 = arith.constant 0 : index
    %534 = vector.load %arg6[%c25_301, %c0_302, %c0_303] : memref<27x8x4xf32, #tpu.memory_space<vmem>>, vector<1x8x4xf32>
    %535 = vector.shape_cast %534 : vector<1x8x4xf32> to vector<8x4xf32>
    %cst_304 = arith.constant dense<0.000000e+00> : vector<8x64xf32>
    %536 = tpu.matmul %535, %533, %cst_304 {dimension_numbers = #tpu.dot_dimension_numbers<[1], [0], [0], [1], [0, 0, 1, 1], [], []>} : vector<8x4xf32>, vector<4x64xf32>, vector<8x64xf32> -> vector<8x64xf32>
    %537 = arith.addf %528, %536 : vector<8x64xf32>
    %c0_305 = arith.constant 0 : index
    %c26 = arith.constant 26 : index
    %538 = vector.load %arg8[%c0_305, %c26] : memref<4x90xf32, #tpu.memory_space<vmem>>, vector<4x64xf32>
    %cst_306 = arith.constant 0.000000e+00 : f32
    %539 = vector.shape_cast %314 : vector<1x64xi1> to vector<1x64xi1>
    %540 = vector.broadcast %539 : vector<1x64xi1> to vector<4x64xi1>
    %541 = vector.broadcast %cst_306 : f32 to vector<4x64xf32>
    %542 = arith.select %540, %538, %541 : vector<4x64xi1>, vector<4x64xf32>
    %c26_307 = arith.constant 26 : index
    %c0_308 = arith.constant 0 : index
    %c0_309 = arith.constant 0 : index
    %543 = vector.load %arg6[%c26_307, %c0_308, %c0_309] : memref<27x8x4xf32, #tpu.memory_space<vmem>>, vector<1x8x4xf32>
    %544 = vector.shape_cast %543 : vector<1x8x4xf32> to vector<8x4xf32>
    %cst_310 = arith.constant dense<0.000000e+00> : vector<8x64xf32>
    %545 = tpu.matmul %544, %542, %cst_310 {dimension_numbers = #tpu.dot_dimension_numbers<[1], [0], [0], [1], [0, 0, 1, 1], [], []>} : vector<8x4xf32>, vector<4x64xf32>, vector<8x64xf32> -> vector<8x64xf32>
    %546 = arith.addf %537, %545 : vector<8x64xf32>
    %cst_311 = arith.constant 0.000000e+00 : f32
    %547 = vector.broadcast %cst_311 : f32 to vector<8x64xf32>
    %548 = arith.cmpf ogt, %546, %547 : vector<8x64xf32>
    %cst_312 = arith.constant 0.00999999977 : f32
    %549 = vector.broadcast %cst_312 : f32 to vector<8x64xf32>
    %550 = arith.mulf %549, %546 : vector<8x64xf32>
    %551 = arith.select %548, %546, %550 : vector<8x64xi1>, vector<8x64xf32>
    %c0_313 = arith.constant 0 : index
    %c0_314 = arith.constant 0 : index
    %c0_315 = arith.constant 0 : index
    %552 = vector.load %arg7[%c0_313, %c0_314, %c0_315] : memref<1x8x64xf32, #tpu.memory_space<vmem>>, vector<1x8x64xf32>
    %553 = vector.shape_cast %552 : vector<1x8x64xf32> to vector<8x64xf32>
    %554 = vector.shape_cast %551 : vector<8x64xf32> to vector<1x8x64xf32>
    tpu.vector_store %arg7[%c0_313, %c0_314, %c0_315], %554 {strides = array<i32>} : memref<1x8x64xf32, #tpu.memory_space<vmem>>, vector<1x8x64xf32>,
    return
  }
  func.func @transform_0(%arg0: i32) -> (i32, i32, i32) {
    %c0_i32 = arith.constant 0 : i32
    %c0_i32_0 = arith.constant 0 : i32
    %c0_i32_1 = arith.constant 0 : i32
    return %arg0, %c0_i32, %c0_i32_0 : i32, i32, i32
  }
  func.func @transform_1(%arg0: i32) -> (i32, i32, i32) {
    %c0_i32 = arith.constant 0 : i32
    %c0_i32_0 = arith.constant 0 : i32
    %c0_i32_1 = arith.constant 0 : i32
    return %arg0, %c0_i32, %c0_i32_0 : i32, i32, i32
  }
  func.func @transform_2(%arg0: i32) -> (i32, i32) {
    %c0_i32 = arith.constant 0 : i32
    %c0_i32_0 = arith.constant 0 : i32
    %c0_i32_1 = arith.constant 0 : i32
    return %c0_i32, %c0_i32_0 : i32, i32
  }
  func.func @transform_3(%arg0: i32) -> (i32, i32) {
    %c0_i32 = arith.constant 0 : i32
    %c0_i32_0 = arith.constant 0 : i32
    %c0_i32_1 = arith.constant 0 : i32
    return %c0_i32, %c0_i32_0 : i32, i32
  }
  func.func @transform_4(%arg0: i32) -> (i32, i32) {
    %c0_i32 = arith.constant 0 : i32
    %c0_i32_0 = arith.constant 0 : i32
    %c0_i32_1 = arith.constant 0 : i32
    return %c0_i32, %c0_i32_0 : i32, i32
  }
  func.func @transform_5(%arg0: i32) -> (i32, i32, i32) {
    %c0_i32 = arith.constant 0 : i32
    %c0_i32_0 = arith.constant 0 : i32
    %c0_i32_1 = arith.constant 0 : i32
    %c0_i32_2 = arith.constant 0 : i32
    return %c0_i32, %c0_i32_0, %c0_i32_1 : i32, i32, i32
  }
  func.func @transform_6(%arg0: i32) -> (i32, i32, i32) {
    %c0_i32 = arith.constant 0 : i32
    %c0_i32_0 = arith.constant 0 : i32
    %c0_i32_1 = arith.constant 0 : i32
    return %arg0, %c0_i32, %c0_i32_0 : i32, i32, i32
  }
}

</mosaic_0001>

<bundles_post_ra>
// kernel: local_branch_forward.1
= control target key start
LH: loop header
LB: loop body
LE: loop exit
PB: predicated region body
PF: predicated region fallthrough
CT: control target
= control target key end

     0   :  { %s3131_s21 = smov 0   ;;  %s4344_s0 = inlined_call_operand.vmem [shape: f32[2,4,1408], index: 0, kind: input, shape index: {}]   ;;  %s4345_s1 = inlined_call_operand.vmem [shape: f32[2,32,176], index: 1, kind: input, shape index: {}]   ;;  %s4346_s2 = inlined_call_operand.vmem [shape: f32[2,4], index: 2, kind: input, shape index: {}]   ;;  %s4347_s3 = inlined_call_operand.vmem [shape: f32[7,2], index: 3, kind: input, shape index: {}]   ;;  %s4348_s4 = inlined_call_operand.vmem [shape: f32[7,1], index: 4, kind: input, shape index: {}]   ;;  %s4349_s5 = inlined_call_operand.vmem [shape: f32[27,8,4], index: 5, kind: input, shape index: {}]   ;;  %s4350_s6 = inlined_call_operand.vmem [shape: f32[2,8,64], index: 6, kind: output, shape index: {}]  }
   0x1 LB: > { %s2733_s22 = sadd.s32 4294967295, %s3059_s21   ;;  %p2737_p0 = scmp.ge.s32.totalorder %s3059_s21, 1  ;;  %s3059_s21 = sphi %s3131_s21, %s16_s21  }
   0x2   : > { %p222_p1 = scmp.lt.s32.totalorder %s3059_s21, 3 }
   0x4   : > { %p223_p2 = pnand %p2737_p0, %p222_p1 }
   0x6   : > { %226 = sbr.rel (%p223_p2) target bundleno = 1545 (0x609), region = 44 }
   0xb   : > { %p256_p3 = scmp.lt.s32.totalorder %s2733_s22, 1  ;;  %vm307_vm0 = vcmask 1043456   ;;  %v276_v6 = vld [vmem:[%s4346_s2] sm:$0x3]  ;;  %vm303_vm1 = vcmask 31744   ;;  %vm583_vm4 = vcmask 1041408  }
   0xc   : > { %s3062_s7 = smov 127   ;;  %s3068_s25 = smov 37  }
   0xd   : > { %s4498_s22 = smov (!%p256_p3, %s2733_s22), 1  ;;  %s3070_s27 = smov 13  }
   0xe   : > { %s2861_s23 = smul.u32 44, %s4498_s22  ;;  %s2860_s19 = sshll.u32 %s4498_s22, 6 }
   0xf   : > { %s4014_s24 = scalar_lea.vmem %s4345_s1, %s2860_s19  ;;  %s3071_s28 = smov 61  }
  0x10   : > { %s260_s26 = scalar_lea.vmem %s4344_s0, %s2861_s23  ;;  %s3072_s29 = smov 45  }
  0x11   : > { %v270_v0 = vld [vmem:[%s260_s26] sm:$0xff]  ;;  %v271_v1 = vld [vmem:[%s260_s26 + $0x8] sm:$0xff]  ;;  %v272_v2 = vld [vmem:[%s260_s26 + $0x10] sm:$0xff]  ;;  %s3073_s30 = smov 29   ;;  %s3074_s8 = smov 69  }
  0x12   : > { %283 = vst [vmem:[#allocation1] ss:$2 sm:$0xff] %v270_v0  ;;  %v273_v3 = vld [vmem:[%s260_s26 + $0x18] sm:$0xff]  ;;  %v274_v4 = vld [vmem:[%s260_s26 + $0x20] sm:$0xff]  ;;  %v275_v5 = vld [vmem:[%s260_s26 + $0x28] sm:$0xf] }
  0x13   : > { %285 = vst [vmem:[#allocation1 + $0x10] ss:$2 sm:$0xff] %v271_v1  ;;  %s3069_s26 = smov 21   ;;  %s3075_s9 = smov 53  }
  0x14   : > { %287 = vst [vmem:[#allocation1 + $0x20] ss:$2 sm:$0xff] %v272_v2  ;;  %s3086_s19 = smov 111   ;;  %s3087_s20 = smov 112  }
  0x15   : > { %289 = vst [vmem:[#allocation1 + $0x30] ss:$2 sm:$0xff] %v273_v3  ;;  %s3088_s23 = smov 106  }
  0x19   : > { %v290_v7 = vld.sshfl [vmem:[#allocation1] sm:$0xff pattern:$0x75316420]  ;;  %v291_v8 = vld.sshfl [vmem:[#allocation1 + $0x8] sm:$0xff pattern:$0x75316420] }
  0x1a   : > { %2742 = vmatpush.msk.msra.mxu0 %vm307_vm0, %v290_v7  ;;  %298 = vst [vmem:[#allocation1] ss:$2 sm:$0xff] %v274_v4  ;;  %2744 = vmatpush.msk.msra.mxu1 %vm307_vm0, %v291_v8  ;;  %v292_v9 = vld.sshfl [vmem:[#allocation1 + $0x10] sm:$0xff pattern:$0x75316420]  ;;  %v3061_v8 = vmov 1408.0  }
  0x1b   : > { %2746 = vmatpush.msk.msra.mxu2 %vm307_vm0, %v292_v9  ;;  %v293_v10 = vld.sshfl [vmem:[#allocation1 + $0x18] sm:$0xff pattern:$0x75316420]  ;;  %2743 = vmatmul.msk.f32.vlgmr.msra.gmra.mxu0 %vm303_vm1, %v276_v6  ;;  %v294_v11 = vld.sshfl [vmem:[#allocation1 + $0x20] sm:$0xff pattern:$0x75316420]  ;;  %2923 = vrcp.f32 %v3061_v8 }
  0x1c   : > { %299 = vst [vmem:[#allocation1 + $0x10] ss:$2 sm:$0xff] %v275_v5  ;;  %2748 = vmatpush.msk.msra.mxu3 %vm307_vm0, %v293_v10  ;;  %2745 = vmatmul.msk.f32.vlgmr.msra.gmra.mxu1 %vm303_vm1, %v276_v6  ;;  %v296_v12 = vld.sshfl [vmem:[#allocation1 + $0x30] sm:$0xff pattern:$0x75316420] }
  0x1d   : > { %2747 = vmatmul.msk.f32.vlgmr.msra.gmra.mxu2 %vm303_vm1, %v276_v6  ;;  %2749 = vmatmul.msk.f32.vlgmr.msra.gmra.mxu3 %vm303_vm1, %v276_v6  ;;  %v297_v13 = vld.sshfl [vmem:[#allocation1 + $0x38] sm:$0xff pattern:$0x75316420]  ;;  %v295_v14 = vld.sshfl [vmem:[#allocation1 + $0x28] sm:$0xff pattern:$0x75316420] }
  0x1e   : > { %2750 = vmatpush.msk.msrb.mxu0 %vm307_vm0, %v294_v11  ;;  %2754 = vmatpush.msk.msrb.mxu2 %vm307_vm0, %v296_v12 }
  0x1f   : > { %2756 = vmatpush.msk.msrb.mxu3 %vm307_vm0, %v297_v13  ;;  %2752 = vmatpush.msk.msrb.mxu1 %vm307_vm0, %v295_v14 }
  0x21   : > { %v300_v15 = vld.sshfl [vmem:[#allocation1] sm:$0xff pattern:$0x75316420]  ;;  %v301_v16 = vld.sshfl [vmem:[#allocation1 + $0x8] sm:$0xff pattern:$0x75316420]  ;;  %v2924_v9 = vpop.eup %2923 }
  0x22   : > { %2758 = vmatpush.msk.msra.mxu0 %vm307_vm0, %v300_v15  ;;  %2760 = vmatpush.msk.msra.mxu1 %vm307_vm0, %v301_v16  ;;  %v608_v10 = vmul.f32 1408.0, %v2924_v9  ;;  %vm612_vm14 = vweird.f32 %v2924_v9 }
  0x23   : > { %2751 = vmatmul.msk.f32.vlgmr.msrb.gmra.mxu0 %vm303_vm1, %v276_v6  ;;  %v302_v17 = vld.sshfl [vmem:[#allocation1 + $0x10] sm:$0xff pattern:$0x75316420] }
  0x24   : > { %2753 = vmatmul.msk.f32.vlgmr.msrb.gmra.mxu1 %vm303_vm1, %v276_v6  ;;  %2762 = vmatpush.msk.msra.mxu2 %vm307_vm0, %v302_v17  ;;  %v609_v11 = vsub.f32 1.0, %v608_v10  ;;  %v616_v17 = vld [vmem:[%s4347_s3] sm:$0x7f] }
  0x25   : > { %2755 = vmatmul.msk.f32.vlgmr.msrb.gmra.mxu2 %vm303_vm1, %v276_v6  ;;  %2757 = vmatmul.msk.f32.vlgmr.msrb.gmra.mxu3 %vm303_vm1, %v276_v6 }
  0x26   : > { %v610_v12 = vmul.f32 %v2924_v9, %v609_v11 }
  0x28   : > { %v611_v13 = vadd.f32 %v2924_v9, %v610_v12 }
  0x2a   : > { %v613_v14 = vsel %vm612_vm14, %v2924_v9, %v611_v13 }
  0x2b   : > { %2759 = vmatmul.msk.f32.vlgmr.msra.gmra.mxu0 %vm303_vm1, %v276_v6 }
  0x2c   : > { %2761 = vmatmul.msk.f32.vlgmr.msra.gmra.mxu1 %vm303_vm1, %v276_v6 }
  0x2d   : > { %2763 = vmatmul.msk.f32.vlgmr.msra.gmra.mxu2 %vm303_vm1, %v276_v6 }
  0x98   : > { %v347_v18 = vpop.f32.mrf.mxu0 }
  0x99   : > { %v561_v19 = vmul.f32 0.01, %v347_v18  ;;  %v367_v20 = vpop.f32.mrf.mxu1  ;;  %vm550_vm2 = vcmp.gt.f32.partialorder %v347_v18, 0.0 }
  0x9a   : > { %vm551_vm3 = vcmp.gt.f32.partialorder %v367_v20, 0.0  ;;  %v562_v21 = vmul.f32 0.01, %v367_v20 }
  0x9b   : > { %v572_v22 = vsel %vm550_vm2, %v347_v18, %v561_v19 }
  0x9c   : > { %v573_v23 = vsel %vm551_vm3, %v367_v20, %v562_v21  ;;  %v584_v24 = vsel %vm583_vm4, %v572_v22, 0.0  ;;  %v3063_v22 = vmov 4.0  }
  0x9d   : > { %v585_v25 = vsel %vm583_vm4, %v573_v23, 0.0  ;;  %2925 = vrcp.f32 %v3063_v22 }
  0x9e   : > { %v586_v33 = vadd.f32 %v585_v25, %v584_v24 }
  0xa0   : > { %v387_v26 = vpop.f32.mrf.mxu2  ;;  %v407_v27 = vpop.f32.mrf.mxu3 }
  0xa1   : > { %vm552_vm5 = vcmp.gt.f32.partialorder %v387_v26, 0.0  ;;  %v563_v28 = vmul.f32 0.01, %v387_v26  ;;  %vm553_vm6 = vcmp.gt.f32.partialorder %v407_v27, 0.0  ;;  %v564_v29 = vmul.f32 0.01, %v407_v27  ;;  %v427_v30 = vpop.f32.mrf.mxu0  ;;  %v447_v31 = vpop.f32.mrf.mxu1 }
  0xa2   : > { %vm554_vm7 = vcmp.gt.f32.partialorder %v427_v30, 0.0  ;;  %v565_v32 = vmul.f32 0.01, %v427_v30  ;;  %v566_v36 = vmul.f32 0.01, %v447_v31  ;;  %vm555_vm8 = vcmp.gt.f32.partialorder %v447_v31, 0.0 }
  0xa3   : > { %v574_v34 = vsel %vm552_vm5, %v387_v26, %v563_v28  ;;  %v575_v35 = vsel %vm553_vm6, %v407_v27, %v564_v29  ;;  %v2926_v23 = vpop.eup %2925  ;;  %v3064_v26 = vmov 2.0   ;;  %v3065_v28 = vmov 8.0  }
  0xa4   : > { %v587_v37 = vsel %vm583_vm4, %v574_v34, 0.0  ;;  %v576_v39 = vsel %vm554_vm7, %v427_v30, %v565_v32  ;;  %v589_v40 = vsel %vm583_vm4, %v575_v35, 0.0  ;;  %v577_v42 = vsel %vm555_vm8, %v447_v31, %v566_v36  ;;  %v615_v32 = vld [vmem:[%s4348_s4] sm:$0x7f] }
  0xa5   : > { %v588_v38 = vadd.f32 %v587_v37, %v586_v33  ;;  %v591_v43 = vsel %vm583_vm4, %v576_v39, 0.0  ;;  %v593_v50 = vsel %vm583_vm4, %v577_v42, 0.0  ;;  %v664_v24 = vmul.f32 4.0, %v2926_v23 }
  0xa6   : > { %2927 = vrcp.f32 %v3064_v26  ;;  %v671_v29 = vlaneseq  ;;  %vm668_vm15 = vweird.f32 %v2926_v23 }
  0xa7   : > { %v590_v41 = vadd.f32 %v589_v40, %v588_v38  ;;  %v665_v25 = vsub.f32 1.0, %v664_v24  ;;  %2929 = vrcp.f32 %v3065_v28 }
  0xa8   : > { %v467_v44 = vpop.f32.mrf.mxu2  ;;  %v487_v45 = vpop.f32.mrf.mxu3  ;;  %v717_v33 = vand.u32 127, %v671_v29 }
  0xa9   : > { %v592_v46 = vadd.f32 %v591_v43, %v590_v41  ;;  %vm556_vm9 = vcmp.gt.f32.partialorder %v467_v44, 0.0  ;;  %v567_v47 = vmul.f32 0.01, %v467_v44  ;;  %vm557_vm10 = vcmp.gt.f32.partialorder %v487_v45, 0.0  ;;  %v507_v48 = vpop.f32.mrf.mxu0  ;;  %v527_v49 = vpop.f32.mrf.mxu1 }
  0xaa   : > { %v568_v51 = vmul.f32 0.01, %v487_v45  ;;  %vm558_vm11 = vcmp.gt.f32.partialorder %v507_v48, 0.0  ;;  %v569_v52 = vmul.f32 0.01, %v507_v48  ;;  %vm559_vm12 = vcmp.gt.f32.partialorder %v527_v49, 0.0 }
  0xab   : > { %v594_v53 = vadd.f32 %v593_v50, %v592_v46  ;;  %v578_v54 = vsel %vm556_vm9, %v467_v44, %v567_v47  ;;  %v570_v55 = vmul.f32 0.01, %v527_v49  ;;  %v666_v27 = vmul.f32 %v2926_v23, %v665_v25 }
  0xac   : > { %v595_v56 = vsel %vm583_vm4, %v578_v54, 0.0  ;;  %v579_v57 = vsel %vm557_vm10, %v487_v45, %v568_v51  ;;  %v580_v59 = vsel %vm558_vm11, %v507_v48, %v569_v52  ;;  %v2928_v31 = vpop.eup %2927  ;;  %v3189_v34 = vcvt.s32.f32 %v717_v33 }
  0xad   : > { %v596_v58 = vadd.f32 %v595_v56, %v594_v53  ;;  %v597_v60 = vsel %vm583_vm4, %v579_v57, 0.0  ;;  %v581_v62 = vsel %vm559_vm12, %v527_v49, %v570_v55  ;;  %v599_v63 = vsel %vm583_vm4, %v580_v59, 0.0  ;;  %v2930_v38 = vpop.eup %2929 }
  0xae   : > { %v601_v3 = vsel %vm583_vm4, %v581_v62, 0.0  ;;  %v667_v30 = vadd.f32 %v2926_v23, %v666_v27  ;;  %v655_v36 = vmul.f32 2.0, %v2928_v31  ;;  %v645_v44 = vmul.f32 8.0, %v2930_v38 }
  0xaf   : > { %v598_v61 = vadd.f32 %v597_v60, %v596_v58  ;;  %vm659_vm2 = vweird.f32 %v2928_v31  ;;  %vm649_vm3 = vweird.f32 %v2930_v38  ;;  %v3066_v27 = vmov 11.0  }
  0xb0   : > { %v547_v0 = vpop.f32.mrf.mxu2  ;;  %v3191_v37 = vsel %vm668_vm15, %v2926_v23, %v667_v30  ;;  %v656_v43 = vsub.f32 1.0, %v655_v36  ;;  %v646_v47 = vsub.f32 1.0, %v645_v44 }
  0xb1   : > { %vm560_vm13 = vcmp.gt.f32.partialorder %v547_v0, 0.0  ;;  %v571_v1 = vmul.f32 0.01, %v547_v0  ;;  %v600_v2 = vadd.f32 %v599_v63, %v598_v61  ;;  %4398 = vst [vmem:[#allocation3_spill] sm:$0xff] %v3191_v37  ;;  %v3195_v40 = vmul.f32 %v3189_v34, %v3191_v37 }
  0xb2   : > { %v657_v46 = vmul.f32 %v2928_v31, %v656_v43  ;;  %v647_v51 = vmul.f32 %v2930_v38, %v646_v47 }
  0xb3   : > { %v582_v4 = vsel %vm560_vm13, %v547_v0, %v571_v1  ;;  %v602_v5 = vadd.f32 %v601_v3, %v600_v2 }
  0xb4   : > { %v603_v6 = vsel %vm583_vm4, %v582_v4, 0.0  ;;  %v658_v50 = vadd.f32 %v2928_v31, %v657_v46  ;;  %v648_v57 = vadd.f32 %v2930_v38, %v647_v51 }
  0xb5   : > { %v604_v7 = vadd.f32 %v603_v6, %v602_v5 }
  0xb6   : > { %v660_v56 = vsel %vm659_vm2, %v2928_v31, %v658_v50  ;;  %v650_v9 = vsel %vm649_vm3, %v2930_v38, %v648_v57  ;;  %v815_v31 = vfloor.f32 %v3195_v40  ;;  %vm1152_vm3 = vcmask 64512  }
  0xb7   : > { %605 = vadd.xlane.f32.xlu0 %v604_v7 }
 0x12a   : > { %v606_v15 = vpop.xlane.xlu0 %605 }
 0x12b   : > { %v614_v16 = vmul.f32 %v613_v14, %v606_v15 }
 0x12d   : > { %v617_v18 = vperm.slane %v614_v16, 0  ;;  %v620_v19 = vperm.slane %v614_v16, 1 }
 0x12f   : > { %v621_v20 = vmul.f32 %v620_v19, %v616_v17  ;;  %v618_v21 = vmul.f32 %v617_v18, %v616_v17 }
 0x131   : > { %623 = vrot.lane.b32.xlu0 %v621_v20, %s3062_s7  ;;  %v619_v35 = vadd.f32 %v618_v21, %v615_v32  ;;  %v3200_v32 = vshrl.u32 %v671_v29, 7 }
 0x133   : > { %v673_v36 = vadd.s32 8, %v3200_v32  ;;  %v675_v38 = vadd.s32 24, %v3200_v32  ;;  %v676_v29 = vadd.s32 32, %v3200_v32  ;;  %v677_v46 = vadd.s32 40, %v3200_v32 }
 0x134   : > { %v3224_v50 = vcvt.s32.f32 %v3200_v32 }
 0x135   : > { %v3206_v43 = vcvt.s32.f32 %v673_v36  ;;  %v3208_v44 = vcvt.s32.f32 %v675_v38 }
 0x137   : > { %v3215_v47 = vmul.f32 %v3206_v43, %v650_v9 }
 0x1a3   : > { %v624_v39 = vpop.permute.xlu0 %623 }
 0x1a4   : > { %v626_v41 = vadd.f32 %v624_v39, %v619_v35  ;;  %v816_v35 = vmul.f32 4.0, %v815_v31 }
 0x1a6   : > { %2931 = vtanh.f32 %v626_v41  ;;  %v634_v42 = vmul.f32 0.1, %v626_v41  ;;  %v817_v39 = vsub.f32 %v3189_v34, %v816_v35  ;;  %v674_v41 = vadd.s32 16, %v3200_v32 }
 0x1a8   : > { %v635_v45 = vmul.f32 1.442695, %v634_v42 }
 0x1aa   : > { %2933 = vpow2.f32 %v635_v45  ;;  %v3210_v45 = vcvt.s32.f32 %v674_v41 }
 0x1ab   : > { %2935 = vrcp.f32 %v3066_v27 }
 0x1ac   : > { %v2932_v48 = vpop.eup %2931 }
 0x1ad   : > { %v628_v49 = vmul.f32 0.1, %v2932_v48  ;;  %v3218_v48 = vmul.f32 %v3208_v44, %v650_v9 }
 0x1af   : > { %v632_v53 = vadd.f32 0.0625, %v628_v49  ;;  %v629_v4 = vadd.f32 0.5, %v628_v49  ;;  %v3221_v49 = vmul.f32 %v3210_v45, %v650_v9 }
 0x1b0   : > { %v2934_v52 = vpop.eup %2933 }
 0x1b1   : > { %v652_v54 = vmul.f32 0.36363637, %v2934_v52  ;;  %v639_v55 = vmul.f32 0.1, %v2934_v52  ;;  %v637_v58 = vmul.f32 0.3, %v2934_v52  ;;  %v2936_v28 = vpop.eup %2935 }
 0x1b2   : > { %v642_v61 = vmul.f32 0.4, %v2934_v52  ;;  %v633_v62 = vmul.f32 15.0, %v632_v53  ;;  %v631_v16 = vmul.f32 10.0, %v629_v4  ;;  %v630_v26 = vmul.f32 7.0, %v629_v4 }
 0x1b3   : > { %v653_v59 = vmul.f32 16.0, %v652_v54  ;;  %v640_v60 = vmul.f32 16.0, %v639_v55  ;;  %v662_v63 = vmul.f32 11.0, %v652_v54  ;;  %v641_v0 = vmul.f32 11.0, %v639_v55 }
 0x1b4   : > { %v638_v1 = vmul.f32 8.0, %v637_v58  ;;  %v643_v10 = vmul.f32 8.0, %v642_v61  ;;  %v826_v11 = vrot.slane %v633_v62, 2  ;;  %v993_v23 = vrot.slane %v631_v16, 1 }
 0x1b5   : > { %v661_v2 = vmul.f32 %v660_v56, %v653_v59  ;;  %v897_v3 = vmul.f32 %v640_v60, %v640_v60  ;;  %v1064_v5 = vmul.f32 %v641_v0, %v641_v0  ;;  %v670_v12 = vmul.f32 %v3191_v37, %v662_v63 }
 0x1b6   : > { %v1390_v6 = vmul.f32 %v638_v1, %v638_v1  ;;  %v651_v19 = vmul.f32 %v650_v9, %v643_v10  ;;  %v720_v30 = vmul.f32 11.0, %v2936_v28  ;;  %vm724_vm4 = vweird.f32 %v2936_v28 }
 0x1b7   : > { %v820_v7 = vrot.slane %v661_v2, 6  ;;  %v898_v8 = vmul.f32 2.0, %v897_v3  ;;  %v1065_v13 = vmul.f32 2.0, %v1064_v5  ;;  %v987_v21 = vrot.slane %v670_v12, 6 }
 0x1b8   : > { %v1391_v14 = vmul.f32 2.0, %v1390_v6  ;;  %v1362_v24 = vrot.slane %v651_v19, 5  ;;  %v721_v33 = vsub.f32 1.0, %v720_v30  ;;  %v698_v52 = vcvt.s32.f32 %v676_v29 }
 0x1b9   : > { %2862 = vpush %v820_v7  ;;  %v899_v15 = vadd.f32 1e-08, %v898_v8  ;;  %v1066_v17 = vadd.f32 1e-08, %v1065_v13  ;;  %v699_v53 = vcvt.s32.f32 %v677_v46  ;;  %v1345_v54 = vmul.f32 %v3189_v34, %v650_v9 }
 0x1ba   : > { %2864 = vpush %v826_v11  ;;  %v1392_v20 = vadd.f32 1e-08, %v1391_v14  ;;  %v722_v42 = vmul.f32 %v2936_v28, %v721_v33  ;;  %v4352_v55 = vfloor.f32 %v3215_v47  ;;  %v4353_v56 = vfloor.f32 %v3218_v48 }
 0x1bb   : > { %v901_v18 = vrot.slane %v899_v15, 4  ;;  %v1068_v22 = vrot.slane %v1066_v17, 4  ;;  %v4354_v59 = vfloor.f32 %v3221_v49  ;;  %v3241_v60 = vmul.f32 %v3224_v50, %v650_v9 }
 0x1bc   : > { %v1394_v25 = vrot.slane %v1392_v20, 3  ;;  %v723_v40 = vadd.f32 %v2936_v28, %v722_v42  ;;  %v3258_v2 = vfloor.f32 %v1345_v54  ;;  %v1348_v3 = vmul.f32 8.0, %v4352_v55 }
 0x1bd   : > { %2866 = vpush %v901_v18  ;;  %v4351_v1 = vfloor.f32 %v3241_v60  ;;  %v1350_v6 = vmul.f32 8.0, %v4353_v56  ;;  %v1349_v7 = vmul.f32 8.0, %v4354_v59  ;;  %v3323_v29 = vadd.s32 64, %v3200_v32 }
 0x1be   : > { %2868 = vpush %v987_v21  ;;  %v3226_v51 = vsel %vm724_vm4, %v2936_v28, %v723_v40  ;;  %v1355_v13 = vmul.f32 8.0, %v3258_v2  ;;  %v1352_v14 = vsub.f32 %v3206_v43, %v1348_v3  ;;  %v3320_v40 = vadd.s32 56, %v3200_v32 }
 0x1bf   : > { %2870 = vpush %v993_v23  ;;  %v3233_v57 = vmul.f32 %v3226_v51, %v3206_v43  ;;  %v3237_v58 = vmul.f32 %v3226_v51, %v3208_v44  ;;  %v3245_v61 = vmul.f32 %v3226_v51, %v3210_v45  ;;  %v3249_v62 = vmul.f32 %v3226_v51, %v3224_v50 }
 0x1c0   : > { %2872 = vpush %v1068_v22  ;;  %v3252_v63 = vmul.f32 %v3226_v51, %v698_v52  ;;  %v3255_v0 = vmul.f32 %v3226_v51, %v699_v53  ;;  %v1347_v12 = vmul.f32 8.0, %v4351_v1  ;;  %v1354_v17 = vsub.f32 %v3208_v44, %v1350_v6 }
 0x1c1   : > { %2874 = vpush %v1362_v24  ;;  %v749_v4 = vfloor.f32 %v3233_v57  ;;  %v751_v5 = vfloor.f32 %v3237_v58  ;;  %v4358_v8 = vfloor.f32 %v3245_v61  ;;  %v4357_v9 = vfloor.f32 %v3249_v62 }
 0x1c2   : > { %2876 = vpush %v630_v26  ;;  %v4356_v10 = vfloor.f32 %v3252_v63  ;;  %v4355_v11 = vfloor.f32 %v3255_v0  ;;  %v1353_v18 = vsub.f32 %v3210_v45, %v1349_v7  ;;  %v2764_v22 = vadd.f32 -0.5, %v815_v31 }
 0x1c3   : > { %2878 = vpush %v1394_v25  ;;  %v3276_v15 = vmul.f32 11.0, %v749_v4  ;;  %v3278_v16 = vmul.f32 11.0, %v751_v5  ;;  %v3284_v19 = vmul.f32 11.0, %v4358_v8  ;;  %v3288_v20 = vmul.f32 11.0, %v4357_v9 }
 0x1c4   : > { %4399 = vst [vmem:[#allocation4_spill] sm:$0xff] %v3226_v51  ;;  %v774_v21 = vmul.f32 11.0, %v4356_v10  ;;  %v775_v23 = vmul.f32 11.0, %v4355_v11  ;;  %v1351_v24 = vsub.f32 %v3224_v50, %v1347_v12  ;;  %v3296_v25 = vsub.f32 %v3189_v34, %v1355_v13 }
 0x1c5   : > { %v2765_v26 = vadd.f32 -1.5, %v817_v39  ;;  %v3298_v27 = vadd.f32 -3.5, %v1352_v14  ;;  %v793_v28 = vsub.f32 %v3206_v43, %v3276_v15  ;;  %v795_v30 = vsub.f32 %v3208_v44, %v3278_v16  ;;  %4402 = vst [vmem:[#allocation7_spill] sm:$0xff] %v3320_v40 }
 0x1c6   : > { %4400 = vst [vmem:[#allocation5_spill] sm:$0xff] %v3296_v25  ;;  %v2769_v33 = vadd.f32 -3.5, %v1354_v17  ;;  %v3304_v31 = vadd.f32 -3.5, %v1353_v18  ;;  %v3310_v38 = vsub.f32 %v698_v52, %v774_v21  ;;  %v3312_v41 = vsub.f32 %v699_v53, %v775_v23 }
 0x1c7   : > { %v3314_v42 = vadd.f32 -3.5, %v1351_v24  ;;  %v3317_v43 = vadd.s32 48, %v3200_v32  ;;  %4403 = vst [vmem:[#allocation8_spill] sm:$0xff] %v3323_v29  ;;  %v3326_v46 = vadd.s32 72, %v3200_v32  ;;  %v3331_v53 = vadd.s32 80, %v3200_v32 }
 0x1c8   : > { %v3334_v54 = vadd.s32 88, %v3200_v32  ;;  %v3337_v57 = vadd.s32 96, %v3200_v32  ;;  %v3342_v3 = vadd.s32 104, %v3200_v32  ;;  %v3345_v6 = vadd.s32 112, %v3200_v32 }
 0x1c9   : > { %4401 = vst [vmem:[#allocation6_spill] sm:$0xff] %v3317_v43  ;;  %v3348_v7 = vadd.s32 120, %v3200_v32  ;;  %v3352_v12 = vadd.s32 128, %v3200_v32  ;;  %v3355_v13 = vadd.s32 136, %v3200_v32  ;;  %v3358_v14 = vadd.s32 144, %v3200_v32 }
 0x1ca   : > { %v3363_v18 = vadd.s32 152, %v3200_v32  ;;  %v3368_v23 = vadd.s32 160, %v3200_v32  ;;  %v3371_v24 = vadd.s32 168, %v3200_v32  ;;  %v4408_v29 = vfloor.f32 %v3245_v61 }
 0x1ea   : > { %s2863_s10 = spop %2862 }
 0x1eb   : > { %v822_v35 = vstv %s2863_s10  ;;  %s2865_s11 = spop %2864  ;;  %s3077_s10 = smov 124  }
 0x1ec   : > { %v824_v39 = vmul.f32 %v2764_v22, %v822_v35  ;;  %v828_v44 = vstv %s2865_s11  ;;  %s3078_s11 = smov 126  }
 0x1ee   : > { %v3328_v52 = vadd.f32 %v828_v44, %v824_v39  ;;  %s2867_s12 = spop %2866 }
 0x1ef   : > { %v3339_v58 = vstv %s2867_s12  ;;  %s2869_s13 = spop %2868  ;;  %s3079_s12 = smov 118  }
 0x1f0   : > { %2937 = vrcp.f32 %v3339_v58  ;;  %s2871_s14 = spop %2870  ;;  %v989_v15 = vstv %s2869_s13  ;;  %v832_v16 = vsub.f32 %v749_v4, %v3328_v52  ;;  %v834_v17 = vsub.f32 %v751_v5, %v3328_v52  ;;  %s3080_s13 = smov 123  }
 0x1f1   : > { %s2873_s15 = spop %2872  ;;  %v991_v21 = vmul.f32 %v2765_v26, %v989_v15  ;;  %v914_v35 = vand.u32 2147483647, %v3339_v58  ;;  %v995_v39 = vstv %s2871_s14  ;;  %v916_v5 = vand.u32 2147483648, %v3339_v58  ;;  %s3081_s14 = smov 122  }
 0x1f2   : > { %v3365_v22 = vstv %s2873_s15  ;;  %s2875_s16 = spop %2874  ;;  %vm910_vm5 = vweird.f32 %v3339_v58  ;;  %v854_v32 = vmul.f32 %v832_v16, %v832_v16  ;;  %v856_v4 = vmul.f32 %v834_v17, %v834_v17  ;;  %s3082_s15 = smov 116  }
 0x1f3   : > { %2939 = vrcp.f32 %v3365_v22  ;;  %s3375_s17 = spop %2876  ;;  %v3379_v26 = vadd.f32 %v995_v39, %v991_v21  ;;  %v1083_v44 = vand.u32 2147483648, %v3365_v22  ;;  %v3382_v15 = vstv %s2875_s16  ;;  %s3083_s16 = smov 119  }
 0x1f4   : > { %s2879_s18 = spop %2878  ;;  %v1081_v59 = vand.u32 2147483647, %v3365_v22  ;;  %v1367_v11 = vmul.f32 %v3298_v27, %v3382_v15  ;;  %v1369_v16 = vmul.f32 %v2769_v33, %v3382_v15  ;;  %vm3396_vm6 = vcmp.eq.f32.partialorder %v914_v35, 8.507059e+37 }
 0x1f5   : > { %v999_v34 = vsub.f32 %v793_v28, %v3379_v26  ;;  %v1001_v21 = vsub.f32 %v795_v30, %v3379_v26  ;;  %v3394_v10 = vstv %s2879_s18  ;;  %v917_v1 = vor.u32 1.1754944e-38, %v916_v5  ;;  %s3085_s18 = smov 115  }
 0x1f6   : > { %v2938_v56 = vpop.eup %2937  ;;  %vm1077_vm7 = vweird.f32 %v3365_v22  ;;  %v1084_v28 = vor.u32 1.1754944e-38, %v1083_v44  ;;  %v876_v9 = vsub.f32 0.0, %v854_v32  ;;  %2941 = vrcp.f32 %v3394_v10 }
 0x1f7   : > { %v906_v39 = vmul.f32 %v2938_v56, %v3339_v58  ;;  %v1021_v36 = vmul.f32 %v999_v34, %v999_v34  ;;  %vm3403_vm8 = vcmp.eq.f32.partialorder %v1081_v59, 8.507059e+37  ;;  %v878_v35 = vsub.f32 0.0, %v856_v4 }
 0x1f8   : > { %v1023_v8 = vmul.f32 %v1001_v21, %v1001_v21  ;;  %v3408_v37 = vstv %s3375_s17  ;;  %vm911_vm9 = vweird.f32 %v2938_v56  ;;  %v1407_v34 = vand.u32 2147483647, %v3394_v10  ;;  %s3084_s17 = smov 120  }
 0x1f9   : > { %v2940_v17 = vpop.eup %2939  ;;  %v907_v30 = vsub.f32 1.0, %v906_v39  ;;  %v1375_v44 = vadd.f32 %v3408_v37, %v1367_v11  ;;  %v1377_v39 = vadd.f32 %v3408_v37, %v1369_v16  ;;  %v833_v59 = vsub.f32 %v4408_v29, %v3328_v52  ;;  %vm912_vm11 = vmor %vm910_vm5, %vm911_vm9 }
 0x1fa   : > { %v1073_v27 = vmul.f32 %v2940_v17, %v3365_v22  ;;  %v4409_v4 = vsub.f32 %v3210_v45, %v3284_v19  ;;  %vm1078_vm10 = vweird.f32 %v2940_v17  ;;  %v1368_v11 = vmul.f32 %v3304_v31, %v3382_v15 }
 0x1fb   : > { %v908_v5 = vmul.f32 %v2938_v56, %v907_v30  ;;  %v1043_v30 = vsub.f32 0.0, %v1021_v36  ;;  %vm1403_vm12 = vweird.f32 %v3394_v10  ;;  %v855_v61 = vmul.f32 %v833_v59, %v833_v59  ;;  %vm1079_vm13 = vmor %vm1077_vm7, %vm1078_vm10 }
 0x1fc   : > { %v1074_v32 = vsub.f32 1.0, %v1073_v27  ;;  %v1000_v21 = vsub.f32 %v4409_v4, %v3379_v26  ;;  %v1045_v27 = vsub.f32 0.0, %v1023_v8  ;;  %v2942_v51 = vpop.eup %2941  ;;  %v1379_v45 = vsub.f32 %v3296_v25, %v1375_v44 }
 0x1fd   : > { %v909_v40 = vadd.f32 %v2938_v56, %v908_v5  ;;  %v1381_v19 = vsub.f32 %v3296_v25, %v1377_v39  ;;  %v1376_v36 = vadd.f32 %v3408_v37, %v1368_v11  ;;  %v1399_v5 = vmul.f32 %v2942_v51, %v3394_v10 }
 0x1fe   : > { %v1075_v16 = vmul.f32 %v2940_v17, %v1074_v32  ;;  %v1022_v29 = vmul.f32 %v1000_v21, %v1000_v21  ;;  %v1409_v8 = vand.u32 2147483648, %v3394_v10  ;;  %vm1404_vm14 = vweird.f32 %v2942_v51 }
 0x1ff   : > { %v913_v43 = vsel %vm912_vm11, %v2938_v56, %v909_v40  ;;  %v877_v44 = vsub.f32 0.0, %v855_v61  ;;  %v1400_v32 = vsub.f32 1.0, %v1399_v5  ;;  %vm3450_vm15 = vcmp.eq.f32.partialorder %v1407_v34, 8.507059e+37  ;;  %vm1405_vm2 = vmor %vm1403_vm12, %vm1404_vm14 }
 0x200   : > { %v3430_v31 = vsel %vm3396_vm6, %v917_v1, %v913_v43  ;;  %v1076_v58 = vadd.f32 %v2940_v17, %v1075_v16  ;;  %v1044_v55 = vsub.f32 0.0, %v1022_v29  ;;  %v1380_v1 = vsub.f32 %v3296_v25, %v1376_v36 }
 0x201   : > { %v920_v56 = vmul.f32 %v3430_v31, %v876_v9  ;;  %v922_v40 = vmul.f32 %v3430_v31, %v878_v35  ;;  %v921_v22 = vmul.f32 %v3430_v31, %v877_v44  ;;  %v1401_v35 = vmul.f32 %v2942_v51, %v1400_v32 }
 0x202   : > { %v1080_v39 = vsel %vm1079_vm13, %v2940_v17, %v1076_v58  ;;  %v3448_v17 = vmul.f32 %v1379_v45, %v1379_v45  ;;  %v1385_v61 = vmul.f32 %v1381_v19, %v1381_v19  ;;  %v1410_v36 = vor.u32 1.1754944e-38, %v1409_v8 }
 0x203   : > { %v3442_v43 = vsel %vm3403_vm8, %v1084_v28, %v1080_v39  ;;  %v943_v59 = vmul.f32 1.442695, %v920_v56  ;;  %v947_v4 = vmul.f32 1.442695, %v922_v40  ;;  %v945_v33 = vmul.f32 1.442695, %v921_v22 }
 0x204   : > { %v1087_v21 = vmul.f32 %v3442_v43, %v1043_v30  ;;  %v1089_v9 = vmul.f32 %v3442_v43, %v1045_v27  ;;  %v1088_v11 = vmul.f32 %v3442_v43, %v1044_v55  ;;  %v1384_v28 = vmul.f32 %v1380_v1, %v1380_v1 }
 0x205   : > { %2943 = vpow2.f32 %v943_v59  ;;  %v1402_v29 = vadd.f32 %v2942_v51, %v1401_v35  ;;  %v4412_v27 = vfloor.f32 %v3249_v62  ;;  %v4413_v56 = vfloor.f32 %v3252_v63 }
 0x206   : > { %2945 = vpow2.f32 %v947_v4  ;;  %v1110_v58 = vmul.f32 1.442695, %v1087_v21  ;;  %v1114_v30 = vmul.f32 1.442695, %v1089_v9  ;;  %v1388_v5 = vsub.f32 0.0, %v1384_v28 }
 0x207   : > { %v831_v34 = vsub.f32 %v4412_v27, %v3328_v52  ;;  %v1406_v45 = vsel %vm1405_vm2, %v2942_v51, %v1402_v29  ;;  %v835_v19 = vsub.f32 %v4413_v56, %v3328_v52  ;;  %v4414_v8 = vfloor.f32 %v3255_v0 }
 0x208   : > { %v3468_v44 = vsel %vm3450_vm15, %v1410_v36, %v1406_v45  ;;  %2947 = vpow2.f32 %v945_v33  ;;  %v4415_v62 = vsub.f32 %v3224_v50, %v3288_v20  ;;  %v1112_v39 = vmul.f32 1.442695, %v1088_v11 }
 0x209   : > { %v836_v40 = vsub.f32 %v4414_v8, %v3328_v52  ;;  %v853_v10 = vmul.f32 %v831_v34, %v831_v34  ;;  %v1414_v32 = vmul.f32 %v3468_v44, %v1388_v5  ;;  %v857_v63 = vmul.f32 %v835_v19, %v835_v19 }
 0x20a   : > { %v998_v51 = vsub.f32 %v4415_v62, %v3379_v26  ;;  %v1002_v0 = vsub.f32 %v3310_v38, %v3379_v26  ;;  %v1003_v59 = vsub.f32 %v3312_v41, %v3379_v26  ;;  %2949 = vpow2.f32 %v1110_v58 }
 0x20b   : > { %v858_v55 = vmul.f32 %v836_v40, %v836_v40  ;;  %v875_v1 = vsub.f32 0.0, %v853_v10  ;;  %v3479_v22 = vpop.eup %2943  ;;  %v1420_v21 = vmul.f32 1.442695, %v1414_v32  ;;  %v879_v9 = vsub.f32 0.0, %v857_v63 }
 0x20c   : > { %v1020_v4 = vmul.f32 %v998_v51, %v998_v51  ;;  %4416 = vst [vmem:[#allocation9_spill] sm:$0xff] %v3479_v22  ;;  %v3481_v20 = vpop.eup %2945  ;;  %2951 = vpow2.f32 %v1114_v30  ;;  %v1024_v11 = vmul.f32 %v1002_v0, %v1002_v0  ;;  %v1025_v16 = vmul.f32 %v1003_v59, %v1003_v59 }
 0x20d   : > { %v880_v50 = vsub.f32 0.0, %v858_v55  ;;  %4417 = vst [vmem:[#allocation10_spill] sm:$0xff] %v3481_v20  ;;  %v919_v35 = vmul.f32 %v3430_v31, %v875_v1  ;;  %v1387_v33 = vsub.f32 0.0, %v3448_v17  ;;  %2953 = vpow2.f32 %v1420_v21 }
 0x20e   : > { %v923_v38 = vmul.f32 %v3430_v31, %v879_v9  ;;  %v3487_v28 = vpop.eup %2947  ;;  %2955 = vpow2.f32 %v1112_v39  ;;  %v1042_v36 = vsub.f32 0.0, %v1020_v4  ;;  %v1046_v58 = vsub.f32 0.0, %v1024_v11 }
 0x20f   : > { %v924_v41 = vmul.f32 %v3430_v31, %v880_v50  ;;  %4418 = vst [vmem:[#allocation11_spill] sm:$0xff] %v3487_v28  ;;  %v941_v29 = vmul.f32 1.442695, %v919_v35  ;;  %v1389_v27 = vsub.f32 0.0, %v1385_v61  ;;  %v1047_v45 = vsub.f32 0.0, %v1025_v16 }
 0x210   : > { %v949_v34 = vmul.f32 1.442695, %v923_v38  ;;  %v4419_v5 = vfloor.f32 %v3221_v49  ;;  %v1086_v56 = vmul.f32 %v3442_v43, %v1042_v36  ;;  %v1090_v19 = vmul.f32 %v3442_v43, %v1046_v58  ;;  %v3498_v8 = vpop.eup %2949 }
 0x211   : > { %v951_v30 = vmul.f32 1.442695, %v924_v41  ;;  %2957 = vpow2.f32 %v941_v29  ;;  %4422 = vst [vmem:[#allocation12_spill] sm:$0xff] %v3498_v8  ;;  %vm1432_vm5 = vcmask 261120   ;;  %v1091_v61 = vmul.f32 %v3442_v43, %v1047_v45 }
 0x212   : > { %vm3492_vm4 = vcmp.eq.f32.partialorder %v4419_v5, %v3258_v2  ;;  %2959 = vpow2.f32 %v949_v34  ;;  %v1366_v40 = vmul.f32 %v3314_v42, %v3382_v15  ;;  %v3503_v10 = vpop.eup %2951  ;;  %v1108_v49 = vmul.f32 1.442695, %v1086_v56 }
 0x213   : > { %4423 = vst [vmem:[#allocation13_spill] sm:$0xff] %v3503_v10  ;;  %v1116_v62 = vmul.f32 1.442695, %v1090_v19  ;;  %v1154_v51 = vsel %vm1152_vm3, %v3479_v22, 0.0  ;;  %v1415_v39 = vmul.f32 %v3468_v44, %v1389_v27  ;;  %v2954_v32 = vpop.eup %2953  ;;  %2961 = vpow2.f32 %v951_v30 }
 0x214   : > { %v1118_v63 = vmul.f32 1.442695, %v1091_v61  ;;  %v1374_v55 = vadd.f32 %v3408_v37, %v1366_v40  ;;  %v1413_v1 = vmul.f32 %v3468_v44, %v1387_v33  ;;  %v3510_v0 = vpop.eup %2955  ;;  %v1158_v42 = vsel %vm1152_vm3, %v3481_v20, 0.0 }
 0x215   : > { %4424 = vst [vmem:[#allocation14_spill] sm:$0xff] %v3510_v0  ;;  %v3516_v15 = vsel %vm3492_vm4, %v2954_v32, 0.0  ;;  %2963 = vpow2.f32 %v1108_v49  ;;  %v1422_v59 = vmul.f32 1.442695, %v1415_v39  ;;  %v1224_v50 = vsel %vm1152_vm3, %v3503_v10, 0.0 }
 0x216   : > { %4425 = vst [vmem:[#allocation15_spill] sm:$0xff] %v3516_v15  ;;  %v1439_v4 = vsel %vm1432_vm5, %v3516_v15, 0.0  ;;  %2965 = vpow2.f32 %v1116_v62  ;;  %v1378_v21 = vsub.f32 %v3296_v25, %v1374_v55  ;;  %v1418_v37 = vmul.f32 1.442695, %v1413_v1 }
 0x217   : > { %v3521_v9 = vpop.eup %2957  ;;  %v1156_v35 = vsel %vm1152_vm3, %v3487_v28, 0.0  ;;  %1440 = vadd.xlane.f32.xlu2 %v1439_v4  ;;  %2967 = vpow2.f32 %v1118_v63  ;;  %v1220_v11 = vsel %vm1152_vm3, %v3498_v8, 0.0  ;;  %v1222_v33 = vsel %vm1152_vm3, %v3510_v0, 0.0 }
 0x218   : > { %4426 = vst [vmem:[#allocation16_spill] sm:$0xff] %v3521_v9  ;;  %v3529_v16 = vpop.eup %2959  ;;  %v1153_v38 = vsel %vm1152_vm3, %v3521_v9, 0.0  ;;  %v1382_v41 = vmul.f32 %v1378_v21, %v1378_v21  ;;  %2969 = vpow2.f32 %v1422_v59  ;;  %v4428_v36 = vfloor.f32 %v3218_v48 }
 0x219   : > { %4427 = vst [vmem:[#allocation17_spill] sm:$0xff] %v3529_v16  ;;  %v1155_v29 = vadd.f32 %v1154_v51, %v1153_v38  ;;  %2971 = vpow2.f32 %v1418_v37  ;;  %v4431_v27 = vfloor.f32 %v3215_v47  ;;  %v3549_v30 = vpop.eup %2961  ;;  %v4377_v5 = vcvt.s32.f32 %v3326_v46 }
 0x21a   : > { %vm3538_vm6 = vcmp.eq.f32.partialorder %v4428_v36, %v3258_v2  ;;  %v1386_v45 = vsub.f32 0.0, %v1382_v41  ;;  %v4376_v17 = vcvt.s32.f32 %v3331_v53  ;;  %v4374_v48 = vcvt.s32.f32 %v3334_v54 }
 0x21b   : > { %vm3545_vm7 = vcmp.eq.f32.partialorder %v4431_v27, %v3258_v2  ;;  %v3554_v56 = vpop.eup %2963  ;;  %v1157_v19 = vadd.f32 %v1156_v35, %v1155_v29  ;;  %v1160_v61 = vsel %vm1152_vm3, %v3529_v16, 0.0  ;;  %v4372_v47 = vcvt.s32.f32 %v3337_v57 }
 0x21c   : > { %4434 = vst [vmem:[#allocation18_spill] sm:$0xff] %v3554_v56  ;;  %v4368_v40 = vcvt.s32.f32 %v3342_v3  ;;  %v3560_v49 = vpop.eup %2965  ;;  %v1219_v62 = vsel %vm1152_vm3, %v3554_v56, 0.0  ;;  %v1412_v51 = vmul.f32 %v3468_v44, %v1386_v45  ;;  %v4436_v39 = vfloor.f32 %v3241_v60  ;;  %v4443_v45 = vld [vmem:[#allocation4_spill] sm:$0xff] }
 0x21d   : > { %4435 = vst [vmem:[#allocation19_spill] sm:$0xff] %v3560_v49  ;;  %v4369_v63 = vcvt.s32.f32 %v3345_v6  ;;  %v4370_v55 = vcvt.s32.f32 %v3348_v7  ;;  %v3574_v1 = vpop.eup %2967  ;;  %v1159_v59 = vadd.f32 %v1158_v42, %v1157_v19  ;;  %v1221_v4 = vadd.f32 %v1220_v11, %v1219_v62  ;;  %v4441_v11 = vld [vmem:[#allocation6_spill] sm:$0xff] }
 0x21e   : > { %vm3568_vm8 = vcmp.eq.f32.partialorder %v4436_v39, %v3258_v2  ;;  %4439 = vst [vmem:[#allocation20_spill] sm:$0xff] %v3574_v1  ;;  %v4371_v21 = vcvt.s32.f32 %v3352_v12  ;;  %v4373_v37 = vcvt.s32.f32 %v3355_v13  ;;  %v2970_v44 = vpop.eup %2969  ;;  %v1416_v35 = vmul.f32 1.442695, %v1412_v51 }
 0x21f   : > { %v4375_v60 = vcvt.s32.f32 %v3358_v14  ;;  %v4378_v2 = vcvt.s32.f32 %v3363_v18  ;;  %v4382_v38 = vcvt.s32.f32 %v3368_v23  ;;  %v2972_v41 = vpop.eup %2971  ;;  %v1223_v29 = vadd.f32 %v1222_v33, %v1221_v4  ;;  %v4445_v33 = vld [vmem:[#allocation7_spill] sm:$0xff] }
 0x220   : > { %v3583_v36 = vsel %vm3538_vm6, %v2970_v44, 0.0  ;;  %v4442_v27 = vcvt.s32.f32 %v4441_v11  ;;  %2973 = vpow2.f32 %v1416_v35  ;;  %v3595_v51 = vsel %vm3545_vm7, %v2972_v41, 0.0 }
 0x221   : > { %4440 = vst [vmem:[#allocation21_spill] sm:$0xff] %v3583_v36  ;;  %v1442_v62 = vsel %vm1432_vm5, %v3583_v36, 0.0  ;;  %v4446_v39 = vcvt.s32.f32 %v4445_v33  ;;  %v3602_v4 = vadd.f32 %v1160_v61, %v1159_v59  ;;  %v3604_v44 = vadd.f32 %v1224_v50, %v1223_v29 }
 0x222   : > { %v3589_v19 = vmul.f32 %v4443_v45, %v4442_v27  ;;  %4444 = vst [vmem:[#allocation6_spill] sm:$0xff] %v3595_v51  ;;  %1443 = vadd.xlane.f32.xlu2 %v1442_v62  ;;  %v4449_v27 = vld [vmem:[#allocation8_spill] sm:$0xff]  ;;  %v3614_v34 = vmul.f32 %v4443_v45, %v4377_v5  ;;  %v1436_v41 = vsel %vm1432_vm5, %v3595_v51, 0.0  ;;  %v3621_v61 = vmul.f32 %v4443_v45, %v4376_v17 }
 0x223   : > { %v3600_v58 = vmul.f32 %v4443_v45, %v4446_v39  ;;  %4447 = vst [vmem:[#allocation7_spill] sm:$0xff] %v3602_v4  ;;  %v4450_v42 = vcvt.s32.f32 %v4449_v27  ;;  %v3626_v50 = vmul.f32 %v4443_v45, %v4374_v48  ;;  %v3631_v59 = vmul.f32 %v4443_v45, %v4372_v47 }
 0x224   : > { %4448 = vst [vmem:[#allocation22_spill] sm:$0xff] %v3604_v44  ;;  %v3636_v29 = vmul.f32 %v4443_v45, %v4368_v40  ;;  %v3646_v62 = vmul.f32 %v4443_v45, %v4370_v55  ;;  %v3651_v39 = vmul.f32 %v4443_v45, %v4371_v21  ;;  %v3656_v40 = vmul.f32 %v4443_v45, %v4373_v37 }
 0x225   : > { %v3609_v35 = vmul.f32 %v4443_v45, %v4450_v42  ;;  %v3641_v42 = vmul.f32 %v4443_v45, %v4369_v63  ;;  %v3661_v63 = vmul.f32 %v4443_v45, %v4375_v60  ;;  %v3666_v55 = vmul.f32 %v4443_v45, %v4378_v2 }
 0x226   : > { %v3671_v21 = vmul.f32 %v4443_v45, %v4382_v38  ;;  %v4451_v47 = vcvt.s32.f32 %v3371_v24  ;;  %v754_v48 = vfloor.f32 %v3589_v19  ;;  %v755_v60 = vfloor.f32 %v3600_v58  ;;  %v2974_v5 = vpop.eup %2973 }
 0x227   : > { %v756_v17 = vfloor.f32 %v3609_v35  ;;  %v757_v2 = vfloor.f32 %v3614_v34  ;;  %v758_v25 = vfloor.f32 %v3621_v61  ;;  %v759_v36 = vfloor.f32 %v3626_v50 }
 0x228   : > { %v3676_v37 = vmul.f32 %v4443_v45, %v4451_v47  ;;  %v760_v38 = vfloor.f32 %v3631_v59  ;;  %v3687_v15 = vsel %vm3568_vm8, %v2974_v5, 0.0  ;;  %v761_v47 = vfloor.f32 %v3636_v29 }
 0x229   : > { %4452 = vst [vmem:[#allocation8_spill] sm:$0xff] %v3687_v15  ;;  %v762_v19 = vfloor.f32 %v3641_v42  ;;  %v763_v58 = vfloor.f32 %v3646_v62  ;;  %v1433_v35 = vsel %vm1432_vm5, %v3687_v15, 0.0  ;;  %v764_v34 = vfloor.f32 %v3651_v39 }
 0x22a   : > { %v765_v61 = vfloor.f32 %v3656_v40  ;;  %v766_v50 = vfloor.f32 %v3661_v63  ;;  %1434 = vadd.xlane.f32.xlu1 %v1433_v35  ;;  %v767_v32 = vfloor.f32 %v3666_v55  ;;  %v768_v5 = vfloor.f32 %v3671_v21 }
 0x22b   : > { %v769_v59 = vfloor.f32 %v3676_v37  ;;  %v776_v29 = vmul.f32 11.0, %v754_v48  ;;  %v777_v42 = vmul.f32 11.0, %v755_v60  ;;  %v778_v51 = vmul.f32 11.0, %v756_v17 }
 0x22c   : > { %v779_v62 = vmul.f32 11.0, %v757_v2  ;;  %v780_v56 = vmul.f32 11.0, %v758_v25  ;;  %v781_v9 = vmul.f32 11.0, %v759_v36  ;;  %v782_v15 = vmul.f32 11.0, %v760_v38 }
 0x22d   : > { %v783_v8 = vmul.f32 11.0, %v761_v47  ;;  %v784_v39 = vmul.f32 11.0, %v762_v19  ;;  %v785_v22 = vmul.f32 11.0, %v763_v58  ;;  %v786_v40 = vmul.f32 11.0, %v764_v34 }
 0x22e   : > { %v787_v0 = vmul.f32 11.0, %v765_v61  ;;  %v788_v63 = vmul.f32 11.0, %v766_v50  ;;  %v789_v35 = vmul.f32 11.0, %v767_v32  ;;  %v790_v28 = vmul.f32 11.0, %v768_v5 }
 0x22f   : > { %v791_v55 = vmul.f32 11.0, %v769_v59  ;;  %v4453_v21 = vcvt.s32.f32 %v4441_v11  ;;  %v4454_v37 = vcvt.s32.f32 %v4445_v33  ;;  %v4455_v16 = vcvt.s32.f32 %v4449_v27 }
 0x230   : > { %v4456_v44 = vcvt.s32.f32 %v3326_v46  ;;  %v4457_v4 = vcvt.s32.f32 %v3331_v53  ;;  %v4458_v11 = vcvt.s32.f32 %v3334_v54  ;;  %v4459_v33 = vcvt.s32.f32 %v3337_v57 }
 0x231   : > { %v3702_v10 = vsub.f32 %v4453_v21, %v776_v29  ;;  %v3706_v20 = vsub.f32 %v4454_v37, %v777_v42  ;;  %v3710_v45 = vsub.f32 %v4455_v16, %v778_v51  ;;  %v4460_v27 = vcvt.s32.f32 %v3342_v3 }
 0x232   : > { %v3714_v49 = vsub.f32 %v4456_v44, %v779_v62  ;;  %v3718_v1 = vsub.f32 %v4457_v4, %v780_v56  ;;  %v3722_v29 = vsub.f32 %v4458_v11, %v781_v9  ;;  %v3726_v42 = vsub.f32 %v4459_v33, %v782_v15  ;;  %1437 = vadd.xlane.f32.xlu1 %v1436_v41 }
 0x233   : > { %v3730_v16 = vsub.f32 %v4460_v27, %v783_v8  ;;  %v4461_v46 = vcvt.s32.f32 %v3345_v6  ;;  %v4462_v53 = vcvt.s32.f32 %v3348_v7  ;;  %v4463_v54 = vcvt.s32.f32 %v3352_v12 }
 0x234   : > { %v4464_v57 = vcvt.s32.f32 %v3355_v13  ;;  %v4465_v3 = vcvt.s32.f32 %v3358_v14  ;;  %v4466_v6 = vcvt.s32.f32 %v3363_v18  ;;  %v4467_v7 = vcvt.s32.f32 %v3368_v23 }
 0x235   : > { %v3734_v51 = vsub.f32 %v4461_v46, %v784_v39  ;;  %v3738_v56 = vsub.f32 %v4462_v53, %v785_v22  ;;  %v3742_v9 = vsub.f32 %v4463_v54, %v786_v40  ;;  %v4468_v12 = vcvt.s32.f32 %v3371_v24 }
 0x236   : > { %v3746_v15 = vsub.f32 %v4464_v57, %v787_v0  ;;  %v3750_v8 = vsub.f32 %v4465_v3, %v788_v63  ;;  %v3754_v4 = vsub.f32 %v4466_v6, %v789_v35  ;;  %v3758_v22 = vsub.f32 %v4467_v7, %v790_v28 }
 0x237   : > { %v3762_v44 = vsub.f32 %v4468_v12, %v791_v55  ;;  %v837_v13 = vsub.f32 %v754_v48, %v3328_v52  ;;  %v838_v0 = vsub.f32 %v755_v60, %v3328_v52  ;;  %v839_v14 = vsub.f32 %v756_v17, %v3328_v52 }
 0x238   : > { %v840_v41 = vsub.f32 %v757_v2, %v3328_v52  ;;  %v841_v18 = vsub.f32 %v758_v25, %v3328_v52  ;;  %v842_v62 = vsub.f32 %v759_v36, %v3328_v52  ;;  %v843_v23 = vsub.f32 %v760_v38, %v3328_v52 }
 0x239   : > { %v844_v28 = vsub.f32 %v761_v47, %v3328_v52  ;;  %v845_v24 = vsub.f32 %v762_v19, %v3328_v52  ;;  %v846_v39 = vsub.f32 %v763_v58, %v3328_v52  ;;  %v847_v48 = vsub.f32 %v764_v34, %v3328_v52 }
 0x23a   : > { %v848_v60 = vsub.f32 %v765_v61, %v3328_v52  ;;  %v849_v17 = vsub.f32 %v766_v50, %v3328_v52  ;;  %v850_v2 = vsub.f32 %v767_v32, %v3328_v52  ;;  %v851_v25 = vsub.f32 %v768_v5, %v3328_v52 }
 0x23b   : > { %v852_v36 = vsub.f32 %v769_v59, %v3328_v52  ;;  %v859_v40 = vmul.f32 %v837_v13, %v837_v13  ;;  %v860_v38 = vmul.f32 %v838_v0, %v838_v0  ;;  %v861_v63 = vmul.f32 %v839_v14, %v839_v14 }
 0x23c   : > { %v862_v47 = vmul.f32 %v840_v41, %v840_v41  ;;  %v863_v35 = vmul.f32 %v841_v18, %v841_v18  ;;  %v864_v19 = vmul.f32 %v842_v62, %v842_v62  ;;  %v865_v55 = vmul.f32 %v843_v23, %v843_v23 }
 0x23d   : > { %v866_v58 = vmul.f32 %v844_v28, %v844_v28  ;;  %v867_v21 = vmul.f32 %v845_v24, %v845_v24  ;;  %v868_v34 = vmul.f32 %v846_v39, %v846_v39  ;;  %v869_v37 = vmul.f32 %v847_v48, %v847_v48 }
 0x23e   : > { %v870_v61 = vmul.f32 %v848_v60, %v848_v60  ;;  %v871_v11 = vmul.f32 %v849_v17, %v849_v17  ;;  %v872_v50 = vmul.f32 %v850_v2, %v850_v2  ;;  %v873_v33 = vmul.f32 %v851_v25, %v851_v25 }
 0x23f   : > { %v874_v32 = vmul.f32 %v852_v36, %v852_v36  ;;  %v881_v27 = vsub.f32 0.0, %v859_v40  ;;  %v882_v5 = vsub.f32 0.0, %v860_v38  ;;  %v883_v46 = vsub.f32 0.0, %v861_v63 }
 0x240   : > { %v884_v52 = vsub.f32 0.0, %v862_v47  ;;  %v885_v59 = vsub.f32 0.0, %v863_v35  ;;  %v886_v53 = vsub.f32 0.0, %v864_v19  ;;  %v887_v54 = vsub.f32 0.0, %v865_v55 }
 0x241   : > { %v888_v57 = vsub.f32 0.0, %v866_v58  ;;  %v889_v3 = vsub.f32 0.0, %v867_v21  ;;  %v890_v6 = vsub.f32 0.0, %v868_v34  ;;  %v891_v7 = vsub.f32 0.0, %v869_v37 }
 0x242   : > { %v892_v12 = vsub.f32 0.0, %v870_v61  ;;  %v893_v13 = vsub.f32 0.0, %v871_v11  ;;  %v894_v0 = vsub.f32 0.0, %v872_v50  ;;  %v895_v14 = vsub.f32 0.0, %v873_v33 }
 0x243   : > { %v896_v41 = vsub.f32 0.0, %v874_v32  ;;  %v925_v18 = vmul.f32 %v3430_v31, %v881_v27  ;;  %v926_v62 = vmul.f32 %v3430_v31, %v882_v5  ;;  %v927_v23 = vmul.f32 %v3430_v31, %v883_v46 }
 0x244   : > { %v928_v28 = vmul.f32 %v3430_v31, %v884_v52  ;;  %v929_v24 = vmul.f32 %v3430_v31, %v885_v59  ;;  %v930_v39 = vmul.f32 %v3430_v31, %v886_v53  ;;  %v931_v48 = vmul.f32 %v3430_v31, %v887_v54 }
 0x245   : > { %v932_v60 = vmul.f32 %v3430_v31, %v888_v57  ;;  %v933_v17 = vmul.f32 %v3430_v31, %v889_v3  ;;  %v934_v2 = vmul.f32 %v3430_v31, %v890_v6  ;;  %v935_v25 = vmul.f32 %v3430_v31, %v891_v7 }
 0x246   : > { %v936_v36 = vmul.f32 %v3430_v31, %v892_v12  ;;  %v937_v40 = vmul.f32 %v3430_v31, %v893_v13  ;;  %v938_v38 = vmul.f32 %v3430_v31, %v894_v0  ;;  %v939_v63 = vmul.f32 %v3430_v31, %v895_v14 }
 0x247   : > { %v940_v47 = vmul.f32 %v3430_v31, %v896_v41  ;;  %v953_v35 = vmul.f32 1.442695, %v925_v18  ;;  %v955_v19 = vmul.f32 1.442695, %v926_v62  ;;  %v957_v55 = vmul.f32 1.442695, %v927_v23 }
 0x248   : > { %v959_v58 = vmul.f32 1.442695, %v928_v28  ;;  %v1004_v21 = vsub.f32 %v3702_v10, %v3379_v26  ;;  %v961_v34 = vmul.f32 1.442695, %v929_v24  ;;  %v963_v37 = vmul.f32 1.442695, %v930_v39 }
 0x249   : > { %2975 = vpow2.f32 %v953_v35  ;;  %v965_v61 = vmul.f32 1.442695, %v931_v48  ;;  %v967_v11 = vmul.f32 1.442695, %v932_v60  ;;  %v969_v50 = vmul.f32 1.442695, %v933_v17 }
 0x24a   : > { %2977 = vpow2.f32 %v955_v19  ;;  %v971_v33 = vmul.f32 1.442695, %v934_v2  ;;  %v973_v32 = vmul.f32 1.442695, %v935_v25  ;;  %v975_v27 = vmul.f32 1.442695, %v936_v36 }
 0x24b   : > { %2979 = vpow2.f32 %v957_v55  ;;  %v977_v5 = vmul.f32 1.442695, %v937_v40  ;;  %v979_v31 = vmul.f32 1.442695, %v938_v38  ;;  %v981_v46 = vmul.f32 1.442695, %v939_v63 }
 0x24c   : > { %2981 = vpow2.f32 %v959_v58  ;;  %v983_v52 = vmul.f32 1.442695, %v940_v47  ;;  %v1005_v10 = vsub.f32 %v3706_v20, %v3379_v26  ;;  %v1006_v59 = vsub.f32 %v3710_v45, %v3379_v26 }
 0x24d   : > { %2983 = vpow2.f32 %v961_v34  ;;  %v1007_v53 = vsub.f32 %v3714_v49, %v3379_v26  ;;  %v1008_v54 = vsub.f32 %v3718_v1, %v3379_v26  ;;  %v1009_v57 = vsub.f32 %v3722_v29, %v3379_v26 }
 0x24e   : > { %2985 = vpow2.f32 %v963_v37  ;;  %v1010_v3 = vsub.f32 %v3726_v42, %v3379_v26  ;;  %v1011_v20 = vsub.f32 %v3730_v16, %v3379_v26  ;;  %v1012_v45 = vsub.f32 %v3734_v51, %v3379_v26 }
 0x24f   : > { %v3810_v6 = vpop.eup %2975  ;;  %2987 = vpow2.f32 %v965_v61  ;;  %v1013_v49 = vsub.f32 %v3738_v56, %v3379_v26  ;;  %v1014_v1 = vsub.f32 %v3742_v9, %v3379_v26  ;;  %v1015_v29 = vsub.f32 %v3746_v15, %v3379_v26 }
 0x250   : > { %v3818_v7 = vpop.eup %2977  ;;  %2989 = vpow2.f32 %v967_v11  ;;  %v1016_v42 = vsub.f32 %v3750_v8, %v3379_v26  ;;  %v1017_v16 = vsub.f32 %v3754_v4, %v3379_v26  ;;  %v1018_v51 = vsub.f32 %v3758_v22, %v3379_v26 }
 0x251   : > { %v3826_v12 = vpop.eup %2979  ;;  %2991 = vpow2.f32 %v969_v50  ;;  %v1019_v56 = vsub.f32 %v3762_v44, %v3379_v26  ;;  %v1026_v9 = vmul.f32 %v1004_v21, %v1004_v21  ;;  %v1027_v15 = vmul.f32 %v1005_v10, %v1005_v10 }
 0x252   : > { %v3834_v13 = vpop.eup %2981  ;;  %2993 = vpow2.f32 %v971_v33  ;;  %v1028_v0 = vmul.f32 %v1006_v59, %v1006_v59  ;;  %v1029_v8 = vmul.f32 %v1007_v53, %v1007_v53  ;;  %v1030_v41 = vmul.f32 %v1008_v54, %v1008_v54 }
 0x253   : > { %v3836_v14 = vpop.eup %2983  ;;  %2995 = vpow2.f32 %v973_v32  ;;  %v1031_v18 = vmul.f32 %v1009_v57, %v1009_v57  ;;  %v1032_v4 = vmul.f32 %v1010_v3, %v1010_v3  ;;  %v1033_v22 = vmul.f32 %v1011_v20, %v1011_v20 }
 0x254   : > { %v3838_v62 = vpop.eup %2985  ;;  %2997 = vpow2.f32 %v975_v27  ;;  %v1034_v23 = vmul.f32 %v1012_v45, %v1012_v45  ;;  %v1035_v26 = vmul.f32 %v1013_v49, %v1013_v49  ;;  %v1036_v44 = vmul.f32 %v1014_v1, %v1014_v1 }
 0x255   : > { %v3840_v28 = vpop.eup %2987  ;;  %2999 = vpow2.f32 %v977_v5  ;;  %v1037_v24 = vmul.f32 %v1015_v29, %v1015_v29  ;;  %v1038_v48 = vmul.f32 %v1016_v42, %v1016_v42  ;;  %v1039_v60 = vmul.f32 %v1017_v16, %v1017_v16 }
 0x256   : > { %v3842_v39 = vpop.eup %2989  ;;  %3001 = vpow2.f32 %v979_v31  ;;  %v1040_v17 = vmul.f32 %v1018_v51, %v1018_v51  ;;  %v1041_v25 = vmul.f32 %v1019_v56, %v1019_v56  ;;  %v1048_v36 = vsub.f32 0.0, %v1026_v9 }
 0x257   : > { %v3844_v2 = vpop.eup %2991  ;;  %3003 = vpow2.f32 %v981_v46  ;;  %v1049_v40 = vsub.f32 0.0, %v1027_v15  ;;  %v1050_v63 = vsub.f32 0.0, %v1028_v0  ;;  %v1051_v47 = vsub.f32 0.0, %v1029_v8 }
 0x258   : > { %v3846_v38 = vpop.eup %2993  ;;  %3005 = vpow2.f32 %v983_v52  ;;  %v1052_v35 = vsub.f32 0.0, %v1030_v41  ;;  %v1053_v55 = vsub.f32 0.0, %v1031_v18  ;;  %v1054_v58 = vsub.f32 0.0, %v1032_v4  ;;  %v4469_v4 = vld [vmem:[#allocation20_spill] sm:$0xff] }
 0x259   : > { %v3848_v19 = vpop.eup %2995  ;;  %v1055_v21 = vsub.f32 0.0, %v1033_v22  ;;  %v1056_v34 = vsub.f32 0.0, %v1034_v23  ;;  %v1057_v61 = vsub.f32 0.0, %v1035_v26  ;;  %v1058_v11 = vsub.f32 0.0, %v1036_v44  ;;  %v4470_v44 = vld [vmem:[#allocation7_spill] sm:$0xff] }
 0x25a   : > { %v3850_v37 = vpop.eup %2997  ;;  %v1059_v50 = vsub.f32 0.0, %v1037_v24  ;;  %v1060_v33 = vsub.f32 0.0, %v1038_v48  ;;  %v1061_v27 = vsub.f32 0.0, %v1039_v60  ;;  %v1062_v5 = vsub.f32 0.0, %v1040_v17  ;;  %v4471_v60 = vld [vmem:[#allocation19_spill] sm:$0xff] }
 0x25b   : > { %v3852_v32 = vpop.eup %2999  ;;  %v1063_v31 = vsub.f32 0.0, %v1041_v25  ;;  %v1092_v46 = vmul.f32 %v3442_v43, %v1048_v36  ;;  %v1093_v10 = vmul.f32 %v3442_v43, %v1049_v40  ;;  %v1094_v59 = vmul.f32 %v3442_v43, %v1050_v63  ;;  %v4472_v25 = vld [vmem:[#allocation22_spill] sm:$0xff] }
 0x25c   : > { %v3855_v52 = vpop.eup %3001  ;;  %v1095_v53 = vmul.f32 %v3442_v43, %v1051_v47  ;;  %v1096_v54 = vmul.f32 %v3442_v43, %v1052_v35  ;;  %v1097_v3 = vmul.f32 %v3442_v43, %v1053_v55  ;;  %v1098_v20 = vmul.f32 %v3442_v43, %v1054_v58 }
 0x25d   : > { %v3861_v57 = vpop.eup %3003  ;;  %v1099_v45 = vmul.f32 %v3442_v43, %v1055_v21  ;;  %v1100_v49 = vmul.f32 %v3442_v43, %v1056_v34  ;;  %v1101_v29 = vmul.f32 %v3442_v43, %v1057_v61  ;;  %v1102_v42 = vmul.f32 %v3442_v43, %v1058_v11 }
 0x25e   : > { %v3867_v1 = vpop.eup %3005  ;;  %v1103_v16 = vmul.f32 %v3442_v43, %v1059_v50  ;;  %v1104_v51 = vmul.f32 %v3442_v43, %v1060_v33  ;;  %v1105_v56 = vmul.f32 %v3442_v43, %v1061_v27  ;;  %v1106_v9 = vmul.f32 %v3442_v43, %v1062_v5 }
 0x25f   : > { %v1107_v15 = vmul.f32 %v3442_v43, %v1063_v31  ;;  %v1120_v0 = vmul.f32 1.442695, %v1092_v46  ;;  %v1122_v8 = vmul.f32 1.442695, %v1093_v10  ;;  %v1124_v41 = vmul.f32 1.442695, %v1094_v59 }
 0x260   : > { %v1126_v18 = vmul.f32 1.442695, %v1095_v53  ;;  %v3878_v22 = vmul.f32 %v4469_v4, %v3549_v30  ;;  %v1162_v23 = vsel %vm1152_vm3, %v3549_v30, 0.0  ;;  %v1128_v26 = vmul.f32 1.442695, %v1096_v54 }
 0x261   : > { %3007 = vpow2.f32 %v1120_v0  ;;  %v1163_v24 = vadd.f32 %v1162_v23, %v4470_v44  ;;  %v1130_v48 = vmul.f32 1.442695, %v1097_v3  ;;  %v1226_v43 = vsel %vm1152_vm3, %v4471_v60, 0.0 }
 0x262   : > { %3009 = vpow2.f32 %v1122_v8  ;;  %v1132_v17 = vmul.f32 1.442695, %v1098_v20  ;;  %v1227_v36 = vadd.f32 %v1226_v43, %v4472_v25  ;;  %v1134_v40 = vmul.f32 1.442695, %v1099_v45 }
 0x263   : > { %3011 = vpow2.f32 %v1124_v41  ;;  %v1136_v63 = vmul.f32 1.442695, %v1100_v49  ;;  %v1164_v30 = vsel %vm1152_vm3, %v3810_v6, 0.0  ;;  %v1138_v47 = vmul.f32 1.442695, %v1101_v29 }
 0x264   : > { %3013 = vpow2.f32 %v1126_v18  ;;  %v1165_v35 = vadd.f32 %v1164_v30, %v1163_v24  ;;  %v1228_v58 = vsel %vm1152_vm3, %v4469_v4, 0.0  ;;  %v1140_v21 = vmul.f32 1.442695, %v1102_v42 }
 0x265   : > { %3015 = vpow2.f32 %v1128_v26  ;;  %v1166_v34 = vsel %vm1152_vm3, %v3818_v7, 0.0  ;;  %v1229_v11 = vadd.f32 %v1228_v58, %v1227_v36  ;;  %v1142_v50 = vmul.f32 1.442695, %v1103_v16 }
 0x266   : > { %3017 = vpow2.f32 %v1130_v48  ;;  %v1167_v33 = vadd.f32 %v1166_v34, %v1165_v35  ;;  %v1144_v5 = vmul.f32 1.442695, %v1104_v51  ;;  %v1168_v31 = vsel %vm1152_vm3, %v3826_v12, 0.0 }
 0x267   : > { %v3888_v55 = vpop.eup %3007  ;;  %3019 = vpow2.f32 %v1132_v17  ;;  %v1146_v10 = vmul.f32 1.442695, %v1105_v56  ;;  %v1148_v54 = vmul.f32 1.442695, %v1106_v9  ;;  %v1170_v3 = vsel %vm1152_vm3, %v3834_v13, 0.0 }
 0x268   : > { %v3894_v61 = vpop.eup %3009  ;;  %3021 = vpow2.f32 %v1134_v40  ;;  %v1169_v59 = vadd.f32 %v1168_v31, %v1167_v33  ;;  %v1230_v20 = vsel %vm1152_vm3, %v3888_v55, 0.0  ;;  %v1150_v49 = vmul.f32 1.442695, %v1107_v15 }
 0x269   : > { %v3012_v27 = vpop.eup %3011  ;;  %3023 = vpow2.f32 %v1136_v63  ;;  %v1231_v42 = vadd.f32 %v1230_v20, %v1229_v11  ;;  %v1172_v51 = vsel %vm1152_vm3, %v3836_v14, 0.0  ;;  %v1232_v56 = vsel %vm1152_vm3, %v3894_v61, 0.0 }
 0x26a   : > { %v3014_v46 = vpop.eup %3013  ;;  %3025 = vpow2.f32 %v1138_v47  ;;  %v1171_v29 = vadd.f32 %v1170_v3, %v1169_v59  ;;  %v1174_v8 = vsel %vm1152_vm3, %v3838_v62, 0.0  ;;  %v1234_v15 = vsel %vm1152_vm3, %v3012_v27, 0.0 }
 0x26b   : > { %v3016_v53 = vpop.eup %3015  ;;  %3027 = vpow2.f32 %v1140_v21  ;;  %v1233_v41 = vadd.f32 %v1232_v56, %v1231_v42  ;;  %v1176_v24 = vsel %vm1152_vm3, %v3840_v28, 0.0  ;;  %v1236_v17 = vsel %vm1152_vm3, %v3014_v46, 0.0 }
 0x26c   : > { %v3018_v45 = vpop.eup %3017  ;;  %3029 = vpow2.f32 %v1142_v50  ;;  %v1173_v0 = vadd.f32 %v1172_v51, %v1171_v29  ;;  %v1178_v47 = vsel %vm1152_vm3, %v3842_v39, 0.0  ;;  %v1238_v21 = vsel %vm1152_vm3, %v3016_v53, 0.0 }
 0x26d   : > { %v3020_v16 = vpop.eup %3019  ;;  %3031 = vpow2.f32 %v1144_v5  ;;  %v1235_v48 = vadd.f32 %v1234_v15, %v1233_v41  ;;  %v3925_v40 = vmul.f32 %v3018_v45, %v3838_v62  ;;  %v3940_v62 = vmul.f32 %v3014_v46, %v3834_v13 }
 0x26e   : > { %v3022_v9 = vpop.eup %3021  ;;  %3033 = vpow2.f32 %v1146_v10  ;;  %v3913_v23 = vmul.f32 %v3020_v16, %v3840_v28  ;;  %v1175_v44 = vadd.f32 %v1174_v8, %v1173_v0  ;;  %v3930_v28 = vmul.f32 %v3016_v53, %v3836_v14 }
 0x26f   : > { %v3024_v18 = vpop.eup %3023  ;;  %3035 = vpow2.f32 %v1148_v54  ;;  %v3910_v4 = vmul.f32 %v3022_v9, %v3842_v39  ;;  %v1237_v35 = vadd.f32 %v1236_v17, %v1235_v48  ;;  %v1180_v39 = vsel %vm1152_vm3, %v3844_v2, 0.0 }
 0x270   : > { %v3026_v26 = vpop.eup %3025  ;;  %3037 = vpow2.f32 %v1150_v49  ;;  %v3922_v36 = vmul.f32 %v3024_v18, %v3844_v2  ;;  %v1177_v30 = vadd.f32 %v1176_v24, %v1175_v44  ;;  %v1240_v10 = vsel %vm1152_vm3, %v3018_v45, 0.0 }
 0x271   : > { %v3028_v43 = vpop.eup %3027  ;;  %v3919_v25 = vmul.f32 %v3026_v26, %v3846_v38  ;;  %v1239_v5 = vadd.f32 %v1238_v21, %v1237_v35  ;;  %v3952_v53 = vmul.f32 %v3012_v27, %v3826_v12  ;;  %v3956_v13 = vmul.f32 %v3894_v61, %v3818_v7 }
 0x272   : > { %v3030_v63 = vpop.eup %3029  ;;  %v3937_v11 = vmul.f32 %v3028_v43, %v3848_v19  ;;  %v1179_v33 = vadd.f32 %v1178_v47, %v1177_v30  ;;  %v1182_v20 = vsel %vm1152_vm3, %v3846_v38, 0.0  ;;  %v1242_v45 = vsel %vm1152_vm3, %v3020_v16, 0.0 }
 0x273   : > { %v3032_v58 = vpop.eup %3031  ;;  %v3934_v34 = vmul.f32 %v3030_v63, %v3850_v37  ;;  %v1241_v2 = vadd.f32 %v1240_v10, %v1239_v5  ;;  %v3969_v12 = vmul.f32 %v3888_v55, %v3810_v6  ;;  %v1184_v27 = vsel %vm1152_vm3, %v3848_v19, 0.0 }
 0x274   : > { %v3034_v50 = vpop.eup %3033  ;;  %v3945_v14 = vmul.f32 %v3032_v58, %v3852_v32  ;;  %v1181_v54 = vadd.f32 %v1180_v39, %v1179_v33  ;;  %v1244_v29 = vsel %vm1152_vm3, %v3022_v9, 0.0  ;;  %v1186_v38 = vsel %vm1152_vm3, %v3850_v37, 0.0 }
 0x275   : > { %v3036_v31 = vpop.eup %3035  ;;  %v3949_v59 = vmul.f32 %v3034_v50, %v3855_v52  ;;  %v1243_v61 = vadd.f32 %v1242_v45, %v1241_v2  ;;  %v1246_v16 = vsel %vm1152_vm3, %v3024_v18, 0.0  ;;  %v1188_v6 = vsel %vm1152_vm3, %v3852_v32, 0.0 }
 0x276   : > { %v3038_v46 = vpop.eup %3037  ;;  %v3959_v3 = vmul.f32 %v3036_v31, %v3861_v57  ;;  %v1183_v7 = vadd.f32 %v1182_v20, %v1181_v54  ;;  %v1248_v55 = vsel %vm1152_vm3, %v3026_v26, 0.0  ;;  %v3067_v15 = vmov 16.0  }
 0x277   : > { %v3965_v49 = vmul.f32 %v3038_v46, %v3867_v1  ;;  %v1245_v51 = vadd.f32 %v1244_v29, %v1243_v61  ;;  %3039 = vrcp.f32 %v3067_v15  ;;  %v1190_v19 = vsel %vm1152_vm3, %v3855_v52, 0.0 }
 0x278   : > { %v1185_v42 = vadd.f32 %v1184_v27, %v1183_v7  ;;  %v1250_v9 = vsel %vm1152_vm3, %v3028_v43, 0.0  ;;  %v1192_v18 = vsel %vm1152_vm3, %v3861_v57, 0.0  ;;  %v1252_v24 = vsel %vm1152_vm3, %v3030_v63, 0.0 }
 0x279   : > { %v1247_v0 = vadd.f32 %v1246_v16, %v1245_v51  ;;  %v1194_v26 = vsel %vm1152_vm3, %v3867_v1, 0.0  ;;  %v1254_v17 = vsel %vm1152_vm3, %v3032_v58, 0.0  ;;  %v1256_v52 = vsel %vm1152_vm3, %v3034_v50, 0.0  ;;  %v4473_v50 = vld [vmem:[#allocation4_spill] sm:$0xff] }
 0x27a   : > { %v1187_v56 = vadd.f32 %v1186_v38, %v1185_v42  ;;  %v1258_v39 = vsel %vm1152_vm3, %v3036_v31, 0.0  ;;  %v1260_v63 = vsel %vm1152_vm3, %v3038_v46, 0.0  ;;  %vm1521_vm4 = vcmask 392192  }
 0x27b   : > { %v1249_v41 = vadd.f32 %v1248_v55, %v1247_v0 }
 0x27c   : > { %v1189_v8 = vadd.f32 %v1188_v6, %v1187_v56 }
 0x27d   : > { %v1251_v37 = vadd.f32 %v1250_v9, %v1249_v41  ;;  %v3040_v30 = vpop.eup %3039 }
 0x27e   : > { %v1191_v44 = vadd.f32 %v1190_v19, %v1189_v8  ;;  %v1269_v33 = vmul.f32 16.0, %v3040_v30  ;;  %vm1273_vm9 = vweird.f32 %v3040_v30 }
 0x27f   : > { %v1253_v32 = vadd.f32 %v1252_v24, %v1251_v37 }
 0x280   : > { %v1193_v48 = vadd.f32 %v1192_v18, %v1191_v44  ;;  %v1270_v2 = vsub.f32 1.0, %v1269_v33 }
 0x281   : > { %v1255_v35 = vadd.f32 %v1254_v17, %v1253_v32 }
 0x282   : > { %v1195_v47 = vadd.f32 %v1194_v26, %v1193_v48  ;;  %v1271_v7 = vmul.f32 %v3040_v30, %v1270_v2 }
 0x283   : > { %v1257_v21 = vadd.f32 %v1256_v52, %v1255_v35 }
 0x284   : > { %v1196_v43 = vrot.slane %v1195_v47, 4  ;;  %v1272_v51 = vadd.f32 %v3040_v30, %v1271_v7 }
 0x285   : > { %v1259_v5 = vadd.f32 %v1258_v39, %v1257_v21 }
 0x286   : > { %v1197_v57 = vadd.f32 %v1196_v43, %v1195_v47  ;;  %v1274_v16 = vsel %vm1273_vm9, %v3040_v30, %v1272_v51  ;;  %v4482_v51 = vld [vmem:[#allocation18_spill] sm:$0xff] }
 0x287   : > { %v1261_v54 = vadd.f32 %v1260_v63, %v1259_v5 }
 0x288   : > { %v1198_v10 = vrot.slane %v1197_v57, 2 }
 0x289   : > { %v1262_v20 = vrot.slane %v1261_v54, 4 }
 0x28a   : > { %v1199_v1 = vadd.f32 %v1198_v10, %v1197_v57 }
 0x28b   : > { %v1263_v45 = vadd.f32 %v1262_v20, %v1261_v54  ;;  %v4477_v20 = vld [vmem:[#allocation11_spill] sm:$0xff] }
 0x28c   : > { %v1200_v58 = vrot.slane %v1199_v1, 1 }
 0x28d   : > { %v1264_v27 = vrot.slane %v1263_v45, 2 }
 0x28e   : > { %v1201_v61 = vadd.f32 %v1200_v58, %v1199_v1  ;;  %v4478_v58 = vld [vmem:[#allocation14_spill] sm:$0xff] }
 0x28f   : > { %v1265_v42 = vadd.f32 %v1264_v27, %v1263_v45  ;;  %v1294_v45 = vmul.f32 %v4478_v58, %v4477_v20  ;;  %v4480_v27 = vld [vmem:[#allocation12_spill] sm:$0xff] }
 0x290   : > { %v1202_v29 = vmul.f32 %v1201_v61, %v4473_v50  ;;  %v4479_v61 = vld [vmem:[#allocation9_spill] sm:$0xff]  ;;  %v1518_v50 = vld [vmem:[%s4014_s24 + $0x28] sm:$0xff] }
 0x291   : > { %v1266_v38 = vrot.slane %v1265_v42, 1 }
 0x292   : > { %v1203_v31 = vadd.f32 1e-08, %v1202_v29 }
 0x293   : > { %v1267_v46 = vadd.f32 %v1266_v38, %v1265_v42  ;;  %v4481_v42 = vld [vmem:[#allocation16_spill] sm:$0xff] }
 0x294   : > { %3041 = vrcp.f32 %v1203_v31  ;;  %v1215_v44 = vand.u32 2147483648, %v1203_v31  ;;  %vm1209_vm11 = vweird.f32 %v1203_v31  ;;  %v1213_v37 = vand.u32 2147483647, %v1203_v31 }
 0x295   : > { %v1275_v56 = vmul.f32 %v1274_v16, %v1267_v46  ;;  %v1513_v16 = vld [vmem:[%s4014_s24] sm:$0xff]  ;;  %v1520_v46 = vld [vmem:[%s4014_s24 + $0x38] sm:$0xff] }
 0x296   : > { %v1216_v17 = vor.u32 1.1754944e-38, %v1215_v44  ;;  %vm1214_vm14 = vcmp.eq.f32.partialorder %v1213_v37, 8.507059e+37 }
 0x297   : > { %v1276_v0 = vadd.f32 1e-08, %v1275_v56  ;;  %v1515_v56 = vld [vmem:[%s4014_s24 + $0x10] sm:$0xff] }
 0x299   : > { %3043 = vrcp.f32 %v1276_v0  ;;  %v1288_v24 = vand.u32 2147483648, %v1276_v0  ;;  %v1286_v26 = vand.u32 2147483647, %v1276_v0  ;;  %vm1282_vm15 = vweird.f32 %v1276_v0 }
 0x29a   : > { %v3042_v6 = vpop.eup %3041 }
 0x29b   : > { %v1205_v55 = vmul.f32 %v3042_v6, %v1203_v31  ;;  %vm1210_vm10 = vweird.f32 %v3042_v6  ;;  %v1289_v35 = vor.u32 1.1754944e-38, %v1288_v24  ;;  %vm1287_vm3 = vcmp.eq.f32.partialorder %v1286_v26, 8.507059e+37 }
 0x29c   : > { %vm1211_vm12 = vmor %vm1209_vm11, %vm1210_vm10  ;;  %v1292_v31 = vmul.f32 %v4482_v51, %v4481_v42 }
 0x29d   : > { %v1206_v8 = vsub.f32 1.0, %v1205_v55  ;;  %v1435_v55 = vpop.xlane.xlu1 %1434 }
 0x29f   : > { %v1207_v41 = vmul.f32 %v3042_v6, %v1206_v8  ;;  %v3044_v15 = vpop.eup %3043 }
 0x2a0   : > { %v1278_v9 = vmul.f32 %v3044_v15, %v1276_v0  ;;  %vm1283_vm13 = vweird.f32 %v3044_v15  ;;  %v1517_v0 = vld [vmem:[%s4014_s24 + $0x20] sm:$0xff] }
 0x2a1   : > { %v1208_v19 = vadd.f32 %v3042_v6, %v1207_v41  ;;  %vm1284_vm2 = vmor %vm1282_vm15, %vm1283_vm13  ;;  %v1445_v41 = vadd.f32 1e-08, %v1435_v55 }
 0x2a2   : > { %v1279_v18 = vsub.f32 1.0, %v1278_v9 }
 0x2a3   : > { %v1212_v48 = vsel %vm1211_vm12, %v3042_v6, %v1208_v19  ;;  %v1519_v6 = vld [vmem:[%s4014_s24 + $0x30] sm:$0xff]  ;;  %3045 = vrcp.f32 %v1445_v41  ;;  %vm1454_vm7 = vweird.f32 %v1445_v41 }
 0x2a4   : > { %v1280_v32 = vmul.f32 %v3044_v15, %v1279_v18  ;;  %v1217_v47 = vsel %vm1214_vm14, %v1216_v17, %v1212_v48  ;;  %v1441_v18 = vpop.xlane.xlu2 %1440 }
 0x2a5   : > { %v1438_v19 = vpop.xlane.xlu1 %1437  ;;  %v1447_v26 = vadd.f32 1e-08, %v1441_v18  ;;  %v3076_v18 = vmov 0.0  }
 0x2a6   : > { %v1281_v30 = vadd.f32 %v3044_v15, %v1280_v32  ;;  %v1446_v44 = vadd.f32 1e-08, %v1438_v19 }
 0x2a7   : > { %vm1484_vm15 = vweird.f32 %v1447_v26 }
 0x2a8   : > { %v1285_v52 = vsel %vm1284_vm2, %v3044_v15, %v1281_v30  ;;  %3047 = vrcp.f32 %v1446_v44  ;;  %vm1469_vm11 = vweird.f32 %v1446_v44 }
 0x2a9   : > { %v1290_v43 = vsel %vm1287_vm3, %v1289_v35, %v1285_v52  ;;  %v3046_v37 = vpop.eup %3045  ;;  %3049 = vrcp.f32 %v1447_v26 }
 0x2aa   : > { %v1314_v21 = vmul.f32 %v1290_v43, %v1217_v47  ;;  %v1450_v48 = vmul.f32 %v3046_v37, %v1445_v41  ;;  %vm1455_vm6 = vweird.f32 %v3046_v37 }
 0x2ab   : > { %vm1456_vm8 = vmor %vm1454_vm7, %vm1455_vm6 }
 0x2ac   : > { %v1330_v33 = vmul.f32 %v1314_v21, %v3919_v25  ;;  %v1336_v39 = vmul.f32 %v1314_v21, %v3965_v49  ;;  %v1329_v57 = vmul.f32 %v1314_v21, %v3922_v36  ;;  %v1335_v5 = vmul.f32 %v1314_v21, %v3959_v3  ;;  %v1444_v52 = vpop.xlane.xlu2 %1443 }
 0x2ad   : > { %v1328_v63 = vmul.f32 %v1314_v21, %v3910_v4  ;;  %v1334_v10 = vmul.f32 %v1314_v21, %v3949_v59  ;;  %v1327_v54 = vmul.f32 %v1314_v21, %v3913_v23  ;;  %v1333_v2 = vmul.f32 %v1314_v21, %v3945_v14 }
 0x2ae   : > { %1534 = vmatpush.msra.mxu3 %v1330_v33  ;;  %1573 = vmatpush.msrb.mxu0 %v1336_v39  ;;  %v1326_v1 = vmul.f32 %v1314_v21, %v3925_v40  ;;  %v1332_v25 = vmul.f32 %v1314_v21, %v3934_v34  ;;  %v1325_v49 = vmul.f32 %v1314_v21, %v3930_v28  ;;  %v1514_v40 = vld [vmem:[%s4014_s24 + $0x8] sm:$0xff]  ;;  %v4474_v28 = vld [vmem:[#allocation17_spill] sm:$0xff]  ;;  %v1451_v17 = vsub.f32 1.0, %v1450_v48  ;;  %v3048_v30 = vpop.eup %3047 }
 0x2af   : > { %v1331_v36 = vmul.f32 %v1314_v21, %v3937_v11  ;;  %v1324_v3 = vmul.f32 %v1314_v21, %v3940_v62  ;;  %v1323_v4 = vmul.f32 %v1314_v21, %v3952_v53  ;;  %v1322_v59 = vmul.f32 %v1314_v21, %v3956_v13  ;;  %v4475_v62 = vld [vmem:[#allocation10_spill] sm:$0xff]  ;;  %v4476_v53 = vld [vmem:[#allocation13_spill] sm:$0xff] }
 0x2b0   : > { %1535 = vmatpush.msra.mxu3 %v1329_v57  ;;  %1574 = vmatpush.msrb.mxu0 %v1335_v5  ;;  %v1321_v23 = vmul.f32 %v1314_v21, %v3969_v12  ;;  %v1320_v14 = vmul.f32 %v1314_v21, %v3878_v22  ;;  %v1516_v22 = vld [vmem:[%s4014_s24 + $0x18] sm:$0xff]  ;;  %v1296_v34 = vmul.f32 %v4471_v60, %v4474_v28  ;;  %v3050_v5 = vpop.eup %3049  ;;  %vm1470_vm10 = vweird.f32 %v3048_v30  ;;  %s3090_s24 = smov 114  }
 0x2b1   : > { %v1295_v13 = vmul.f32 %v4476_v53, %v4475_v62  ;;  %v1317_v7 = vmul.f32 %v1314_v21, %v1294_v45  ;;  %v1293_v60 = vmul.f32 %v4480_v27, %v4479_v61  ;;  %v1315_v38 = vmul.f32 %v1314_v21, %v1292_v31  ;;  %vm1471_vm12 = vmor %vm1469_vm11, %vm1470_vm10  ;;  %v4484_v27 = vld [vmem:[#allocation6_spill] sm:$0xff] }
 0x2b2   : > { %1536 = vmatpush.msra.mxu3 %v1328_v63  ;;  %1575 = vmatpush.msrb.mxu0 %v1334_v10  ;;  %v1319_v11 = vmul.f32 %v1314_v21, %v1296_v34  ;;  %v1452_v35 = vmul.f32 %v3046_v37, %v1451_v17  ;;  %v1465_v43 = vmul.f32 %v3048_v30, %v1446_v44  ;;  %v1460_v63 = vand.u32 2147483648, %v1445_v41  ;;  %v4483_v34 = vld [vmem:[#allocation8_spill] sm:$0xff] }
 0x2b3   : > { %v1318_v12 = vmul.f32 %v1314_v21, %v1295_v13  ;;  %v1316_v29 = vmul.f32 %v1314_v21, %v1293_v60  ;;  %v4038_v21 = vadd.f32 1e-08, %v1444_v52  ;;  %v1458_v10 = vand.u32 2147483647, %v1445_v41  ;;  %v4486_v41 = vld [vmem:[#allocation21_spill] sm:$0xff] }
 0x2b4   : > { %1537 = vmatpush.msra.mxu3 %v1327_v54  ;;  %1576 = vmatpush.msrb.mxu0 %v1333_v2  ;;  %v1453_v33 = vadd.f32 %v3046_v37, %v1452_v35  ;;  %v1466_v39 = vsub.f32 1.0, %v1465_v43  ;;  %v1475_v28 = vand.u32 2147483648, %v1446_v44  ;;  %v1473_v62 = vand.u32 2147483647, %v1446_v44 }
 0x2b5   : > { %3051 = vrcp.f32 %v4038_v21  ;;  %vm1459_vm9 = vcmp.eq.f32.partialorder %v1458_v10, 8.507059e+37  ;;  %vm1485_vm14 = vweird.f32 %v3050_v5  ;;  %v1490_v61 = vand.u32 2147483648, %v1447_v26 }
 0x2b6   : > { %1538 = vmatpush.msra.mxu3 %v1326_v1  ;;  %1577 = vmatpush.msrb.mxu0 %v1332_v25  ;;  %v1480_v1 = vmul.f32 %v3050_v5, %v1447_v26  ;;  %v1457_v25 = vsel %vm1456_vm8, %v3046_v37, %v1453_v33  ;;  %v1476_v20 = vor.u32 1.1754944e-38, %v1475_v28  ;;  %vm1474_vm13 = vcmp.eq.f32.partialorder %v1473_v62, 8.507059e+37  ;;  %vm1486_vm2 = vmor %vm1484_vm15, %vm1485_vm14 }
 0x2b7   : > { %v1491_v51 = vor.u32 1.1754944e-38, %v1490_v61  ;;  %vm1499_vm6 = vweird.f32 %v4038_v21  ;;  %vm1644_vm10 = vcmask 230569   ;;  %vm1649_vm11 = vcmask 297194  }
 0x2b8   : > { %1539 = vmatpush.msra.mxu3 %v1325_v49  ;;  %1578 = vmatpush.msrb.mxu0 %v1331_v36  ;;  %v1467_v49 = vmul.f32 %v3048_v30, %v1466_v39  ;;  %v1461_v36 = vor.u32 1.1754944e-38, %v1460_v63  ;;  %vm1664_vm14 = vcmask 497069   ;;  %vm1669_vm15 = vcmask 563694  }
 0x2b9   : > { %2770 = vmatmul.msk.f32.vlgmr.msrb.gmra.mxu0 %vm1521_vm4, %v1514_v40 }
 0x2ba   : > { %1540 = vmatpush.msra.mxu3 %v1324_v3 }
 0x2bb   : > { %v3052_v40 = vpop.eup %3051 }
 0x2bc   : > { %1541 = vmatpush.msra.mxu3 %v1323_v4  ;;  %v1495_v53 = vmul.f32 %v3052_v40, %v4038_v21 }
 0x2be   : > { %1542 = vmatpush.msra.mxu3 %v1322_v59  ;;  %v1462_v59 = vsel %vm1459_vm9, %v1461_v36, %v1457_v25  ;;  %v1496_v45 = vsub.f32 1.0, %v1495_v53  ;;  %vm1639_vm9 = vcmask 163944  }
 0x2c0   : > { %1543 = vmatpush.msra.mxu3 %v1321_v23  ;;  %v1481_v23 = vsub.f32 1.0, %v1480_v1  ;;  %v1497_v42 = vmul.f32 %v3052_v40, %v1496_v45 }
 0x2c1   : > { %2771 = vmatmul.msk.f32.gmra.mxu0 %vm1521_vm4, %v1516_v22 }
 0x2c2   : > { %1544 = vmatpush.msra.mxu3 %v1320_v14  ;;  %v1468_v14 = vadd.f32 %v3048_v30, %v1467_v49 }
 0x2c4   : > { %1545 = vmatpush.msra.mxu3 %v1319_v11  ;;  %v1509_v11 = vmul.f32 %v1462_v59, %v4483_v34  ;;  %v1472_v13 = vsel %vm1471_vm12, %v3048_v30, %v1468_v14  ;;  %vm1654_vm12 = vcmask 363819  }
 0x2c5   : > { %v1477_v58 = vsel %vm1474_vm13, %v1476_v20, %v1472_v13  ;;  %vm1659_vm13 = vcmask 430444  }
 0x2c6   : > { %1546 = vmatpush.msra.mxu3 %v1318_v12  ;;  %v1482_v12 = vmul.f32 %v3050_v5, %v1481_v23  ;;  %v1510_v60 = vmul.f32 %v1477_v58, %v4484_v27 }
 0x2c8   : > { %1547 = vmatpush.msra.mxu3 %v1317_v7  ;;  %v1483_v7 = vadd.f32 %v3050_v5, %v1482_v12 }
 0x2c9   : > { %2772 = vmatmul.msk.f32.gmra.mxu0 %vm1521_vm4, %v1518_v50  ;;  %v1488_v50 = vand.u32 2147483647, %v1447_v26 }
 0x2ca   : > { %1548 = vmatpush.msra.mxu3 %v1316_v29  ;;  %v1487_v29 = vsel %vm1486_vm2, %v3050_v5, %v1483_v7  ;;  %vm1674_vm2 = vcmask 630319  }
 0x2cb   : > { %vm1489_vm3 = vcmp.eq.f32.partialorder %v1488_v50, 8.507059e+37 }
 0x2cc   : > { %1549 = vmatpush.msra.mxu3 %v1315_v38  ;;  %v1492_v31 = vsel %vm1489_vm3, %v1491_v51, %v1487_v29  ;;  %v1498_v38 = vadd.f32 %v3052_v40, %v1497_v42  ;;  %v2778_v51 = vld [vmem:[%s4349_s5 + $0x8] sm:$0xff] }
 0x2cd   : > { %1550 = vmatmul.f32.vlgmr.msra.gmra.mxu3 %v1513_v16  ;;  %v1505_v16 = vand.u32 2147483648, %v4038_v21 }
 0x2cf   : > { %v1506_v55 = vor.u32 1.1754944e-38, %v1505_v16  ;;  %v2846_v16 = vld [vmem:[%s4349_s5 + $0xb8] sm:$0xff] }
 0x2d1   : > { %2773 = vmatmul.msk.f32.gmra.mxu0 %vm1521_vm4, %v1520_v46  ;;  %vm1500_vm4 = vweird.f32 %v3052_v40  ;;  %v4485_v46 = vld [vmem:[#allocation15_spill] sm:$0xff] }
 0x2d2   : > { %vm1501_vm7 = vmor %vm1499_vm6, %vm1500_vm4 }
 0x2d5   : > { %1553 = vmatmul.f32.gmra.mxu3 %v1515_v56  ;;  %v1511_v56 = vmul.f32 %v1492_v31, %v4485_v46 }
 0x2dd   : > { %1556 = vmatmul.f32.gmra.mxu3 %v1517_v0  ;;  %v1503_v0 = vand.u32 2147483647, %v4038_v21 }
 0x2df   : > { %vm1504_vm8 = vcmp.eq.f32.partialorder %v1503_v0, 8.507059e+37 }
 0x2e5   : > { %1559 = vmatmul.f32.gmra.mxu3 %v1519_v6  ;;  %v1502_v6 = vsel %vm1501_vm7, %v3052_v40, %v1498_v38  ;;  %v4487_v40 = vld [vmem:[#allocation3_spill] sm:$0xff]  ;;  %v2813_v38 = vld [vmem:[%s4349_s5 + $0x60] sm:$0xff] }
 0x336   : > { %v1580_v8 = vpop.f32.mrf.mxu0 }
 0x33e   : > { %v1583_v9 = vpop.f32.mrf.mxu0 }
 0x346   : > { %v1586_v32 = vpop.f32.mrf.mxu0 }
 0x34e   : > { %v1589_v57 = vpop.f32.mrf.mxu0 }
 0x350   : > { %v1551_v15 = vpop.f32.mrf.mxu3 }
 0x351   : > { %v1581_v22 = vadd.f32 %v1580_v8, %v1551_v15  ;;  %v1507_v8 = vsel %vm1504_vm8, %v1506_v55, %v1502_v6  ;;  %v1791_v55 = vld [vmem:[%s4349_s5] sm:$0xff] }
 0x352   : > { %v1512_v15 = vmul.f32 %v1507_v8, %v4486_v41 }
 0x358   : > { %v1554_v24 = vpop.f32.mrf.mxu3 }
 0x359   : > { %v1584_v4 = vadd.f32 %v1583_v9, %v1554_v24 }
 0x360   : > { %v1557_v47 = vpop.f32.mrf.mxu3 }
 0x361   : > { %v1587_v3 = vadd.f32 %v1586_v32, %v1557_v47 }
 0x368   : > { %v1560_v54 = vpop.f32.mrf.mxu3 }
 0x369   : > { %v1590_v2 = vadd.f32 %v1589_v57, %v1560_v54 }
 0x36b   : > { %1616 = vmatpush.msrb.mxu1 %v1590_v2 }
 0x36d   : > { %1617 = vmatpush.msrb.mxu1 %v1587_v3 }
 0x36f   : > { %1618 = vmatpush.msrb.mxu1 %v1584_v4 }
 0x371   : > { %1619 = vmatpush.msrb.mxu1 %v1581_v22  ;;  %v4488_v22 = vld [vmem:[#allocation5_spill] sm:$0xff] }
 0x372   : > { %2774 = vmatmul.msk.f32.vlgmr.msrb.gmra.mxu1 %vm1432_vm5, %v1509_v11  ;;  %v1775_v28 = vmul.f32 %v4488_v22, %v4487_v40 }
 0x374   : > { %v4099_v34 = vfloor.f32 %v1775_v28  ;;  %v2801_v28 = vld [vmem:[%s4349_s5 + $0x40] sm:$0xff] }
 0x376   : > { %v1777_v13 = vmul.f32 4.0, %v4099_v34  ;;  %vm1779_vm4 = vcmp.ge.f32.partialorder %v4099_v34, 1.0 }
 0x378   : > { %v4106_v12 = vsub.f32 %v4488_v22, %v1777_v13 }
 0x37a   : > { %2775 = vmatmul.msk.f32.gmra.mxu1 %vm1432_vm5, %v1510_v60  ;;  %vm1781_vm3 = vcmp.ge.f32.partialorder %v4106_v12, 1.0  ;;  %vm1782_vm7 = vcmp.le.f32.partialorder %v4106_v12, 2.0 }
 0x37b   : > { %vm4115_vm6 = vmand %vm1779_vm4, %vm1781_vm3 }
 0x37c   : > { %vm4142_vm8 = vmand %vm1779_vm4, %vm1782_vm7 }
 0x382   : > { %2776 = vmatmul.msk.f32.gmra.mxu1 %vm1432_vm5, %v1511_v56  ;;  %v2789_v56 = vld [vmem:[%s4349_s5 + $0x20] sm:$0xff] }
 0x38a   : > { %2777 = vmatmul.msk.f32.gmra.mxu1 %vm1432_vm5, %v1512_v15  ;;  %vm1633_vm5 = vcmask 732160  }
 0x38b   : > { %1634 = vst.msk [vmem:[#allocation2] sm:$0xf] %vm1633_vm5, %v3076_v18  ;;  %vm1780_vm5 = vcmp.le.f32.partialorder %v4099_v34, 0.0  ;;  %v2855_v34 = vld [vmem:[%s4349_s5 + $0xd0] sm:$0xff] }
 0x3ef   : > { %v1621_v19 = vpop.f32.mrf.mxu1 }
 0x3f0   : > { %1651 = vrot.lane.b32.xlu0 %v1621_v19, %s3068_s25  ;;  %1641 = vrot.lane.b32.xlu2 %v1621_v19, %s3069_s26 }
 0x3f1   : > { %1636 = vrot.lane.b32.xlu1 %v1621_v19, %s3070_s27 }
 0x3f7   : > { %v1624_v9 = vpop.f32.mrf.mxu1 }
 0x3f8   : > { %1666 = vrot.lane.b32.xlu0 %v1621_v19, %s3071_s28  ;;  %1656 = vrot.lane.b32.xlu2 %v1621_v19, %s3072_s29 }
 0x3f9   : > { %1646 = vrot.lane.b32.xlu1 %v1621_v19, %s3073_s30 }
 0x3ff   : > { %v1627_v44 = vpop.f32.mrf.mxu1 }
 0x400   : > { %1671 = vrot.lane.b32.xlu2 %v1621_v19, %s3074_s8  ;;  %1685 = vrot.lane.b32.xlu0 %v1624_v9, %s3073_s30 }
 0x401   : > { %1661 = vrot.lane.b32.xlu1 %v1621_v19, %s3075_s9 }
 0x407   : > { %v1630_v37 = vpop.f32.mrf.mxu1 }
 0x408   : > { %1697 = vrot.lane.b32.xlu0 %v1624_v9, %s3075_s9  ;;  %1677 = vrot.lane.b32.xlu2 %v1624_v9, %s3070_s27 }
 0x409   : > { %1681 = vrot.lane.b32.xlu1 %v1624_v9, %s3069_s26 }
 0x410   : > { %1689 = vrot.lane.b32.xlu2 %v1624_v9, %s3068_s25  ;;  %1710 = vrot.lane.b32.xlu0 %v1627_v44, %s3070_s27 }
 0x411   : > { %1693 = vrot.lane.b32.xlu1 %v1624_v9, %s3072_s29 }
 0x418   : > { %1701 = vrot.lane.b32.xlu2 %v1624_v9, %s3071_s28  ;;  %1714 = vrot.lane.b32.xlu0 %v1627_v44, %s3069_s26 }
 0x419   : > { %1722 = vrot.lane.b32.xlu1 %v1627_v44, %s3068_s25 }
 0x420   : > { %1718 = vrot.lane.b32.xlu2 %v1627_v44, %s3073_s30  ;;  %1726 = vrot.lane.b32.xlu0 %v1627_v44, %s3072_s29 }
 0x421   : > { %1734 = vrot.lane.b32.xlu1 %v1627_v44, %s3071_s28 }
 0x428   : > { %1730 = vrot.lane.b32.xlu2 %v1627_v44, %s3075_s9  ;;  %1743 = vrot.lane.b32.xlu0 %v1630_v37, %s3070_s27  ;;  %s3093_s27 = smov 108  }
 0x429   : > { %1751 = vrot.lane.b32.xlu1 %v1630_v37, %s3073_s30 }
 0x430   : > { %1747 = vrot.lane.b32.xlu2 %v1630_v37, %s3069_s26  ;;  %1755 = vrot.lane.b32.xlu0 %v1630_v37, %s3068_s25  ;;  %s3091_s25 = smov 107   ;;  %s3092_s26 = smov 104  }
 0x431   : > { %1763 = vrot.lane.b32.xlu1 %v1630_v37, %s3075_s9 }
 0x438   : > { %1759 = vrot.lane.b32.xlu2 %v1630_v37, %s3072_s29  ;;  %1767 = vrot.lane.b32.xlu0 %v1630_v37, %s3071_s28  ;;  %s3094_s28 = smov 102   ;;  %s3095_s29 = smov 103  }
 0x439   : > { %1705 = vrot.lane.b32.xlu1 %v1624_v9, %s3074_s8 }
 0x440   : > { %1771 = vrot.lane.b32.xlu2 %v1630_v37, %s3074_s8  ;;  %1738 = vrot.lane.b32.xlu0 %v1627_v44, %s3074_s8  ;;  %v2783_v37 = vld [vmem:[%s4349_s5 + $0x10] sm:$0xff] }
 0x44a   : > { %v1642_v24 = vpop.permute.xlu2 %1641 }
 0x452   : > { %v1657_v48 = vpop.permute.xlu2 %1656 }
 0x45a   : > { %v1672_v32 = vpop.permute.xlu2 %1671 }
 0x462   : > { %v1652_v26 = vpop.permute.xlu0 %1651  ;;  %v1678_v17 = vpop.permute.xlu2 %1677 }
 0x463   : > { %1680 = vst.msk [vmem:[#allocation2 + $0x1] sm:$0x1] %vm1639_vm9, %v1678_v17  ;;  %v1637_v30 = vpop.permute.xlu1 %1636 }
 0x464   : > { %1640 = vst.msk [vmem:[#allocation2] sm:$0x1] %vm1639_vm9, %v1637_v30 }
 0x465   : > { %1645 = vst.msk [vmem:[#allocation2 - $0x1] sm:$0x2] %vm1644_vm10, %v1642_v24 }
 0x46a   : > { %v1667_v47 = vpop.permute.xlu0 %1666  ;;  %v1690_v52 = vpop.permute.xlu2 %1689 }
 0x46b   : > { %v1647_v35 = vpop.permute.xlu1 %1646 }
 0x46c   : > { %1650 = vst.msk [vmem:[#allocation2 - $0x2] sm:$0x4] %vm1649_vm11, %v1647_v35 }
 0x46d   : > { %1655 = vst.msk [vmem:[#allocation2 - $0x3] sm:$0x8] %vm1654_vm12, %v1652_v26  ;;  %v2798_v26 = vld [vmem:[%s4349_s5 + $0x38] sm:$0xff] }
 0x46e   : > { %1660 = vst.msk [vmem:[#allocation2 - $0x4] sm:$0x10] %vm1659_vm13, %v1657_v48 }
 0x472   : > { %v1686_v43 = vpop.permute.xlu0 %1685  ;;  %v1702_v33 = vpop.permute.xlu2 %1701 }
 0x473   : > { %v1662_v21 = vpop.permute.xlu1 %1661 }
 0x474   : > { %1665 = vst.msk [vmem:[#allocation2 - $0x5] sm:$0x20] %vm1664_vm14, %v1662_v21  ;;  %v2786_v21 = vld [vmem:[%s4349_s5 + $0x18] sm:$0xff] }
 0x475   : > { %1670 = vst.msk [vmem:[#allocation2 - $0x6] sm:$0x40] %vm1669_vm15, %v1667_v47  ;;  %v2825_v47 = vld [vmem:[%s4349_s5 + $0x80] sm:$0xff] }
 0x476   : > { %1675 = vst.msk [vmem:[#allocation2 - $0x7] sm:$0x80] %vm1674_vm2, %v1672_v32  ;;  %v2795_v32 = vld [vmem:[%s4349_s5 + $0x30] sm:$0xff] }
 0x47a   : > { %v1698_v39 = vpop.permute.xlu0 %1697  ;;  %v1719_v63 = vpop.permute.xlu2 %1718 }
 0x47b   : > { %v1682_v57 = vpop.permute.xlu1 %1681 }
 0x47c   : > { %1684 = vst.msk [vmem:[#allocation2] sm:$0x2] %vm1644_vm10, %v1682_v57 }
 0x47d   : > { %1688 = vst.msk [vmem:[#allocation2 - $0x1] sm:$0x4] %vm1649_vm11, %v1686_v43 }
 0x47e   : > { %1692 = vst.msk [vmem:[#allocation2 - $0x2] sm:$0x8] %vm1654_vm12, %v1690_v52 }
 0x482   : > { %v1711_v5 = vpop.permute.xlu0 %1710  ;;  %v1731_v1 = vpop.permute.xlu2 %1730 }
 0x483   : > { %1713 = vst.msk [vmem:[#allocation2 + $0x2] sm:$0x1] %vm1639_vm9, %v1711_v5  ;;  %v1694_v10 = vpop.permute.xlu1 %1693 }
 0x484   : > { %1696 = vst.msk [vmem:[#allocation2 - $0x3] sm:$0x10] %vm1659_vm13, %v1694_v10 }
 0x485   : > { %1700 = vst.msk [vmem:[#allocation2 - $0x4] sm:$0x20] %vm1664_vm14, %v1698_v39  ;;  %v2807_v39 = vld [vmem:[%s4349_s5 + $0x50] sm:$0xff] }
 0x486   : > { %1704 = vst.msk [vmem:[#allocation2 - $0x5] sm:$0x40] %vm1669_vm15, %v1702_v33  ;;  %v2804_v33 = vld [vmem:[%s4349_s5 + $0x48] sm:$0xff] }
 0x48a   : > { %v1715_v54 = vpop.permute.xlu0 %1714  ;;  %v1748_v36 = vpop.permute.xlu2 %1747 }
 0x48b   : > { %1717 = vst.msk [vmem:[#allocation2 + $0x1] sm:$0x2] %vm1644_vm10, %v1715_v54  ;;  %v1723_v2 = vpop.permute.xlu1 %1722 }
 0x48c   : > { %1721 = vst.msk [vmem:[#allocation2] sm:$0x4] %vm1649_vm11, %v1719_v63 }
 0x48d   : > { %1725 = vst.msk [vmem:[#allocation2 - $0x1] sm:$0x8] %vm1654_vm12, %v1723_v2 }
 0x492   : > { %v1727_v25 = vpop.permute.xlu0 %1726  ;;  %v1760_v59 = vpop.permute.xlu2 %1759 }
 0x493   : > { %1729 = vst.msk [vmem:[#allocation2 - $0x2] sm:$0x10] %vm1659_vm13, %v1727_v25  ;;  %v1735_v49 = vpop.permute.xlu1 %1734 }
 0x494   : > { %1733 = vst.msk [vmem:[#allocation2 - $0x3] sm:$0x20] %vm1664_vm14, %v1731_v1  ;;  %v2792_v1 = vld [vmem:[%s4349_s5 + $0x28] sm:$0xff] }
 0x495   : > { %1737 = vst.msk [vmem:[#allocation2 - $0x4] sm:$0x40] %vm1669_vm15, %v1735_v49  ;;  %v2816_v49 = vld [vmem:[%s4349_s5 + $0x68] sm:$0xff] }
 0x49a   : > { %v1744_v3 = vpop.permute.xlu0 %1743  ;;  %v1772_v62 = vpop.permute.xlu2 %1771 }
 0x49b   : > { %1746 = vst.msk [vmem:[#allocation2 + $0x3] sm:$0x1] %vm1639_vm9, %v1744_v3  ;;  %v1752_v4 = vpop.permute.xlu1 %1751  ;;  %vm4168_vm9 = vmand %vm1780_vm5, %vm1781_vm3  ;;  %v2819_v3 = vld [vmem:[%s4349_s5 + $0x70] sm:$0xff] }
 0x49c   : > { %1750 = vst.msk [vmem:[#allocation2 + $0x2] sm:$0x2] %vm1644_vm10, %v1748_v36  ;;  %vm4209_vm10 = vmand %vm1780_vm5, %vm1782_vm7 }
 0x49d   : > { %1754 = vst.msk [vmem:[#allocation2 + $0x1] sm:$0x4] %vm1649_vm11, %v1752_v4 }
 0x4a2   : > { %v1756_v23 = vpop.permute.xlu0 %1755 }
 0x4a3   : > { %1758 = vst.msk [vmem:[#allocation2] sm:$0x8] %vm1654_vm12, %v1756_v23  ;;  %v1764_v14 = vpop.permute.xlu1 %1763 }
 0x4a4   : > { %1762 = vst.msk [vmem:[#allocation2 - $0x1] sm:$0x10] %vm1659_vm13, %v1760_v59  ;;  %v2837_v59 = vld [vmem:[%s4349_s5 + $0xa0] sm:$0xff] }
 0x4a5   : > { %1766 = vst.msk [vmem:[#allocation2 - $0x2] sm:$0x20] %vm1664_vm14, %v1764_v14 }
 0x4aa   : > { %v1768_v11 = vpop.permute.xlu0 %1767 }
 0x4ab   : > { %1770 = vst.msk [vmem:[#allocation2 - $0x3] sm:$0x40] %vm1669_vm15, %v1768_v11  ;;  %v1706_v53 = vpop.permute.xlu1 %1705 }
 0x4ac   : > { %1774 = vst.msk [vmem:[#allocation2 - $0x4] sm:$0x80] %vm1674_vm2, %v1772_v62  ;;  %v2828_v62 = vld [vmem:[%s4349_s5 + $0x88] sm:$0xff] }
 0x4ad   : > { %1708 = vst.msk [vmem:[#allocation2 - $0x6] sm:$0x80] %vm1674_vm2, %v1706_v53  ;;  %v2831_v53 = vld [vmem:[%s4349_s5 + $0x90] sm:$0xff] }
 0x4b2   : > { %v1739_v20 = vpop.permute.xlu0 %1738 }
 0x4b3   : > { %1741 = vst.msk [vmem:[#allocation2 - $0x5] sm:$0x80] %vm1674_vm2, %v1739_v20  ;;  %v2849_v20 = vld [vmem:[%s4349_s5 + $0xc0] sm:$0xff] }
 0x4ba   : > { %v1787_v45 = vld [vmem:[#allocation2] sm:$0xf] }
 0x4bb   : > { %1890 = vrot.lane.b32.xlu2 %v1787_v45, %s3077_s10  ;;  %1855 = vrot.lane.b32.xlu0 %v1787_v45, %s3078_s11  ;;  %v1790_v7 = vsel %vm4115_vm6, %v1787_v45, 0.0 }
 0x4bc   : > { %1795 = vrot.lane.b32.xlu1 %v1787_v45, %s3062_s7  ;;  %s3089_s7 = smov 110  }
 0x4c3   : > { %2060 = vrot.lane.b32.xlu2 %v1787_v45, %s3079_s12  ;;  %1925 = vrot.lane.b32.xlu0 %v1787_v45, %s3080_s13 }
 0x4c4   : > { %1955 = vrot.lane.b32.xlu1 %v1787_v45, %s3081_s14 }
 0x4cb   : > { %2183 = vrot.lane.b32.xlu2 %v1787_v45, %s3082_s15  ;;  %2025 = vrot.lane.b32.xlu0 %v1787_v45, %s3083_s16 }
 0x4cc   : > { %1990 = vrot.lane.b32.xlu1 %v1787_v45, %s3084_s17  ;;  %s2741_s17 = sshll.u32 %s4498_s22, 3 }
 0x4d3   : > { %2218 = vrot.lane.b32.xlu2 %v1787_v45, %s3085_s18  ;;  %2312 = vrot.lane.b32.xlu0 %v1787_v45, %s3086_s19 }
 0x4d4   : > { %2279 = vrot.lane.b32.xlu1 %v1787_v45, %s3087_s20  ;;  %s269_s20 = scalar_lea.vmem %s4350_s6, %s2741_s17 }
 0x4db   : > { %2531 = vrot.lane.b32.xlu2 %v1787_v45, %s3088_s23  ;;  %2345 = vrot.lane.b32.xlu0 %v1787_v45, %s3089_s7 }
 0x4dc   : > { %2246 = vrot.lane.b32.xlu1 %v1787_v45, %s3090_s24 }
 0x4e3   : > { %2503 = vrot.lane.b32.xlu2 %v1787_v45, %s3091_s25  ;;  %2564 = vrot.lane.b32.xlu0 %v1787_v45, %s3092_s26 }
 0x4e4   : > { %2468 = vrot.lane.b32.xlu1 %v1787_v45, %s3093_s27 }
 0x4eb   : > { %2630 = vrot.lane.b32.xlu0 %v1787_v45, %s3094_s28 }
 0x4ec   : > { %2597 = vrot.lane.b32.xlu1 %v1787_v45, %s3095_s29 }
 0x515   : > { %v1891_v61 = vpop.permute.xlu2 %1890 }
 0x516   : > { %v1893_v8 = vsel %vm1781_vm3, %v1891_v61, 0.0  ;;  %v2810_v61 = vld [vmem:[%s4349_s5 + $0x58] sm:$0xff] }
 0x51d   : > { %v4122_v27 = vpop.permute.xlu2 %2060 }
 0x51e   : > { %v2063_v57 = vsel %vm4209_vm10, %v4122_v27, 0.0  ;;  %v2153_v4 = vsel %vm4142_vm8, %v4122_v27, 0.0 }
 0x525   : > { %v2184_v60 = vpop.permute.xlu2 %2183 }
 0x526   : > { %v2186_v50 = vsel %vm1781_vm3, %v2184_v60, 0.0  ;;  %v2840_v60 = vld [vmem:[%s4349_s5 + $0xa8] sm:$0xff] }
 0x527   : > { %2814 = vmatpush.msk.msrb.mxu3 %vm307_vm0, %v2186_v50  ;;  %v2843_v50 = vld [vmem:[%s4349_s5 + $0xb0] sm:$0xff] }
 0x528   : > { %2815 = vmatmul.msk.f32.vlgmr.msrb.gmra.mxu3 %vm303_vm1, %v2813_v38  ;;  %v2834_v38 = vld [vmem:[%s4349_s5 + $0x98] sm:$0xff] }
 0x52d   : > { %v1856_v29 = vpop.permute.xlu0 %1855  ;;  %v2219_v18 = vpop.permute.xlu2 %2218 }
 0x52e   : > { %v1796_v42 = vpop.permute.xlu1 %1795  ;;  %v1858_v46 = vsel %vm4142_vm8, %v1856_v29, 0.0 }
 0x52f   : > { %v1798_v31 = vsel %vm1779_vm4, %v1796_v42, 0.0  ;;  %v2822_v42 = vld [vmem:[%s4349_s5 + $0x78] sm:$0xff] }
 0x530   : > { %2779 = vmatpush.msk.msrb.mxu2 %vm307_vm0, %v1798_v31 }
 0x531   : > { %2780 = vmatmul.msk.f32.vlgmr.msrb.gmra.mxu2 %vm303_vm1, %v2778_v51  ;;  %v2852_v51 = vld [vmem:[%s4349_s5 + $0xc8] sm:$0xff] }
 0x532   : > { %2781 = vmatpush.msk.msra.mxu2 %vm307_vm0, %v1790_v7 }
 0x534   : > { %2784 = vmatpush.msk.msrb.mxu2 %vm307_vm0, %v1858_v46 }
 0x535   : > { %v1926_v0 = vpop.permute.xlu0 %1925  ;;  %v2532_v5 = vpop.permute.xlu2 %2531 }
 0x536   : > { %v1956_v6 = vpop.permute.xlu1 %1955  ;;  %2790 = vmatpush.msk.msra.mxu1 %vm307_vm0, %v1926_v0  ;;  %v2534_v31 = vsel %vm1782_vm7, %v2532_v5, 0.0 }
 0x537   : > { %2791 = vmatmul.msk.f32.vlgmr.msra.gmra.mxu1 %vm303_vm1, %v2789_v56  ;;  %v1958_v17 = vsel %vm1782_vm7, %v1956_v6, 0.0 }
 0x539   : > { %2782 = vmatmul.msk.f32.vlgmr.msra.gmra.mxu2 %vm303_vm1, %v1791_v55 }
 0x53a   : > { %2787 = vmatpush.msk.msra.mxu2 %vm307_vm0, %v1893_v8 }
 0x53d   : > { %v2026_v15 = vpop.permute.xlu0 %2025  ;;  %v2504_v23 = vpop.permute.xlu2 %2503 }
 0x53e   : > { %v2028_v19 = vsel %vm1780_vm5, %v2026_v15, 0.0  ;;  %v2123_v9 = vsel %vm1779_vm4, %v2026_v15, 0.0  ;;  %v1991_v44 = vpop.permute.xlu1 %1990 }
 0x53f   : > { %v1993_v24 = vsel %vm4168_vm9, %v1991_v44, 0.0  ;;  %v2093_v48 = vsel %vm4115_vm6, %v1991_v44, 0.0  ;;  %2799 = vmatpush.msk.msrb.mxu1 %vm307_vm0, %v2028_v19 }
 0x540   : > { %2796 = vmatpush.msk.msra.mxu0 %vm307_vm0, %v1993_v24  ;;  %2800 = vmatmul.msk.f32.vlgmr.msrb.gmra.mxu1 %vm303_vm1, %v2798_v26 }
 0x541   : > { %2808 = vmatpush.msk.msra.mxu1 %vm307_vm0, %v2123_v9  ;;  %2785 = vmatmul.msk.f32.vlgmr.msrb.gmra.mxu2 %vm303_vm1, %v2783_v37 }
 0x542   : > { %2805 = vmatpush.msk.msrb.mxu0 %vm307_vm0, %v2093_v48  ;;  %2793 = vmatpush.msk.msrb.mxu2 %vm307_vm0, %v1958_v17 }
 0x543   : > { %2797 = vmatmul.msk.f32.vlgmr.msra.gmra.mxu0 %vm303_vm1, %v2795_v32 }
 0x544   : > { %2817 = vmatpush.msk.msra.mxu0 %vm307_vm0, %v2219_v18 }
 0x545   : > { %v4200_v30 = vpop.permute.xlu0 %2312 }
 0x546   : > { %v2315_v52 = vsel %vm1780_vm5, %v4200_v30, 0.0  ;;  %v2280_v43 = vpop.permute.xlu1 %2279  ;;  %v2408_v29 = vsel %vm1779_vm4, %v4200_v30, 0.0 }
 0x547   : > { %2826 = vmatpush.msk.msra.mxu3 %vm307_vm0, %v2315_v52  ;;  %v2378_v36 = vsel %vm4115_vm6, %v2280_v43, 0.0  ;;  %v2282_v13 = vsel %vm4168_vm9, %v2280_v43, 0.0 }
 0x548   : > { %2827 = vmatmul.msk.f32.vlgmr.msra.gmra.mxu3 %vm303_vm1, %v2825_v47  ;;  %2809 = vmatmul.msk.f32.vlgmr.msra.gmra.mxu1 %vm303_vm1, %v2807_v39 }
 0x549   : > { %2788 = vmatmul.msk.f32.vlgmr.msra.gmra.mxu2 %vm303_vm1, %v2786_v21 }
 0x54a   : > { %2802 = vmatpush.msk.msra.mxu2 %vm307_vm0, %v2063_v57 }
 0x54b   : > { %2806 = vmatmul.msk.f32.vlgmr.msrb.gmra.mxu0 %vm303_vm1, %v2804_v33 }
 0x54d   : > { %v2346_v63 = vpop.permute.xlu0 %2345 }
 0x54e   : > { %v2348_v10 = vsel %vm4209_vm10, %v2346_v63, 0.0  ;;  %v2438_v54 = vsel %vm4142_vm8, %v2346_v63, 0.0  ;;  %v2247_v2 = vpop.permute.xlu1 %2246 }
 0x54f   : > { %v2249_v25 = vsel %vm1782_vm7, %v2247_v2, 0.0  ;;  %2829 = vmatpush.msk.msrb.mxu0 %vm307_vm0, %v2348_v10  ;;  %2838 = vmatpush.msk.msrb.mxu3 %vm307_vm0, %v2438_v54 }
 0x550   : > { %2820 = vmatpush.msk.msrb.mxu1 %vm307_vm0, %v2249_v25  ;;  %2839 = vmatmul.msk.f32.vlgmr.msrb.gmra.mxu3 %vm303_vm1, %v2837_v59 }
 0x551   : > { %2794 = vmatmul.msk.f32.vlgmr.msrb.gmra.mxu2 %vm303_vm1, %v2792_v1  ;;  %2821 = vmatmul.msk.f32.vlgmr.msrb.gmra.mxu1 %vm303_vm1, %v2819_v3 }
 0x552   : > { %2832 = vmatpush.msk.msra.mxu1 %vm307_vm0, %v2378_v36  ;;  %2811 = vmatpush.msk.msrb.mxu2 %vm307_vm0, %v2153_v4 }
 0x553   : > { %2818 = vmatmul.msk.f32.vlgmr.msra.gmra.mxu0 %vm303_vm1, %v2816_v49 }
 0x554   : > { %2844 = vmatpush.msk.msrb.mxu1 %vm307_vm0, %v2504_v23 }
 0x555   : > { %v2565_v14 = vpop.permute.xlu0 %2564 }
 0x556   : > { %v2567_v40 = vsel %vm4168_vm9, %v2565_v14, 0.0  ;;  %v2469_v22 = vpop.permute.xlu1 %2468 }
 0x557   : > { %v2471_v11 = vsel %vm1781_vm3, %v2469_v22, 0.0  ;;  %2850 = vmatpush.msk.msra.mxu3 %vm307_vm0, %v2567_v40 }
 0x558   : > { %2841 = vmatpush.msk.msra.mxu0 %vm307_vm0, %v2471_v11  ;;  %2851 = vmatmul.msk.f32.vlgmr.msra.gmra.mxu3 %vm303_vm1, %v2849_v20 }
 0x559   : > { %2803 = vmatmul.msk.f32.vlgmr.msra.gmra.mxu2 %vm303_vm1, %v2801_v28  ;;  %2833 = vmatmul.msk.f32.vlgmr.msra.gmra.mxu1 %vm303_vm1, %v2831_v53 }
 0x55a   : > { %2823 = vmatpush.msk.msra.mxu2 %vm307_vm0, %v2282_v13 }
 0x55b   : > { %2830 = vmatmul.msk.f32.vlgmr.msrb.gmra.mxu0 %vm303_vm1, %v2828_v62 }
 0x55d   : > { %v2631_v58 = vpop.permute.xlu0 %2630 }
 0x55e   : > { %v2633_v45 = vsel %vm4209_vm10, %v2631_v58, 0.0  ;;  %v2598_v7 = vpop.permute.xlu1 %2597 }
 0x55f   : > { %v2600_v27 = vsel %vm1780_vm5, %v2598_v7, 0.0  ;;  %2856 = vmatpush.msk.msra.mxu1 %vm307_vm0, %v2633_v45 }
 0x560   : > { %2853 = vmatpush.msk.msrb.mxu0 %vm307_vm0, %v2600_v27 }
 0x561   : > { %2812 = vmatmul.msk.f32.vlgmr.msrb.gmra.mxu2 %vm303_vm1, %v2810_v61  ;;  %2845 = vmatmul.msk.f32.vlgmr.msrb.gmra.mxu1 %vm303_vm1, %v2843_v50 }
 0x562   : > { %2835 = vmatpush.msk.msrb.mxu2 %vm307_vm0, %v2408_v29 }
 0x563   : > { %2842 = vmatmul.msk.f32.vlgmr.msra.gmra.mxu0 %vm303_vm1, %v2840_v60 }
 0x569   : > { %2824 = vmatmul.msk.f32.vlgmr.msra.gmra.mxu2 %vm303_vm1, %v2822_v42  ;;  %2857 = vmatmul.msk.f32.vlgmr.msra.gmra.mxu1 %vm303_vm1, %v2855_v34 }
 0x56a   : > { %2847 = vmatpush.msk.msra.mxu2 %vm307_vm0, %v2534_v31 }
 0x56b   : > { %2854 = vmatmul.msk.f32.vlgmr.msrb.gmra.mxu0 %vm303_vm1, %v2852_v51 }
 0x571   : > { %2836 = vmatmul.msk.f32.vlgmr.msrb.gmra.mxu2 %vm303_vm1, %v2834_v38 }
 0x579   : > { %2848 = vmatmul.msk.f32.vlgmr.msra.gmra.mxu2 %vm303_vm1, %v2846_v16  ;;  %vm2666_vm1 = vcmask 523264  }
 0x5ab   : > { %v2212_v30 = vpop.f32.mrf.mxu3 }
 0x5b4   : > { %v1824_v12 = vpop.f32.mrf.mxu2  ;;  %v1949_v0 = vpop.f32.mrf.mxu1 }
 0x5bc   : > { %v1850_v46 = vpop.f32.mrf.mxu2 }
 0x5bd   : > { %v1851_v6 = vadd.f32 %v1850_v46, %v1824_v12  ;;  %v2054_v19 = vpop.f32.mrf.mxu1 }
 0x5c0   : > { %v2019_v41 = vpop.f32.mrf.mxu0 }
 0x5c4   : > { %v1884_v56 = vpop.f32.mrf.mxu2 }
 0x5c5   : > { %v1887_v8 = vadd.f32 %v1884_v56, %v1851_v6  ;;  %v2149_v48 = vpop.f32.mrf.mxu1 }
 0x5c8   : > { %v2119_v24 = vpop.f32.mrf.mxu0 }
 0x5cb   : > { %v2341_v57 = vpop.f32.mrf.mxu3 }
 0x5cc   : > { %v1919_v55 = vpop.f32.mrf.mxu2 }
 0x5cd   : > { %v1922_v15 = vadd.f32 %v1919_v55, %v1887_v8 }
 0x5ce   : > { %v2275_v52 = vpop.f32.mrf.mxu1 }
 0x5cf   : > { %v1952_v9 = vadd.f32 %v1949_v0, %v1922_v15 }
 0x5d0   : > { %v2242_v35 = vpop.f32.mrf.mxu0 }
 0x5d3   : > { %v2464_v36 = vpop.f32.mrf.mxu3 }
 0x5d4   : > { %v1984_v44 = vpop.f32.mrf.mxu2 }
 0x5d5   : > { %v1987_v37 = vadd.f32 %v1984_v44, %v1952_v9 }
 0x5d6   : > { %v2404_v2 = vpop.f32.mrf.mxu1 }
 0x5d7   : > { %v2022_v18 = vadd.f32 %v2019_v41, %v1987_v37 }
 0x5d8   : > { %v2374_v63 = vpop.f32.mrf.mxu0 }
 0x5d9   : > { %v2057_v32 = vadd.f32 %v2054_v19, %v2022_v18 }
 0x5db   : > { %v2593_v62 = vpop.f32.mrf.mxu3 }
 0x5dc   : > { %v2089_v26 = vpop.f32.mrf.mxu2 }
 0x5dd   : > { %v2092_v17 = vadd.f32 %v2089_v26, %v2057_v32 }
 0x5de   : > { %v2527_v14 = vpop.f32.mrf.mxu1 }
 0x5df   : > { %v2122_v47 = vadd.f32 %v2119_v24, %v2092_v17 }
 0x5e0   : > { %v2497_v59 = vpop.f32.mrf.mxu0 }
 0x5e1   : > { %v2152_v43 = vadd.f32 %v2149_v48, %v2122_v47 }
 0x5e4   : > { %v2179_v21 = vpop.f32.mrf.mxu2 }
 0x5e5   : > { %v2182_v33 = vadd.f32 %v2179_v21, %v2152_v43 }
 0x5e6   : > { %v2659_v58 = vpop.f32.mrf.mxu1 }
 0x5e7   : > { %v2215_v39 = vadd.f32 %v2212_v30, %v2182_v33 }
 0x5e8   : > { %v2626_v13 = vpop.f32.mrf.mxu0 }
 0x5e9   : > { %v2245_v5 = vadd.f32 %v2242_v35, %v2215_v39 }
 0x5eb   : > { %v2278_v10 = vadd.f32 %v2275_v52, %v2245_v5 }
 0x5ec   : > { %v2308_v54 = vpop.f32.mrf.mxu2 }
 0x5ed   : > { %v2311_v1 = vadd.f32 %v2308_v54, %v2278_v10 }
 0x5ef   : > { %v2344_v25 = vadd.f32 %v2341_v57, %v2311_v1 }
 0x5f1   : > { %v2377_v49 = vadd.f32 %v2374_v63, %v2344_v25 }
 0x5f3   : > { %v2407_v3 = vadd.f32 %v2404_v2, %v2377_v49 }
 0x5f4   : > { %v2434_v4 = vpop.f32.mrf.mxu2 }
 0x5f5   : > { %v2437_v23 = vadd.f32 %v2434_v4, %v2407_v3 }
 0x5f7   : > { %v2467_v40 = vadd.f32 %v2464_v36, %v2437_v23 }
 0x5f9   : > { %v2500_v22 = vadd.f32 %v2497_v59, %v2467_v40 }
 0x5fb   : > { %v2530_v28 = vadd.f32 %v2527_v14, %v2500_v22 }
 0x5fc   : > { %v2560_v11 = vpop.f32.mrf.mxu2 }
 0x5fd   : > { %v2563_v53 = vadd.f32 %v2560_v11, %v2530_v28 }
 0x5ff   : > { %v2596_v20 = vadd.f32 %v2593_v62, %v2563_v53 }
 0x601   : > { %v2629_v45 = vadd.f32 %v2626_v13, %v2596_v20 }
 0x603   : > { %v2662_v7 = vadd.f32 %v2659_v58, %v2629_v45 }
 0x605   : > { %vm2663_vm0 = vcmp.gt.f32.partialorder %v2662_v7, 0.0  ;;  %v2664_v61 = vmul.f32 0.01, %v2662_v7 }
 0x607   : > { %v2665_v27 = vsel %vm2663_vm0, %v2662_v7, %v2664_v61 }
 0x608   : > { %2667 = vst.msk [vmem:[%s269_s20] sm:$0xff] %vm2666_vm1, %v2665_v27 }
 0x609 PF: > { %s16_s21 = sadd.s32 1, %s3059_s21  }
 0x60a   : > { %p13_p4 = scmp.ge.s32.totalorder %s16_s21, 4  }
 0x60c   :  { %15 = sbr.rel (!%p13_p4) target bundleno = 1 (0x1), region = 106 }

</bundles_post_ra>
